<compile_context>
chip_gen: v5e
topology: v5e:2x2
jax: 0.10.0
libtpu: 0.0.40
codegen_flags: <defaults>
</compile_context>

<pallas_src>
import functools

import jax
import jax.numpy as jnp
from jax.experimental import pallas as pl
from jax.experimental.pallas import tpu as pltpu


def _fused_kernel(xse_ref, w1_ref, b1_ref, x_ref, w2_ref, g_ref, bt_ref,
                  o_ref, s_scr, sum_scr, sq_scr, y_scr,
                  *, T, tn, HW, eps, need_mask):
    p = pl.program_id(0)     # pass: 0 = matmul + stats, 1 = BN apply
    t = pl.program_id(1)     # spatial (H*W) tile index

    # One-time init: zero stat accumulators and compute the SE gate
    #   s = sigmoid(W1 @ x_se + b1)   -> (C, 1)
    @pl.when(jnp.logical_and(p == 0, t == 0))
    def _():
        sum_scr[...] = jnp.zeros_like(sum_scr)
        sq_scr[...] = jnp.zeros_like(sq_scr)
        z = jnp.dot(w1_ref[...], xse_ref[...],
                    preferred_element_type=jnp.float32) + b1_ref[...]
        s_scr[...] = jax.nn.sigmoid(z)

    # Pass 0: y_tile = W2 @ (s * x_tile); keep y resident in VMEM, accumulate
    # per-channel sum and sum of squares for the batch-norm statistics.
    @pl.when(p == 0)
    def _():
        xs = x_ref[...] * s_scr[...]                       # (C, tn) * (C, 1)
        if need_mask:
            col = t * tn + jax.lax.broadcasted_iota(jnp.int32, (1, tn), 1)
            xs = jnp.where(col < HW, xs, 0.0)              # zero padded cols
        y = jnp.dot(w2_ref[...], xs,                       # (C, C) @ (C, tn)
                    preferred_element_type=jnp.float32)
        y_scr[t] = y
        sum_scr[...] += jnp.sum(y, axis=1, keepdims=True)
        sq_scr[...] += jnp.sum(y * y, axis=1, keepdims=True)

    # Pass 1: per-channel scale/shift from the accumulated stats, apply BN.
    @pl.when(p == 1)
    def _():
        inv_m = 1.0 / float(HW)
        mean = sum_scr[...] * inv_m
        var = jnp.maximum(sq_scr[...] * inv_m - mean * mean, 0.0)
        scale = g_ref[...] * jax.lax.rsqrt(var + eps)
        shift = bt_ref[...] - mean * scale
        o_ref[...] = y_scr[t] * scale + shift


@jax.jit
def module_forward(x128, x125, w1, b1, w2, gamma, beta):
    eps = 1e-5
    f32 = jnp.float32
    N, C, H, W = x125.shape
    C_se = x128.shape[1]
    # Module spec is batch 1 (BN stats over H*W only).
    # TODO(synk): general N needs per-batch gate indexing + stats over N*H*W.
    assert N == 1, "kernel is specialised to the module's batch size of 1"
    HW = H * W

    # Channels-first flattening: all reshapes below are free (no transposes).
    x2 = x125.reshape(C, HW).astype(f32)
    xse = x128.reshape(C_se, 1).astype(f32)
    w1m = w1.reshape(C, C_se).astype(f32)      # PyTorch (out,in), used as-is
    b1c = b1.reshape(C, 1).astype(f32)
    w2m = w2.reshape(C, C).astype(f32)         # (out,in): y = W2 @ x directly
    g = gamma.reshape(C, 1).astype(f32)
    bt = beta.reshape(C, 1).astype(f32)

    # Spatial tiling along the lane axis (256 is a multiple of 128).
    tn = 256 if HW >= 256 else HW
    T = pl.cdiv(HW, tn)
    need_mask = (T * tn != HW)
    # TODO(synk): y is kept fully resident in VMEM scratch (fine for this
    # module's 1056x784); a much larger H*W would need a spill-to-HBM variant.

    const = lambda p, t: (0, 0)
    kernel = functools.partial(_fused_kernel, T=T, tn=tn, HW=HW, eps=eps,
                               need_mask=need_mask)

    out_flat = pl.pallas_call(
        kernel,
        out_shape=jax.ShapeDtypeStruct((C, HW), f32),
        grid_spec=pltpu.PrefetchScalarGridSpec(
            num_scalar_prefetch=0,
            grid=(2, T),
            in_specs=[
                pl.BlockSpec((C_se, 1), const),           # x_se
                pl.BlockSpec((C, C_se), const),           # W1 (resident)
                pl.BlockSpec((C, 1), const),              # b1
                # x tile; pinned to the last tile during pass 1 -> no refetch.
                pl.BlockSpec((C, tn),
                             lambda p, t: (0, jnp.where(p == 0, t, T - 1))),
                pl.BlockSpec((C, C), const),              # W2 (resident)
                pl.BlockSpec((C, 1), const),              # gamma
                pl.BlockSpec((C, 1), const),              # beta
            ],
            # Output index is pinned during pass 0 (nothing is written then),
            # pass 1 walks the tiles and writes the final result once.
            out_specs=pl.BlockSpec(
                (C, tn), lambda p, t: (0, jnp.where(p == 0, 0, t))),
            scratch_shapes=[
                pltpu.VMEM((C, 1), f32),                  # SE gate s
                pltpu.VMEM((C, 1), f32),                  # per-channel sum
                pltpu.VMEM((C, 1), f32),                  # per-channel sum sq
                pltpu.VMEM((T, C, tn), f32),              # resident y
            ],
        ),
        compiler_params=pltpu.CompilerParams(
            dimension_semantics=("arbitrary", "arbitrary"),
            vmem_limit_bytes=48 * 1024 * 1024),
    )(xse, w1m, b1c, x2, w2m, g, bt)

    return out_flat.reshape(N, C, H, W)


def reference_forward(x128, x125, w1, b1, w2, gamma, beta, eps=1e-5):
    """Pure-JAX reference of the PyTorch module (training-mode BN)."""
    N, C, H, W = x125.shape
    C_se = x128.shape[1]
    s = jax.nn.sigmoid(x128.reshape(N, C_se) @ w1.reshape(C, C_se).T
                       + b1.reshape(1, C))                 # (N, C)
    x131 = x125 * s.reshape(N, C, 1, 1)
    x_flat = jnp.transpose(x131, (0, 2, 3, 1)).reshape(-1, C)
    y = x_flat @ w2.reshape(C, C).T
    mean = y.mean(axis=0, keepdims=True)
    var = ((y - mean) ** 2).mean(axis=0, keepdims=True)
    out = (y - mean) * jax.lax.rsqrt(var + eps) * gamma.reshape(1, C) \
        + beta.reshape(1, C)
    return out.reshape(N, H, W, C).transpose(0, 3, 1, 2)


if __name__ == "__main__":
    # Small shapes with the module's structure (module: C_se=264, C=1056,
    # H=W=28).  Channels scaled down; spatial kept at 28 so the real shape's
    # partial-tile masking path (784 = 3*256 + 16) is exercised.
    N, C_se, C, H, W = 1, 32, 128, 28, 28

    key = jax.random.PRNGKey(0)
    k = jax.random.split(key, 7)
    x128 = jax.random.normal(k[0], (N, C_se, 1, 1), jnp.float32)
    x125 = jax.random.normal(k[1], (N, C, H, W), jnp.float32)

    # Synthetic parameters matching the module's parameter shapes.
    w1 = jax.random.normal(k[2], (C, C_se, 1, 1), jnp.float32) * 0.1   # Conv2d41 weight
    b1 = jax.random.normal(k[3], (C,), jnp.float32) * 0.1              # Conv2d41 bias
    w2 = jax.random.normal(k[4], (C, C, 1, 1), jnp.float32) * 0.1      # Conv2d42 weight
    gamma = jax.random.normal(k[5], (C,), jnp.float32) * 0.1 + 1.0     # BN weight
    beta = jax.random.normal(k[6], (C,), jnp.float32) * 0.1            # BN bias

    out = module_forward(x128, x125, w1, b1, w2, gamma, beta)
    out = jax.block_until_ready(out)

    ref = reference_forward(x128, x125, w1, b1, w2, gamma, beta)
    assert out.shape == (N, C, H, W)
    err = jnp.abs(out - ref).max()
    assert jnp.allclose(out, ref, atol=5e-4, rtol=5e-4), f"max err {err}"

    print("KERNEL_OK")
</pallas_src>

<mosaic_0001>
module attributes {stable_mosaic.version = 11 : i64} {
  func.func @_fused_kernel(%arg0: i32, %arg1: i32, %arg2: memref<32x1xf32, #tpu.memory_space<vmem>>, %arg3: memref<128x32xf32, #tpu.memory_space<vmem>>, %arg4: memref<128x1xf32, #tpu.memory_space<vmem>>, %arg5: memref<128x256xf32, #tpu.memory_space<vmem>>, %arg6: memref<128x128xf32, #tpu.memory_space<vmem>>, %arg7: memref<128x1xf32, #tpu.memory_space<vmem>>, %arg8: memref<128x1xf32, #tpu.memory_space<vmem>>, %arg9: memref<128x256xf32, #tpu.memory_space<vmem>>, %arg10: memref<128x1xf32, #tpu.memory_space<vmem>>, %arg11: memref<128x1xf32, #tpu.memory_space<vmem>>, %arg12: memref<128x1xf32, #tpu.memory_space<vmem>>, %arg13: memref<4x128x256xf32, #tpu.memory_space<vmem>>) attributes {dimension_semantics = [#tpu.dimension_semantics<arbitrary>, #tpu.dimension_semantics<arbitrary>], iteration_bounds = array<i64: 2, 4>, scalar_prefetch = 0 : i64, scratch_operands = 4 : i64, tpu.core_type = #tpu.core_type<tc>, window_params = [{pipeline_mode = #tpu.pipeline_mode<synchronous>, transform_indices = @transform_0, window_bounds = array<i64: 32, 1>}, {pipeline_mode = #tpu.pipeline_mode<synchronous>, transform_indices = @transform_1, window_bounds = array<i64: 128, 32>}, {pipeline_mode = #tpu.pipeline_mode<synchronous>, transform_indices = @transform_2, window_bounds = array<i64: 128, 1>}, {transform_indices = @transform_3, window_bounds = array<i64: 128, 256>}, {pipeline_mode = #tpu.pipeline_mode<synchronous>, transform_indices = @transform_4, window_bounds = array<i64: 128, 128>}, {pipeline_mode = #tpu.pipeline_mode<synchronous>, transform_indices = @transform_5, window_bounds = array<i64: 128, 1>}, {pipeline_mode = #tpu.pipeline_mode<synchronous>, transform_indices = @transform_6, window_bounds = array<i64: 128, 1>}, {transform_indices = @transform_7, window_bounds = array<i64: 128, 256>}]} {
    %c0_i32 = arith.constant 0 : i32
    %0 = arith.cmpi eq, %arg0, %c0_i32 : i32
    %c0_i32_0 = arith.constant 0 : i32
    %1 = arith.cmpi eq, %arg1, %c0_i32_0 : i32
    %2 = arith.andi %0, %1 : i1
    %3 = arith.extui %2 : i1 to i32
    %c0_i32_1 = arith.constant 0 : i32
    %4 = arith.cmpi ne, %3, %c0_i32_1 : i32
    scf.if %4 {
      %cst = arith.constant 0.000000e+00 : f32
      %11 = vector.broadcast %cst : f32 to vector<128x1xf32>
      %c0 = arith.constant 0 : index
      %c0_5 = arith.constant 0 : index
      %12 = vector.load %arg11[%c0, %c0_5] : memref<128x1xf32, #tpu.memory_space<vmem>>, vector<128x1xf32>
      tpu.vector_store %arg11[%c0, %c0_5], %11 {strides = array<i32>} : memref<128x1xf32, #tpu.memory_space<vmem>>, vector<128x1xf32>,
      %cst_6 = arith.constant 0.000000e+00 : f32
      %13 = vector.broadcast %cst_6 : f32 to vector<128x1xf32>
      %c0_7 = arith.constant 0 : index
      %c0_8 = arith.constant 0 : index
      %14 = vector.load %arg12[%c0_7, %c0_8] : memref<128x1xf32, #tpu.memory_space<vmem>>, vector<128x1xf32>
      tpu.vector_store %arg12[%c0_7, %c0_8], %13 {strides = array<i32>} : memref<128x1xf32, #tpu.memory_space<vmem>>, vector<128x1xf32>,
      %c0_9 = arith.constant 0 : index
      %c0_10 = arith.constant 0 : index
      %15 = vector.load %arg3[%c0_9, %c0_10] : memref<128x32xf32, #tpu.memory_space<vmem>>, vector<128x32xf32>
      %c0_11 = arith.constant 0 : index
      %c0_12 = arith.constant 0 : index
      %16 = vector.load %arg2[%c0_11, %c0_12] : memref<32x1xf32, #tpu.memory_space<vmem>>, vector<32x1xf32>
      %cst_13 = arith.constant dense<0.000000e+00> : vector<128x1xf32>
      %17 = tpu.matmul %15, %16, %cst_13 {dimension_numbers = #tpu.dot_dimension_numbers<[1], [0], [0], [1], [0, 0, 1, 1], [], []>} : vector<128x32xf32>, vector<32x1xf32>, vector<128x1xf32> -> vector<128x1xf32>
      %c0_14 = arith.constant 0 : index
      %c0_15 = arith.constant 0 : index
      %18 = vector.load %arg4[%c0_14, %c0_15] : memref<128x1xf32, #tpu.memory_space<vmem>>, vector<128x1xf32>
      %19 = arith.addf %17, %18 : vector<128x1xf32>
      %20 = arith.negf %19 : vector<128x1xf32>
      %21 = math.exp %20 : vector<128x1xf32>
      %cst_16 = arith.constant 1.000000e+00 : f32
      %22 = vector.broadcast %cst_16 : f32 to vector<128x1xf32>
      %23 = arith.addf %22, %21 : vector<128x1xf32>
      %24 = arith.divf %22, %23 : vector<128x1xf32>
      %c0_17 = arith.constant 0 : index
      %c0_18 = arith.constant 0 : index
      %25 = vector.load %arg10[%c0_17, %c0_18] : memref<128x1xf32, #tpu.memory_space<vmem>>, vector<128x1xf32>
      tpu.vector_store %arg10[%c0_17, %c0_18], %24 {strides = array<i32>} : memref<128x1xf32, #tpu.memory_space<vmem>>, vector<128x1xf32>,
    } else {
    }
    %c0_i32_2 = arith.constant 0 : i32
    %5 = arith.cmpi eq, %arg0, %c0_i32_2 : i32
    %6 = arith.extui %5 : i1 to i32
    %c0_i32_3 = arith.constant 0 : i32
    %7 = arith.cmpi ne, %6, %c0_i32_3 : i32
    scf.if %7 {
      %c0 = arith.constant 0 : index
      %c0_5 = arith.constant 0 : index
      %11 = vector.load %arg5[%c0, %c0_5] : memref<128x256xf32, #tpu.memory_space<vmem>>, vector<128x256xf32>
      %c0_6 = arith.constant 0 : index
      %c0_7 = arith.constant 0 : index
      %12 = vector.load %arg10[%c0_6, %c0_7] : memref<128x1xf32, #tpu.memory_space<vmem>>, vector<128x1xf32>
      %13 = vector.broadcast %12 : vector<128x1xf32> to vector<128x256xf32>
      %14 = arith.mulf %11, %13 : vector<128x256xf32>
      %c256_i32 = arith.constant 256 : i32
      %15 = arith.muli %arg1, %c256_i32 : i32
      %16 = tpu.iota {dimensions = array<i32: 1>} : vector<1x256xi32>
      %17 = vector.broadcast %15 : i32 to vector<1x256xi32>
      %18 = arith.addi %17, %16 : vector<1x256xi32>
      %c784_i32 = arith.constant 784 : i32
      %19 = vector.broadcast %c784_i32 : i32 to vector<1x256xi32>
      %20 = arith.cmpi slt, %18, %19 : vector<1x256xi32>
      %cst = arith.constant 0.000000e+00 : f32
      %21 = vector.shape_cast %20 : vector<1x256xi1> to vector<1x256xi1>
      %22 = vector.broadcast %21 : vector<1x256xi1> to vector<128x256xi1>
      %23 = vector.broadcast %cst : f32 to vector<128x256xf32>
      %24 = arith.select %22, %14, %23 : vector<128x256xi1>, vector<128x256xf32>
      %c0_8 = arith.constant 0 : index
      %c0_9 = arith.constant 0 : index
      %25 = vector.load %arg6[%c0_8, %c0_9] : memref<128x128xf32, #tpu.memory_space<vmem>>, vector<128x128xf32>
      %cst_10 = arith.constant dense<0.000000e+00> : vector<128x256xf32>
      %26 = tpu.matmul %25, %24, %cst_10 {dimension_numbers = #tpu.dot_dimension_numbers<[1], [0], [0], [1], [0, 0, 1, 1], [], []>} : vector<128x128xf32>, vector<128x256xf32>, vector<128x256xf32> -> vector<128x256xf32>
      %27 = arith.index_cast %arg1 : i32 to index
      %c0_11 = arith.constant 0 : index
      %c0_12 = arith.constant 0 : index
      %28 = vector.load %arg13[%27, %c0_11, %c0_12] : memref<4x128x256xf32, #tpu.memory_space<vmem>>, vector<1x128x256xf32>
      %29 = vector.shape_cast %28 : vector<1x128x256xf32> to vector<128x256xf32>
      %30 = vector.shape_cast %26 : vector<128x256xf32> to vector<1x128x256xf32>
      tpu.vector_store %arg13[%27, %c0_11, %c0_12], %30 {strides = array<i32>} : memref<4x128x256xf32, #tpu.memory_space<vmem>>, vector<1x128x256xf32>,
      %c0_13 = arith.constant 0 : index
      %c0_14 = arith.constant 0 : index
      %31 = vector.load %arg11[%c0_13, %c0_14] : memref<128x1xf32, #tpu.memory_space<vmem>>, vector<128x1xf32>
      %cst_15 = arith.constant dense<0.000000e+00> : vector<128xf32>
      %32 = vector.multi_reduction <add>, %26, %cst_15 [1] : vector<128x256xf32> to vector<128xf32>
      %33 = vector.shape_cast %32 : vector<128xf32> to vector<128x1xf32>
      %34 = arith.addf %31, %33 : vector<128x1xf32>
      %c0_16 = arith.constant 0 : index
      %c0_17 = arith.constant 0 : index
      %35 = vector.load %arg11[%c0_16, %c0_17] : memref<128x1xf32, #tpu.memory_space<vmem>>, vector<128x1xf32>
      tpu.vector_store %arg11[%c0_16, %c0_17], %34 {strides = array<i32>} : memref<128x1xf32, #tpu.memory_space<vmem>>, vector<128x1xf32>,
      %c0_18 = arith.constant 0 : index
      %c0_19 = arith.constant 0 : index
      %36 = vector.load %arg12[%c0_18, %c0_19] : memref<128x1xf32, #tpu.memory_space<vmem>>, vector<128x1xf32>
      %37 = arith.mulf %26, %26 : vector<128x256xf32>
      %cst_20 = arith.constant dense<0.000000e+00> : vector<128xf32>
      %38 = vector.multi_reduction <add>, %37, %cst_20 [1] : vector<128x256xf32> to vector<128xf32>
      %39 = vector.shape_cast %38 : vector<128xf32> to vector<128x1xf32>
      %40 = arith.addf %36, %39 : vector<128x1xf32>
      %c0_21 = arith.constant 0 : index
      %c0_22 = arith.constant 0 : index
      %41 = vector.load %arg12[%c0_21, %c0_22] : memref<128x1xf32, #tpu.memory_space<vmem>>, vector<128x1xf32>
      tpu.vector_store %arg12[%c0_21, %c0_22], %40 {strides = array<i32>} : memref<128x1xf32, #tpu.memory_space<vmem>>, vector<128x1xf32>,
    } else {
    }
    %c1_i32 = arith.constant 1 : i32
    %8 = arith.cmpi eq, %arg0, %c1_i32 : i32
    %9 = arith.extui %8 : i1 to i32
    %c0_i32_4 = arith.constant 0 : i32
    %10 = arith.cmpi ne, %9, %c0_i32_4 : i32
    scf.if %10 {
      %c0 = arith.constant 0 : index
      %c0_5 = arith.constant 0 : index
      %11 = vector.load %arg11[%c0, %c0_5] : memref<128x1xf32, #tpu.memory_space<vmem>>, vector<128x1xf32>
      %cst = arith.constant 0.00127551018 : f32
      %12 = vector.broadcast %cst : f32 to vector<128x1xf32>
      %13 = arith.mulf %11, %12 : vector<128x1xf32>
      %c0_6 = arith.constant 0 : index
      %c0_7 = arith.constant 0 : index
      %14 = vector.load %arg12[%c0_6, %c0_7] : memref<128x1xf32, #tpu.memory_space<vmem>>, vector<128x1xf32>
      %cst_8 = arith.constant 0.00127551018 : f32
      %15 = vector.broadcast %cst_8 : f32 to vector<128x1xf32>
      %16 = arith.mulf %14, %15 : vector<128x1xf32>
      %17 = arith.mulf %13, %13 : vector<128x1xf32>
      %18 = arith.subf %16, %17 : vector<128x1xf32>
      %cst_9 = arith.constant 0.000000e+00 : f32
      %19 = vector.broadcast %cst_9 : f32 to vector<128x1xf32>
      %20 = arith.maximumf %18, %19 : vector<128x1xf32>
      %c0_10 = arith.constant 0 : index
      %c0_11 = arith.constant 0 : index
      %21 = vector.load %arg7[%c0_10, %c0_11] : memref<128x1xf32, #tpu.memory_space<vmem>>, vector<128x1xf32>
      %cst_12 = arith.constant 9.99999974E-6 : f32
      %22 = vector.broadcast %cst_12 : f32 to vector<128x1xf32>
      %23 = arith.addf %20, %22 : vector<128x1xf32>
      %24 = math.rsqrt %23 : vector<128x1xf32>
      %25 = arith.mulf %21, %24 : vector<128x1xf32>
      %c0_13 = arith.constant 0 : index
      %c0_14 = arith.constant 0 : index
      %26 = vector.load %arg8[%c0_13, %c0_14] : memref<128x1xf32, #tpu.memory_space<vmem>>, vector<128x1xf32>
      %27 = arith.mulf %13, %25 : vector<128x1xf32>
      %28 = arith.subf %26, %27 : vector<128x1xf32>
      %29 = arith.index_cast %arg1 : i32 to index
      %c0_15 = arith.constant 0 : index
      %c0_16 = arith.constant 0 : index
      %30 = vector.load %arg13[%29, %c0_15, %c0_16] : memref<4x128x256xf32, #tpu.memory_space<vmem>>, vector<1x128x256xf32>
      %31 = vector.shape_cast %30 : vector<1x128x256xf32> to vector<128x256xf32>
      %32 = vector.broadcast %25 : vector<128x1xf32> to vector<128x256xf32>
      %33 = arith.mulf %31, %32 : vector<128x256xf32>
      %34 = vector.broadcast %28 : vector<128x1xf32> to vector<128x256xf32>
      %35 = arith.addf %33, %34 : vector<128x256xf32>
      %c0_17 = arith.constant 0 : index
      %c0_18 = arith.constant 0 : index
      %36 = vector.load %arg9[%c0_17, %c0_18] : memref<128x256xf32, #tpu.memory_space<vmem>>, vector<128x256xf32>
      tpu.vector_store %arg9[%c0_17, %c0_18], %35 {strides = array<i32>} : memref<128x256xf32, #tpu.memory_space<vmem>>, vector<128x256xf32>,
    } else {
    }
    return
  }
  func.func @transform_0(%arg0: i32, %arg1: i32) -> (i32, i32) {
    %c0_i32 = arith.constant 0 : i32
    %c0_i32_0 = arith.constant 0 : i32
    %c0_i32_1 = arith.constant 0 : i32
    return %c0_i32, %c0_i32_0 : i32, i32
  }
  func.func @transform_1(%arg0: i32, %arg1: i32) -> (i32, i32) {
    %c0_i32 = arith.constant 0 : i32
    %c0_i32_0 = arith.constant 0 : i32
    %c0_i32_1 = arith.constant 0 : i32
    return %c0_i32, %c0_i32_0 : i32, i32
  }
  func.func @transform_2(%arg0: i32, %arg1: i32) -> (i32, i32) {
    %c0_i32 = arith.constant 0 : i32
    %c0_i32_0 = arith.constant 0 : i32
    %c0_i32_1 = arith.constant 0 : i32
    return %c0_i32, %c0_i32_0 : i32, i32
  }
  func.func @transform_3(%arg0: i32, %arg1: i32) -> (i32, i32) {
    %c0_i32 = arith.constant 0 : i32
    %0 = arith.cmpi eq, %arg0, %c0_i32 : i32
    %c3_i32 = arith.constant 3 : i32
    %1 = arith.select %0, %arg1, %c3_i32 : i32
    %c0_i32_0 = arith.constant 0 : i32
    %c0_i32_1 = arith.constant 0 : i32
    return %c0_i32_0, %1 : i32, i32
  }
  func.func @transform_4(%arg0: i32, %arg1: i32) -> (i32, i32) {
    %c0_i32 = arith.constant 0 : i32
    %c0_i32_0 = arith.constant 0 : i32
    %c0_i32_1 = arith.constant 0 : i32
    return %c0_i32, %c0_i32_0 : i32, i32
  }
  func.func @transform_5(%arg0: i32, %arg1: i32) -> (i32, i32) {
    %c0_i32 = arith.constant 0 : i32
    %c0_i32_0 = arith.constant 0 : i32
    %c0_i32_1 = arith.constant 0 : i32
    return %c0_i32, %c0_i32_0 : i32, i32
  }
  func.func @transform_6(%arg0: i32, %arg1: i32) -> (i32, i32) {
    %c0_i32 = arith.constant 0 : i32
    %c0_i32_0 = arith.constant 0 : i32
    %c0_i32_1 = arith.constant 0 : i32
    return %c0_i32, %c0_i32_0 : i32, i32
  }
  func.func @transform_7(%arg0: i32, %arg1: i32) -> (i32, i32) {
    %c0_i32 = arith.constant 0 : i32
    %0 = arith.cmpi eq, %arg0, %c0_i32 : i32
    %c0_i32_0 = arith.constant 0 : i32
    %1 = arith.select %0, %c0_i32_0, %arg1 : i32
    %c0_i32_1 = arith.constant 0 : i32
    %c0_i32_2 = arith.constant 0 : i32
    return %c0_i32_1, %1 : i32, i32
  }
}

</mosaic_0001>

<bundles_post_ra>
// kernel: module_forward.1
= control target key start
LH: loop header
LB: loop body
LE: loop exit
PB: predicated region body
PF: predicated region fallthrough
CT: control target
= control target key end

     0   :  { %s6673_s0 = inlined_call_operand.vmem [shape: f32[32,1], index: 0, kind: input, shape index: {}]   ;;  %s6674_s1 = inlined_call_operand.vmem [shape: f32[128,32], index: 1, kind: input, shape index: {}]   ;;  %s6675_s2 = inlined_call_operand.vmem [shape: f32[128,1], index: 2, kind: input, shape index: {}]   ;;  %s6676_s3 = inlined_call_operand.vmem [shape: f32[128,784], index: 3, kind: input, shape index: {}]   ;;  %s6677_s4 = inlined_call_operand.vmem [shape: f32[128,128], index: 4, kind: input, shape index: {}]   ;;  %s6678_s5 = inlined_call_operand.vmem [shape: f32[128,1], index: 5, kind: input, shape index: {}]   ;;  %s6679_s6 = inlined_call_operand.vmem [shape: f32[128,1], index: 6, kind: input, shape index: {}]   ;;  %s6680_s7 = inlined_call_operand.vmem [shape: f32[128,784], index: 7, kind: output, shape index: {}]  }
   0x1   :  { %6688 = sst [smem:[#allocation16_spill]] %s6676_s3 }
   0x2   :  { %6689 = sst [smem:[#allocation17_spill]] %s6680_s7 }
   0x3   :  { %s4136_s24 = smov 0   ;;  %s4138_s25 = smov 0  }
   0x4   :  { %s4140_s26 = smov 0   ;;  %s4142_s27 = smov 0  }
   0x5   :  { %s4144_s28 = smov 0   ;;  %s4146_s29 = smov 0  }
   0x6   :  { %s4148_s30 = smov 0   ;;  %s4150_s8 = smov 0  }
   0x7   :  { %s4152_s9 = smov 0  }
   0x8 LB: > { %6690 = sst [smem:[#allocation8_spill]] %s3931_s25  ;;  %s3130_s10 = sadd.s32 4294967295, %s3959_s9   ;;  %s3959_s9 = sphi %s4152_s9, %s17_s9   ;;  %s3955_s8 = sphi %s4150_s8, %s6794_s8   ;;  %s3951_s30 = sphi %s4148_s30, %s6793_s30   ;;  %s3947_s29 = sphi %s4146_s29, %s6792_s29   ;;  %s3943_s28 = sphi %s4144_s28, %s6791_s28   ;;  %s3939_s27 = sphi %s4142_s27, %s6790_s27   ;;  %s3935_s26 = sphi %s4140_s26, %s6789_s26   ;;  %s3931_s25 = sphi %s4138_s25, %s6788_s25   ;;  %s3927_s24 = sphi %s4136_s24, %s6787_s24  }
   0x9   : > { %6691 = sst [smem:[#allocation9_spill]] %s3939_s27  ;;  %s26_s11 = sadd.s32 1, %s3951_s30 }
   0xa   : > { %6692 = sst [smem:[#allocation10_spill]] %s3951_s30  ;;  %p27_p0 = scmp.ge.s32.totalorder %s26_s11, 4 }
   0xb   : > { %6693 = sst [smem:[#allocation11_spill]] %s3955_s8  ;;  %s29_s12 = sadd.s32 1, %s3955_s8 }
   0xc   : > { %p96_p1 = scmp.eq.s32.totalorder %s3955_s8, 0  ;;  %s103_s13 = sadd.s32 1, %s3939_s27 }
   0xd   : > { %s6796_s11 = smov (%p27_p0, %s26_s11), 0  ;;  %s6798_s12 = smov (!%p27_p0, %s29_s12), %s3955_s8 }
   0xe   : > { %6694 = sst [smem:[#allocation12_spill]] %s6796_s11  ;;  %p31_p2 = scmp.ge.s32.totalorder %s6798_s12, 2 }
   0xf   : > { %s4192_s14 = scalar_select %p96_p1, %s3951_s30, 3 }
  0x10   : > { %p110_p3 = scmp.ne.s32.totalorder %s3939_s27, %s3935_s26  ;;  %p111_p4 = scmp.eq.s32.totalorder %s3959_s9, 0 }
  0x11   : > { %s196_s15 = sadd.s32 1, %s3931_s25  ;;  %s6800_s12 = smov (%p31_p2, %s6798_s12), 0 }
  0x12   : > { %6695 = sst [smem:[#allocation13_spill]] %s6800_s12  ;;  %p4200_p5 = por %p111_p4, %p110_p3 }
  0x13   : > { %p206_p6 = scmp.ne.s32.totalorder %s3931_s25, %s3927_s24  ;;  %p98_p7 = scmp.eq.s32.totalorder %s6800_s12, 0 }
  0x14   : > { %p207_p8 = scmp.eq.s32.totalorder %s3130_s10, 7  ;;  %p3133_p12 = scmp.ge.s32.totalorder %s3959_s9, 8 }
  0x15   : > { %s190_s17 = scalar_select %p96_p1, 0, %s3951_s30 }
  0x16   : > { %s99_s18 = scalar_select %p98_p7, %s6796_s11, 3 }
  0x17   : > { %s192_s19 = scalar_select %p98_p7, 0, %s6796_s11 }
  0x18   : > { %s100_s20 = ssub.s32 %s4192_s14, %s99_s18  ;;  %p4213_p9 = por %p207_p8, %p206_p6 }
  0x19   : > { %p101_p10 = scmp.eq.s32.totalorder %s100_s20, 0  ;;  %s193_s22 = ssub.s32 %s190_s17, %s192_s19 }
  0x1a   : > { %p194_p11 = scmp.eq.s32.totalorder %s193_s22, 0  ;;  %247 = sbr.rel (%p3133_p12) target bundleno = 232 (0xe8), region = 40 }
  0x1b   : > { %s4218_s23 = scalar_select %p101_p10, %s3939_s27, %s103_s13  }
  0x1c   : > { %s4221_s7 = scalar_select %p194_p11, %s3931_s25, %s196_s15  }
  0x1d   : > { %6698 = sst [smem:[#allocation14_spill]] %s4218_s23 }
  0x1e   : > { %6699 = sst [smem:[#allocation15_spill]] %s4221_s7 }
  0x1f   : > { %250 = sbr.rel (!%p4200_p5) target bundleno = 232 (0xe8), region = 44  ;;  %s252_s10 = sand.u32 (%p4200_p5), 1, %s3939_s27  }
  0x20   : > { %s3135_s18 = sshll.u32 (%p4200_p5), %s4192_s14, 1  ;;  %s3134_s12 = sshll.u32 (%p4200_p5), %s252_s10, 8 }
  0x21   : > { %s258_s11 = ssub.s32 (%p4200_p5), 7, %s3135_s18  ;;  %s3268_s17 = sshll.u32 (%p4200_p5), %s4192_s14, 4 }
  0x22   : > { %p259_p13 = scmp.lt.s32.totalorder (%p4200_p5), %s258_s11, 2  ;;  %s6700_s3 = sld [smem:[#allocation16_spill]] (%p4200_p5) }
  0x23   : > { %s4236_s16 = scalar_lea.vmem (%p4200_p5), [#allocation6], %s3134_s12  }
  0x24   : > { %s6802_s11 = smov (!%p259_p13, %s258_s11), 2 }
  0x25   : > { %s3136_s20 = sshll.u32 %s6802_s11, 7  ;;  %s4234_s22 = sshll.u32 %s6802_s11, 3 }
  0x26   : > { %p3140_p0 = scmp.eq.s32.totalorder %s3136_s20, 0 }
  0x27   : > { %p269_p1 = scmp.lt.u32.totalorder (!%p3140_p0), %s4234_s22, 8 }
  0x28   : > { %s4232_s15 = scalar_lea.vmem %s6700_s3, %s3268_s17   ;;  %268 = sbr.rel (%p3140_p0) target bundleno = 232 (0xe8), region = 48 }
  0x2d   : > { %272 = sbr.rel (%p269_p1) target bundleno = 208 (0xd0), region = 52  ;;  %s4240_s10 = sand.u32 (!%p269_p1), 7, %s4234_s22  }
  0x2e   : > { %p319_p2 = scmp.eq.s32.totalorder (!%p269_p1), %s4240_s10, 0  ;;  %p3141_p3 = scmp.ne.s32.totalorder (!%p269_p1), %s4240_s10, 0 }
  0x32   : > { %322 = sbr.rel (%p3141_p3) target bundleno = 119 (0x77), region = 67  ;;  %s6683_s14 = sshrl.u32 (!%p3141_p3), %s4234_s22, 3 }
  0x33   : > { %s4247_s11 = sshrl.u32 (!%p3141_p3), %s6683_s14, 1 }
  0x34   : > { %p3142_p4 = scmp.le.s32.totalorder (!%p3141_p3), %s4247_s11, 0 }
  0x37   : > { %2991 = sbr.rel (%p3142_p4) target bundleno = 93 (0x5d), region = 259  ;;  %s6701_s12 = smov (!%p3142_p4), %s4236_s16 }
  0x38   : > { %s6702_s18 = smov (!%p3142_p4), %s4232_s15  ;;  %s4256_s17 = smov (!%p3142_p4), 0  }
  0x39   : > { %s4258_s13 = smov (!%p3142_p4), 0  }
  0x3c LB: >> { %v334_v0 = vld [vmem:[%s3967_s18] sm:$0xff]  ;;  %v336_v1 = vld [vmem:[%s3967_s18 + $0x8] sm:$0xff]  ;;  %v338_v2 = vld [vmem:[%s3967_s18 + $0x38] sm:$0xff]  ;;  %s398_s19 = sadd.s32 1, %s3971_s17  ;;  %s328_s13 = sadd.s32 1, %s3975_s13   ;;  %s3975_s13 = sphi %s4258_s13, %s328_s13   ;;  %s3971_s17 = sphi %s4256_s17, %s6705_s17   ;;  %s3967_s18 = sphi %s6702_s18, %s6704_s18   ;;  %s3963_s12 = sphi %s6701_s12, %s6703_s12  }
  0x3d   : >> { %335 = vst [vmem:[%s3963_s12] sm:$0xff] %v334_v0  ;;  %v340_v3 = vld [vmem:[%s3967_s18 + $0x40] sm:$0xff]  ;;  %p399_p5 = scmp.ge.s32.totalorder %s398_s19, %s4247_s11  ;;  %v342_v4 = vld [vmem:[%s3967_s18 + $0x70] sm:$0xff]  ;;  %v344_v5 = vld [vmem:[%s3967_s18 + $0x78] sm:$0xff]  ;;  %p327_p6 = scmp.ge.s32.totalorder %s328_s13, %s4247_s11 }
  0x3e   : >> { %337 = vst [vmem:[%s3963_s12 + $0x8] sm:$0xff] %v336_v1  ;;  %v346_v6 = vld [vmem:[%s3967_s18 + $0xa8] sm:$0xff]  ;;  %v348_v7 = vld [vmem:[%s3967_s18 + $0xb0] sm:$0xff]  ;;  %v350_v8 = vld [vmem:[%s3967_s18 + $0xe0] sm:$0xff] }
  0x3f   : >> { %339 = vst [vmem:[%s3963_s12 + $0x10] sm:$0xff] %v338_v2  ;;  %s6804_s19 = smov (%p399_p5, %s398_s19), 0  ;;  %v352_v9 = vld [vmem:[%s3967_s18 + $0xe8] sm:$0xff]  ;;  %v354_v10 = vld [vmem:[%s3967_s18 + $0x118] sm:$0xff]  ;;  %v356_v11 = vld [vmem:[%s3967_s18 + $0x120] sm:$0xff] }
  0x40   : >> { %341 = vst [vmem:[%s3963_s12 + $0x18] sm:$0xff] %v340_v3  ;;  %s3143_s20 = sshll.u32 %s6804_s19, 4  ;;  %v358_v12 = vld [vmem:[%s3967_s18 + $0x150] sm:$0xff]  ;;  %v360_v13 = vld [vmem:[%s3967_s18 + $0x158] sm:$0xff]  ;;  %v362_v14 = vld [vmem:[%s3967_s18 + $0x188] sm:$0xff] }
  0x41   : >> { %343 = vst [vmem:[%s3963_s12 + $0x20] sm:$0xff] %v342_v4  ;;  %s4290_s17 = scalar_lea.vmem %s4232_s15, %s3143_s20   ;;  %s4293_s14 = scalar_lea.vmem %s4236_s16, %s3143_s20 [#allocation6]   ;;  %v364_v15 = vld [vmem:[%s3967_s18 + $0x190] sm:$0xff]  ;;  %v366_v16 = vld [vmem:[%s3967_s18 + $0x1c0] sm:$0xff]  ;;  %v368_v17 = vld [vmem:[%s3967_s18 + $0x1c8] sm:$0xff] }
  0x42   : >> { %345 = vst [vmem:[%s3963_s12 + $0x28] sm:$0xff] %v344_v5  ;;  %v370_v18 = vld [vmem:[%s3967_s18 + $0x1f8] sm:$0xff]  ;;  %v372_v19 = vld [vmem:[%s3967_s18 + $0x200] sm:$0xff]  ;;  %v374_v20 = vld [vmem:[%s3967_s18 + $0x230] sm:$0xff] }
  0x43   : >> { %347 = vst [vmem:[%s3963_s12 + $0x30] sm:$0xff] %v346_v6  ;;  %v376_v21 = vld [vmem:[%s3967_s18 + $0x238] sm:$0xff]  ;;  %v378_v22 = vld [vmem:[%s3967_s18 + $0x268] sm:$0xff]  ;;  %v380_v23 = vld [vmem:[%s3967_s18 + $0x270] sm:$0xff] }
  0x44   : >> { %349 = vst [vmem:[%s3963_s12 + $0x38] sm:$0xff] %v348_v7  ;;  %v382_v24 = vld [vmem:[%s3967_s18 + $0x2a0] sm:$0xff]  ;;  %v384_v25 = vld [vmem:[%s3967_s18 + $0x2a8] sm:$0xff]  ;;  %v386_v26 = vld [vmem:[%s3967_s18 + $0x2d8] sm:$0xff] }
  0x45   : >> { %351 = vst [vmem:[%s3963_s12 + $0x40] sm:$0xff] %v350_v8  ;;  %v388_v27 = vld [vmem:[%s3967_s18 + $0x2e0] sm:$0xff]  ;;  %v390_v28 = vld [vmem:[%s3967_s18 + $0x310] sm:$0xff]  ;;  %v392_v29 = vld [vmem:[%s3967_s18 + $0x318] sm:$0xff] }
  0x46   : >> { %353 = vst [vmem:[%s3963_s12 + $0x48] sm:$0xff] %v352_v9  ;;  %v394_v30 = vld [vmem:[%s3967_s18 + $0x348] sm:$0xff]  ;;  %v396_v31 = vld [vmem:[%s3967_s18 + $0x350] sm:$0xff]  ;;  %s6704_s18 = smov %s4290_s17  ;;  %s6705_s17 = smov %s6804_s19 }
  0x47   : >> { %355 = vst [vmem:[%s3963_s12 + $0x50] sm:$0xff] %v354_v10 }
  0x48   : >> { %357 = vst [vmem:[%s3963_s12 + $0x58] sm:$0xff] %v356_v11 }
  0x49   : >> { %359 = vst [vmem:[%s3963_s12 + $0x60] sm:$0xff] %v358_v12 }
  0x4a   : >> { %361 = vst [vmem:[%s3963_s12 + $0x68] sm:$0xff] %v360_v13 }
  0x4b   : >> { %363 = vst [vmem:[%s3963_s12 + $0x70] sm:$0xff] %v362_v14 }
  0x4c   : >> { %365 = vst [vmem:[%s3963_s12 + $0x78] sm:$0xff] %v364_v15 }
  0x4d   : >> { %367 = vst [vmem:[%s3963_s12 + $0x80] sm:$0xff] %v366_v16 }
  0x4e   : >> { %369 = vst [vmem:[%s3963_s12 + $0x88] sm:$0xff] %v368_v17 }
  0x4f   : >> { %371 = vst [vmem:[%s3963_s12 + $0x90] sm:$0xff] %v370_v18 }
  0x50   : >> { %373 = vst [vmem:[%s3963_s12 + $0x98] sm:$0xff] %v372_v19 }
  0x51   : >> { %375 = vst [vmem:[%s3963_s12 + $0xa0] sm:$0xff] %v374_v20 }
  0x52   : >> { %377 = vst [vmem:[%s3963_s12 + $0xa8] sm:$0xff] %v376_v21 }
  0x53   : >> { %379 = vst [vmem:[%s3963_s12 + $0xb0] sm:$0xff] %v378_v22 }
  0x54   : >> { %381 = vst [vmem:[%s3963_s12 + $0xb8] sm:$0xff] %v380_v23 }
  0x55   : >> { %383 = vst [vmem:[%s3963_s12 + $0xc0] sm:$0xff] %v382_v24 }
  0x56   : >> { %385 = vst [vmem:[%s3963_s12 + $0xc8] sm:$0xff] %v384_v25 }
  0x57   : >> { %387 = vst [vmem:[%s3963_s12 + $0xd0] sm:$0xff] %v386_v26 }
  0x58   : >> { %389 = vst [vmem:[%s3963_s12 + $0xd8] sm:$0xff] %v388_v27  ;;  %330 = sbr.rel (!%p327_p6) target bundleno = 60 (0x3c), region = 265 }
  0x59   : >> { %391 = vst [vmem:[%s3963_s12 + $0xe0] sm:$0xff] %v390_v28 }
  0x5a   : >> { %393 = vst [vmem:[%s3963_s12 + $0xe8] sm:$0xff] %v392_v29 }
  0x5b   : >> { %395 = vst [vmem:[%s3963_s12 + $0xf0] sm:$0xff] %v394_v30 }
  0x5c   : >> { %397 = vst [vmem:[%s3963_s12 + $0xf8] sm:$0xff] %v396_v31  ;;  %s6703_s12 = smov %s4293_s14 }
  0x5d PF: > { %s6706_s20 = sshrl.u32 %s4234_s22, 3  ;;  %s3269_s8 = sshll.u32 %s4247_s11, 4 }
  0x5e   : > { %s4359_s3 = sand.u32 1, %s6706_s20   ;;  %s4363_s30 = scalar_lea.vmem %s4232_s15, %s3269_s8  }
  0x5f   : > { %s4366_s23 = scalar_lea.vmem %s4236_s16, %s3269_s8 [#allocation6]   ;;  %p3148_p7 = scmp.le.s32.totalorder %s4359_s3, 0 }
  0x60   : > { %s6707_s14 = smov (!%p3148_p7), %s4366_s23  ;;  %s6708_s12 = smov (!%p3148_p7), %s4363_s30 }
  0x61   : > { %3005 = sbr.rel (%p3148_p7) target bundleno = 119 (0x77), region = 270  ;;  %s4375_s18 = smov (!%p3148_p7), 0  }
  0x62   : > { %s4377_s13 = smov (!%p3148_p7), 0  }
  0x66 LB: >> { %v421_v32 = vld [vmem:[%s3983_s12] sm:$0xff]  ;;  %v423_v33 = vld [vmem:[%s3983_s12 + $0x38] sm:$0xff]  ;;  %v425_v34 = vld [vmem:[%s3983_s12 + $0x70] sm:$0xff]  ;;  %s453_s8 = sadd.s32 1, %s3987_s18  ;;  %s415_s13 = sadd.s32 1, %s3991_s13   ;;  %s3991_s13 = sphi %s4377_s13, %s415_s13   ;;  %s3987_s18 = sphi %s4375_s18, %s6711_s18   ;;  %s3983_s12 = sphi %s6708_s12, %s6710_s12   ;;  %s3979_s14 = sphi %s6707_s14, %s6709_s14  }
  0x67   : >> { %422 = vst [vmem:[%s3979_s14] sm:$0xff] %v421_v32  ;;  %v427_v35 = vld [vmem:[%s3983_s12 + $0xa8] sm:$0xff]  ;;  %p454_p8 = scmp.ge.s32.totalorder %s453_s8, %s4359_s3  ;;  %v429_v36 = vld [vmem:[%s3983_s12 + $0xe0] sm:$0xff]  ;;  %v431_v37 = vld [vmem:[%s3983_s12 + $0x118] sm:$0xff]  ;;  %p414_p10 = scmp.ge.s32.totalorder %s415_s13, %s4359_s3 }
  0x68   : >> { %424 = vst [vmem:[%s3979_s14 + $0x10] sm:$0xff] %v423_v33  ;;  %v433_v38 = vld [vmem:[%s3983_s12 + $0x150] sm:$0xff]  ;;  %v435_v39 = vld [vmem:[%s3983_s12 + $0x188] sm:$0xff]  ;;  %v437_v40 = vld [vmem:[%s3983_s12 + $0x1c0] sm:$0xff] }
  0x69   : >> { %426 = vst [vmem:[%s3979_s14 + $0x20] sm:$0xff] %v425_v34  ;;  %s6806_s8 = smov (%p454_p8, %s453_s8), 0  ;;  %v439_v41 = vld [vmem:[%s3983_s12 + $0x1f8] sm:$0xff]  ;;  %v441_v42 = vld [vmem:[%s3983_s12 + $0x230] sm:$0xff]  ;;  %v443_v43 = vld [vmem:[%s3983_s12 + $0x268] sm:$0xff] }
  0x6a   : >> { %428 = vst [vmem:[%s3979_s14 + $0x30] sm:$0xff] %v427_v35  ;;  %s3149_s11 = sshll.u32 %s6806_s8, 3  ;;  %v445_v44 = vld [vmem:[%s3983_s12 + $0x2a0] sm:$0xff]  ;;  %v447_v45 = vld [vmem:[%s3983_s12 + $0x2d8] sm:$0xff]  ;;  %v449_v46 = vld [vmem:[%s3983_s12 + $0x310] sm:$0xff]  ;;  %s6711_s18 = smov %s6806_s8 }
  0x6b   : >> { %430 = vst [vmem:[%s3979_s14 + $0x40] sm:$0xff] %v429_v36  ;;  %s458_s19 = scalar_lea.vmem %s4363_s30, %s3149_s11   ;;  %s459_s17 = scalar_lea.vmem %s4366_s23, %s3149_s11 [#allocation6]   ;;  %v451_v47 = vld [vmem:[%s3983_s12 + $0x348] sm:$0xff] }
  0x6c   : >> { %432 = vst [vmem:[%s3979_s14 + $0x50] sm:$0xff] %v431_v37  ;;  %s6710_s12 = smov %s458_s19 }
  0x6d   : >> { %434 = vst [vmem:[%s3979_s14 + $0x60] sm:$0xff] %v433_v38 }
  0x6e   : >> { %436 = vst [vmem:[%s3979_s14 + $0x70] sm:$0xff] %v435_v39 }
  0x6f   : >> { %438 = vst [vmem:[%s3979_s14 + $0x80] sm:$0xff] %v437_v40 }
  0x70   : >> { %440 = vst [vmem:[%s3979_s14 + $0x90] sm:$0xff] %v439_v41 }
  0x71   : >> { %442 = vst [vmem:[%s3979_s14 + $0xa0] sm:$0xff] %v441_v42 }
  0x72   : >> { %444 = vst [vmem:[%s3979_s14 + $0xb0] sm:$0xff] %v443_v43  ;;  %417 = sbr.rel (!%p414_p10) target bundleno = 102 (0x66), region = 276 }
  0x73   : >> { %446 = vst [vmem:[%s3979_s14 + $0xc0] sm:$0xff] %v445_v44 }
  0x74   : >> { %448 = vst [vmem:[%s3979_s14 + $0xd0] sm:$0xff] %v447_v45 }
  0x75   : >> { %450 = vst [vmem:[%s3979_s14 + $0xe0] sm:$0xff] %v449_v46 }
  0x76   : >> { %452 = vst [vmem:[%s3979_s14 + $0xf0] sm:$0xff] %v451_v47  ;;  %s6709_s14 = smov %s459_s17 }
  0x77 PF: > { %462 = sbr.rel (%p319_p2) target bundleno = 208 (0xd0), region = 85  ;;  %s464_s20 = ssub.s32 (!%p319_p2), %s4234_s22, %s4240_s10 }
  0x78   : > { %s468_s11 = sshrl.u32 (!%p319_p2), %s4234_s22, 3  ;;  %s4444_s17 = scalar_lea.vmem (!%p319_p2), %s4232_s15, %s464_s20 }
  0x79   : > { %s4447_s19 = scalar_lea.vmem (!%p319_p2), %s4236_s16, %s464_s20 [#allocation6]  ;;  %s4451_s13 = sshrl.u32 (!%p319_p2), %s468_s11, 1 }
  0x7a   : > { %p3151_p11 = scmp.le.s32.totalorder (!%p319_p2), %s4451_s13, 0 }
  0x7c   : > { %3019 = sbr.rel (%p3151_p11) target bundleno = 162 (0xa2), region = 281  ;;  %s6712_s3 = smov (!%p3151_p11), %s4236_s16 }
  0x7d   : > { %s6713_s30 = smov (!%p3151_p11), %s4232_s15  ;;  %s4460_s23 = smov (!%p3151_p11), 0  }
  0x7e   : > { %s4462_s14 = smov (!%p3151_p11), 0  }
  0x81 LB: >> { %v479_v48 = vld [vmem:[%s3999_s30] sm:$0xff]  ;;  %v481_v49 = vld [vmem:[%s3999_s30 + $0x8] sm:$0xff]  ;;  %v483_v50 = vld [vmem:[%s3999_s30 + $0x38] sm:$0xff]  ;;  %s543_s12 = sadd.s32 1, %s4003_s23  ;;  %s473_s14 = sadd.s32 1, %s4007_s14   ;;  %s4007_s14 = sphi %s4462_s14, %s473_s14   ;;  %s4003_s23 = sphi %s4460_s23, %s6716_s23   ;;  %s3999_s30 = sphi %s6713_s30, %s6715_s30   ;;  %s3995_s3 = sphi %s6712_s3, %s6714_s3  }
  0x82   : >> { %480 = vst [vmem:[%s3995_s3] sm:$0xff] %v479_v48  ;;  %v485_v51 = vld [vmem:[%s3999_s30 + $0x40] sm:$0xff]  ;;  %p544_p12 = scmp.ge.s32.totalorder %s543_s12, %s4451_s13  ;;  %v487_v52 = vld [vmem:[%s3999_s30 + $0x70] sm:$0xff]  ;;  %v489_v53 = vld [vmem:[%s3999_s30 + $0x78] sm:$0xff]  ;;  %p472_p13 = scmp.ge.s32.totalorder %s473_s14, %s4451_s13 }
  0x83   : >> { %482 = vst [vmem:[%s3995_s3 + $0x8] sm:$0xff] %v481_v49  ;;  %v491_v54 = vld [vmem:[%s3999_s30 + $0xa8] sm:$0xff]  ;;  %v493_v55 = vld [vmem:[%s3999_s30 + $0xb0] sm:$0xff]  ;;  %v495_v56 = vld [vmem:[%s3999_s30 + $0xe0] sm:$0xff] }
  0x84   : >> { %484 = vst [vmem:[%s3995_s3 + $0x10] sm:$0xff] %v483_v50  ;;  %s6808_s12 = smov (%p544_p12, %s543_s12), 0  ;;  %v497_v57 = vld [vmem:[%s3999_s30 + $0xe8] sm:$0xff]  ;;  %v499_v58 = vld [vmem:[%s3999_s30 + $0x118] sm:$0xff]  ;;  %v501_v59 = vld [vmem:[%s3999_s30 + $0x120] sm:$0xff] }
  0x85   : >> { %486 = vst [vmem:[%s3995_s3 + $0x18] sm:$0xff] %v485_v51  ;;  %s3152_s18 = sshll.u32 %s6808_s12, 4  ;;  %v503_v60 = vld [vmem:[%s3999_s30 + $0x150] sm:$0xff]  ;;  %v505_v61 = vld [vmem:[%s3999_s30 + $0x158] sm:$0xff]  ;;  %v507_v62 = vld [vmem:[%s3999_s30 + $0x188] sm:$0xff]  ;;  %s6716_s23 = smov %s6808_s12 }
  0x86   : >> { %488 = vst [vmem:[%s3995_s3 + $0x20] sm:$0xff] %v487_v52  ;;  %s4494_s8 = scalar_lea.vmem %s4232_s15, %s3152_s18   ;;  %s4497_s20 = scalar_lea.vmem %s4236_s16, %s3152_s18 [#allocation6]   ;;  %v509_v63 = vld [vmem:[%s3999_s30 + $0x190] sm:$0xff]  ;;  %v511_v0 = vld [vmem:[%s3999_s30 + $0x1c0] sm:$0xff]  ;;  %v513_v1 = vld [vmem:[%s3999_s30 + $0x1c8] sm:$0xff] }
  0x87   : >> { %490 = vst [vmem:[%s3995_s3 + $0x28] sm:$0xff] %v489_v53  ;;  %v515_v2 = vld [vmem:[%s3999_s30 + $0x1f8] sm:$0xff]  ;;  %v517_v3 = vld [vmem:[%s3999_s30 + $0x200] sm:$0xff]  ;;  %v519_v4 = vld [vmem:[%s3999_s30 + $0x230] sm:$0xff] }
  0x88   : >> { %492 = vst [vmem:[%s3995_s3 + $0x30] sm:$0xff] %v491_v54  ;;  %v521_v5 = vld [vmem:[%s3999_s30 + $0x238] sm:$0xff]  ;;  %v523_v6 = vld [vmem:[%s3999_s30 + $0x268] sm:$0xff]  ;;  %v525_v7 = vld [vmem:[%s3999_s30 + $0x270] sm:$0xff] }
  0x89   : >> { %494 = vst [vmem:[%s3995_s3 + $0x38] sm:$0xff] %v493_v55  ;;  %v527_v8 = vld [vmem:[%s3999_s30 + $0x2a0] sm:$0xff]  ;;  %v529_v9 = vld [vmem:[%s3999_s30 + $0x2a8] sm:$0xff]  ;;  %v531_v10 = vld [vmem:[%s3999_s30 + $0x2d8] sm:$0xff] }
  0x8a   : >> { %496 = vst [vmem:[%s3995_s3 + $0x40] sm:$0xff] %v495_v56  ;;  %v533_v11 = vld [vmem:[%s3999_s30 + $0x2e0] sm:$0xff]  ;;  %v535_v12 = vld [vmem:[%s3999_s30 + $0x310] sm:$0xff]  ;;  %v537_v13 = vld [vmem:[%s3999_s30 + $0x318] sm:$0xff] }
  0x8b   : >> { %498 = vst [vmem:[%s3995_s3 + $0x48] sm:$0xff] %v497_v57  ;;  %v539_v14 = vld [vmem:[%s3999_s30 + $0x348] sm:$0xff]  ;;  %v541_v15 = vld [vmem:[%s3999_s30 + $0x350] sm:$0xff]  ;;  %s6715_s30 = smov %s4494_s8 }
  0x8c   : >> { %500 = vst [vmem:[%s3995_s3 + $0x50] sm:$0xff] %v499_v58 }
  0x8d   : >> { %502 = vst [vmem:[%s3995_s3 + $0x58] sm:$0xff] %v501_v59 }
  0x8e   : >> { %504 = vst [vmem:[%s3995_s3 + $0x60] sm:$0xff] %v503_v60 }
  0x8f   : >> { %506 = vst [vmem:[%s3995_s3 + $0x68] sm:$0xff] %v505_v61 }
  0x90   : >> { %508 = vst [vmem:[%s3995_s3 + $0x70] sm:$0xff] %v507_v62 }
  0x91   : >> { %510 = vst [vmem:[%s3995_s3 + $0x78] sm:$0xff] %v509_v63 }
  0x92   : >> { %512 = vst [vmem:[%s3995_s3 + $0x80] sm:$0xff] %v511_v0 }
  0x93   : >> { %514 = vst [vmem:[%s3995_s3 + $0x88] sm:$0xff] %v513_v1 }
  0x94   : >> { %516 = vst [vmem:[%s3995_s3 + $0x90] sm:$0xff] %v515_v2 }
  0x95   : >> { %518 = vst [vmem:[%s3995_s3 + $0x98] sm:$0xff] %v517_v3 }
  0x96   : >> { %520 = vst [vmem:[%s3995_s3 + $0xa0] sm:$0xff] %v519_v4 }
  0x97   : >> { %522 = vst [vmem:[%s3995_s3 + $0xa8] sm:$0xff] %v521_v5 }
  0x98   : >> { %524 = vst [vmem:[%s3995_s3 + $0xb0] sm:$0xff] %v523_v6 }
  0x99   : >> { %526 = vst [vmem:[%s3995_s3 + $0xb8] sm:$0xff] %v525_v7 }
  0x9a   : >> { %528 = vst [vmem:[%s3995_s3 + $0xc0] sm:$0xff] %v527_v8 }
  0x9b   : >> { %530 = vst [vmem:[%s3995_s3 + $0xc8] sm:$0xff] %v529_v9 }
  0x9c   : >> { %532 = vst [vmem:[%s3995_s3 + $0xd0] sm:$0xff] %v531_v10 }
  0x9d   : >> { %534 = vst [vmem:[%s3995_s3 + $0xd8] sm:$0xff] %v533_v11  ;;  %475 = sbr.rel (!%p472_p13) target bundleno = 129 (0x81), region = 287 }
  0x9e   : >> { %536 = vst [vmem:[%s3995_s3 + $0xe0] sm:$0xff] %v535_v12 }
  0x9f   : >> { %538 = vst [vmem:[%s3995_s3 + $0xe8] sm:$0xff] %v537_v13 }
  0xa0   : >> { %540 = vst [vmem:[%s3995_s3 + $0xf0] sm:$0xff] %v539_v14 }
  0xa1   : >> { %542 = vst [vmem:[%s3995_s3 + $0xf8] sm:$0xff] %v541_v15  ;;  %s6714_s3 = smov %s4497_s20 }
  0xa2 PF: > { %s4563_s18 = sand.u32 1, %s468_s11   ;;  %s3271_s27 = sshll.u32 %s4451_s13, 4 }
  0xa3   : > { %s4567_s7 = scalar_lea.vmem %s4232_s15, %s3271_s27   ;;  %s4570_s25 = scalar_lea.vmem %s4236_s16, %s3271_s27 [#allocation6]  }
  0xa4   : > { %p3157_p0 = scmp.le.s32.totalorder %s4563_s18, 0 }
  0xa5   : > { %s6717_s14 = smov (!%p3157_p0), %s4570_s25  ;;  %s6718_s3 = smov (!%p3157_p0), %s4567_s7 }
  0xa6   : > { %3033 = sbr.rel (%p3157_p0) target bundleno = 188 (0xbc), region = 292  ;;  %s4579_s30 = smov (!%p3157_p0), 0  }
  0xa7   : > { %s4581_s23 = smov (!%p3157_p0), 0  }
  0xab LB: >> { %v566_v16 = vld [vmem:[%s4015_s3] sm:$0xff]  ;;  %v568_v17 = vld [vmem:[%s4015_s3 + $0x38] sm:$0xff]  ;;  %v570_v18 = vld [vmem:[%s4015_s3 + $0x70] sm:$0xff]  ;;  %s598_s27 = sadd.s32 1, %s4019_s30  ;;  %s560_s23 = sadd.s32 1, %s4023_s23   ;;  %s4023_s23 = sphi %s4581_s23, %s560_s23   ;;  %s4019_s30 = sphi %s4579_s30, %s6721_s30   ;;  %s4015_s3 = sphi %s6718_s3, %s6720_s3   ;;  %s4011_s14 = sphi %s6717_s14, %s6719_s14  }
  0xac   : >> { %567 = vst [vmem:[%s4011_s14] sm:$0xff] %v566_v16  ;;  %v572_v19 = vld [vmem:[%s4015_s3 + $0xa8] sm:$0xff]  ;;  %p599_p1 = scmp.ge.s32.totalorder %s598_s27, %s4563_s18  ;;  %v574_v20 = vld [vmem:[%s4015_s3 + $0xe0] sm:$0xff]  ;;  %v576_v21 = vld [vmem:[%s4015_s3 + $0x118] sm:$0xff]  ;;  %p559_p2 = scmp.ge.s32.totalorder %s560_s23, %s4563_s18 }
  0xad   : >> { %569 = vst [vmem:[%s4011_s14 + $0x10] sm:$0xff] %v568_v17  ;;  %v578_v22 = vld [vmem:[%s4015_s3 + $0x150] sm:$0xff]  ;;  %v580_v23 = vld [vmem:[%s4015_s3 + $0x188] sm:$0xff]  ;;  %v582_v24 = vld [vmem:[%s4015_s3 + $0x1c0] sm:$0xff] }
  0xae   : >> { %571 = vst [vmem:[%s4011_s14 + $0x20] sm:$0xff] %v570_v18  ;;  %s6810_s27 = smov (%p599_p1, %s598_s27), 0  ;;  %v584_v25 = vld [vmem:[%s4015_s3 + $0x1f8] sm:$0xff]  ;;  %v586_v26 = vld [vmem:[%s4015_s3 + $0x230] sm:$0xff]  ;;  %v588_v27 = vld [vmem:[%s4015_s3 + $0x268] sm:$0xff] }
  0xaf   : >> { %573 = vst [vmem:[%s4011_s14 + $0x30] sm:$0xff] %v572_v19  ;;  %s3158_s11 = sshll.u32 %s6810_s27, 3  ;;  %v590_v28 = vld [vmem:[%s4015_s3 + $0x2a0] sm:$0xff]  ;;  %v592_v29 = vld [vmem:[%s4015_s3 + $0x2d8] sm:$0xff]  ;;  %v594_v30 = vld [vmem:[%s4015_s3 + $0x310] sm:$0xff]  ;;  %s6721_s30 = smov %s6810_s27 }
  0xb0   : >> { %575 = vst [vmem:[%s4011_s14 + $0x40] sm:$0xff] %v574_v20  ;;  %s603_s13 = scalar_lea.vmem %s4567_s7, %s3158_s11   ;;  %s604_s12 = scalar_lea.vmem %s4570_s25, %s3158_s11 [#allocation6]   ;;  %v596_v31 = vld [vmem:[%s4015_s3 + $0x348] sm:$0xff] }
  0xb1   : >> { %577 = vst [vmem:[%s4011_s14 + $0x50] sm:$0xff] %v576_v21  ;;  %s6720_s3 = smov %s603_s13 }
  0xb2   : >> { %579 = vst [vmem:[%s4011_s14 + $0x60] sm:$0xff] %v578_v22 }
  0xb3   : >> { %581 = vst [vmem:[%s4011_s14 + $0x70] sm:$0xff] %v580_v23 }
  0xb4   : >> { %583 = vst [vmem:[%s4011_s14 + $0x80] sm:$0xff] %v582_v24 }
  0xb5   : >> { %585 = vst [vmem:[%s4011_s14 + $0x90] sm:$0xff] %v584_v25 }
  0xb6   : >> { %587 = vst [vmem:[%s4011_s14 + $0xa0] sm:$0xff] %v586_v26 }
  0xb7   : >> { %589 = vst [vmem:[%s4011_s14 + $0xb0] sm:$0xff] %v588_v27  ;;  %562 = sbr.rel (!%p559_p2) target bundleno = 171 (0xab), region = 298 }
  0xb8   : >> { %591 = vst [vmem:[%s4011_s14 + $0xc0] sm:$0xff] %v590_v28 }
  0xb9   : >> { %593 = vst [vmem:[%s4011_s14 + $0xd0] sm:$0xff] %v592_v29 }
  0xba   : >> { %595 = vst [vmem:[%s4011_s14 + $0xe0] sm:$0xff] %v594_v30 }
  0xbb   : >> { %597 = vst [vmem:[%s4011_s14 + $0xf0] sm:$0xff] %v596_v31  ;;  %s6719_s14 = smov %s604_s12 }
  0xbc PF: > { %s4089_s8 = smov 1  }
  0xbd   : > { %s605_s20 = sshll.u32 %s4089_s8, %s4240_s10 }
  0xbe   : > { %s4643_s23 = sadd.s32 4294967295, %s605_s20 }
  0xbf   : > { %v615_v32 = vld [vmem:[%s4444_s17] sm:%s4643_s23]  ;;  %v617_v33 = vld [vmem:[%s4444_s17 + $0x38] sm:%s4643_s23] }
  0xc0   : > { %616 = vst [vmem:[%s4447_s19] sm:%s4643_s23] %v615_v32  ;;  %v619_v34 = vld [vmem:[%s4444_s17 + $0x70] sm:%s4643_s23] }
  0xc1   : > { %618 = vst [vmem:[%s4447_s19 + $0x10] sm:%s4643_s23] %v617_v33  ;;  %v621_v35 = vld [vmem:[%s4444_s17 + $0xa8] sm:%s4643_s23] }
  0xc2   : > { %620 = vst [vmem:[%s4447_s19 + $0x20] sm:%s4643_s23] %v619_v34  ;;  %v623_v36 = vld [vmem:[%s4444_s17 + $0xe0] sm:%s4643_s23] }
  0xc3   : > { %622 = vst [vmem:[%s4447_s19 + $0x30] sm:%s4643_s23] %v621_v35  ;;  %v625_v37 = vld [vmem:[%s4444_s17 + $0x118] sm:%s4643_s23] }
  0xc4   : > { %624 = vst [vmem:[%s4447_s19 + $0x40] sm:%s4643_s23] %v623_v36  ;;  %v627_v38 = vld [vmem:[%s4444_s17 + $0x150] sm:%s4643_s23] }
  0xc5   : > { %626 = vst [vmem:[%s4447_s19 + $0x50] sm:%s4643_s23] %v625_v37  ;;  %v629_v39 = vld [vmem:[%s4444_s17 + $0x188] sm:%s4643_s23] }
  0xc6   : > { %628 = vst [vmem:[%s4447_s19 + $0x60] sm:%s4643_s23] %v627_v38  ;;  %v631_v40 = vld [vmem:[%s4444_s17 + $0x1c0] sm:%s4643_s23] }
  0xc7   : > { %630 = vst [vmem:[%s4447_s19 + $0x70] sm:%s4643_s23] %v629_v39  ;;  %v633_v41 = vld [vmem:[%s4444_s17 + $0x1f8] sm:%s4643_s23] }
  0xc8   : > { %632 = vst [vmem:[%s4447_s19 + $0x80] sm:%s4643_s23] %v631_v40  ;;  %v635_v42 = vld [vmem:[%s4444_s17 + $0x230] sm:%s4643_s23] }
  0xc9   : > { %634 = vst [vmem:[%s4447_s19 + $0x90] sm:%s4643_s23] %v633_v41  ;;  %v637_v43 = vld [vmem:[%s4444_s17 + $0x268] sm:%s4643_s23] }
  0xca   : > { %636 = vst [vmem:[%s4447_s19 + $0xa0] sm:%s4643_s23] %v635_v42  ;;  %v639_v44 = vld [vmem:[%s4444_s17 + $0x2a0] sm:%s4643_s23] }
  0xcb   : > { %638 = vst [vmem:[%s4447_s19 + $0xb0] sm:%s4643_s23] %v637_v43  ;;  %v641_v45 = vld [vmem:[%s4444_s17 + $0x2d8] sm:%s4643_s23] }
  0xcc   : > { %640 = vst [vmem:[%s4447_s19 + $0xc0] sm:%s4643_s23] %v639_v44  ;;  %v643_v46 = vld [vmem:[%s4444_s17 + $0x310] sm:%s4643_s23] }
  0xcd   : > { %642 = vst [vmem:[%s4447_s19 + $0xd0] sm:%s4643_s23] %v641_v45  ;;  %v645_v47 = vld [vmem:[%s4444_s17 + $0x348] sm:%s4643_s23] }
  0xce   : > { %644 = vst [vmem:[%s4447_s19 + $0xe0] sm:%s4643_s23] %v643_v46 }
  0xcf   : > { %646 = vst [vmem:[%s4447_s19 + $0xf0] sm:%s4643_s23] %v645_v47 }
  0xd0 PF: > { %p3161_p3 = scmp.ge.u32.totalorder %s4234_s22, 8 }
  0xd1   : > { %s4090_s7 = smov (!%p3161_p3), 1  }
  0xd2   : > { %275 = sbr.rel (%p3161_p3) target bundleno = 232 (0xe8), region = 56  ;;  %s276_s25 = sshll.u32 (!%p3161_p3), %s4090_s7, %s4234_s22 }
  0xd3   : > { %s4711_s10 = sadd.s32 (!%p3161_p3), 4294967295, %s276_s25 }
  0xd7   : > { %v286_v48 = vld [vmem:[%s4232_s15] sm:%s4711_s10]  ;;  %v288_v49 = vld [vmem:[%s4232_s15 + $0x38] sm:%s4711_s10] }
  0xd8   : > { %287 = vst [vmem:[%s4236_s16] sm:%s4711_s10] %v286_v48  ;;  %v290_v50 = vld [vmem:[%s4232_s15 + $0x70] sm:%s4711_s10] }
  0xd9   : > { %289 = vst [vmem:[%s4236_s16 + $0x10] sm:%s4711_s10] %v288_v49  ;;  %v292_v51 = vld [vmem:[%s4232_s15 + $0xa8] sm:%s4711_s10] }
  0xda   : > { %291 = vst [vmem:[%s4236_s16 + $0x20] sm:%s4711_s10] %v290_v50  ;;  %v294_v52 = vld [vmem:[%s4232_s15 + $0xe0] sm:%s4711_s10] }
  0xdb   : > { %293 = vst [vmem:[%s4236_s16 + $0x30] sm:%s4711_s10] %v292_v51  ;;  %v296_v53 = vld [vmem:[%s4232_s15 + $0x118] sm:%s4711_s10] }
  0xdc   : > { %295 = vst [vmem:[%s4236_s16 + $0x40] sm:%s4711_s10] %v294_v52  ;;  %v298_v54 = vld [vmem:[%s4232_s15 + $0x150] sm:%s4711_s10] }
  0xdd   : > { %297 = vst [vmem:[%s4236_s16 + $0x50] sm:%s4711_s10] %v296_v53  ;;  %v300_v55 = vld [vmem:[%s4232_s15 + $0x188] sm:%s4711_s10] }
  0xde   : > { %299 = vst [vmem:[%s4236_s16 + $0x60] sm:%s4711_s10] %v298_v54  ;;  %v302_v56 = vld [vmem:[%s4232_s15 + $0x1c0] sm:%s4711_s10] }
  0xdf   : > { %301 = vst [vmem:[%s4236_s16 + $0x70] sm:%s4711_s10] %v300_v55  ;;  %v304_v57 = vld [vmem:[%s4232_s15 + $0x1f8] sm:%s4711_s10] }
  0xe0   : > { %303 = vst [vmem:[%s4236_s16 + $0x80] sm:%s4711_s10] %v302_v56  ;;  %v306_v58 = vld [vmem:[%s4232_s15 + $0x230] sm:%s4711_s10] }
  0xe1   : > { %305 = vst [vmem:[%s4236_s16 + $0x90] sm:%s4711_s10] %v304_v57  ;;  %v308_v59 = vld [vmem:[%s4232_s15 + $0x268] sm:%s4711_s10] }
  0xe2   : > { %307 = vst [vmem:[%s4236_s16 + $0xa0] sm:%s4711_s10] %v306_v58  ;;  %v310_v60 = vld [vmem:[%s4232_s15 + $0x2a0] sm:%s4711_s10] }
  0xe3   : > { %309 = vst [vmem:[%s4236_s16 + $0xb0] sm:%s4711_s10] %v308_v59  ;;  %v312_v61 = vld [vmem:[%s4232_s15 + $0x2d8] sm:%s4711_s10] }
  0xe4   : > { %311 = vst [vmem:[%s4236_s16 + $0xc0] sm:%s4711_s10] %v310_v60  ;;  %v314_v62 = vld [vmem:[%s4232_s15 + $0x310] sm:%s4711_s10] }
  0xe5   : > { %313 = vst [vmem:[%s4236_s16 + $0xd0] sm:%s4711_s10] %v312_v61  ;;  %v316_v63 = vld [vmem:[%s4232_s15 + $0x348] sm:%s4711_s10] }
  0xe6   : > { %315 = vst [vmem:[%s4236_s16 + $0xe0] sm:%s4711_s10] %v314_v62 }
  0xe7   : > { %317 = vst [vmem:[%s4236_s16 + $0xf0] sm:%s4711_s10] %v316_v63 }
  0xe8 PF: > { %p3163_p4 = scmp.ge.s32.totalorder %s3959_s9, 1  ;;  %p649_p5 = scmp.lt.s32.totalorder %s3959_s9, 9 }
  0xea   : > { %p650_p6 = pnand %p3163_p4, %p649_p5 }
  0xeb   : > { %s656_s22 = sand.u32 (!%p650_p6), 1, %s3935_s26   ;;  %s683_s17 = sand.u32 (!%p650_p6), 1, %s3927_s24  }
  0xec   : > { %653 = sbr.rel (%p650_p6) target bundleno = 1422 (0x58e), region = 110  ;;  %s3164_s15 = sshll.u32 (!%p650_p6), %s656_s22, 8 }
  0xed   : > { %s3165_s19 = sshll.u32 (!%p650_p6), %s683_s17, 8  ;;  %p700_p7 = scmp.eq.s32.totalorder (!%p650_p6), %s3947_s29, 0 }
  0xee   : > { %p701_p8 = scmp.eq.s32.totalorder (!%p650_p6), %s3943_s28, 0  ;;  %s4785_s16 = scalar_lea.vmem (!%p650_p6), [#allocation6], %s3164_s15 }
  0xef   : > { %s4787_s18 = scalar_lea.vmem (!%p650_p6), [#allocation7], %s3165_s19  }
  0xf0   : > { %p702_p10 = pnand (!%p650_p6), %p701_p8, %p700_p7 }
  0xf2   : > { %705 = sbr.rel (%p702_p10) target bundleno = 463 (0x1cf), region = 118 }
  0xf7   : > { %v758_v0 = vld [vmem:[%s6673_s0 + $0x18] sm:$0xff]  ;;  %v757_v1 = vld [vmem:[%s6673_s0 + $0x10] sm:$0xff]  ;;  %v756_v2 = vld [vmem:[%s6673_s0 + $0x8] sm:$0xff]  ;;  %vm706_vm0 = vcmask 7168   ;;  %v4091_v3 = vmov 0.0   ;;  %vm775_vm1 = vcmask 261120  }
  0xf8   : > { %836 = vmatpush.msra.mxu0 %v758_v0  ;;  %3280 = vmatpush.msra.mxu1 %v758_v0  ;;  %707 = vst.msk [vmem:[#allocation3] sm:$0xff] %vm706_vm0, %v4091_v3  ;;  %v755_v4 = vld [vmem:[%s6673_s0] sm:$0xff]  ;;  %v740_v9 = vld [vmem:[%s6674_s1 + $0x8] sm:$0xff]  ;;  %v741_v13 = vld [vmem:[%s6674_s1 + $0x10] sm:$0xff] }
  0xf9   : > { %3281 = vmatpush.msra.mxu2 %v758_v0  ;;  %3282 = vmatpush.msra.mxu3 %v758_v0  ;;  %708 = vst.msk [vmem:[#allocation3 + $0x8] sm:$0xff] %vm706_vm0, %v4091_v3  ;;  %v739_v5 = vld [vmem:[%s6674_s1] sm:$0xff]  ;;  %v744_v10 = vld [vmem:[%s6674_s1 + $0x28] sm:$0xff]  ;;  %v745_v14 = vld [vmem:[%s6674_s1 + $0x30] sm:$0xff] }
  0xfa   : > { %837 = vmatpush.msra.mxu0 %v757_v1  ;;  %3283 = vmatpush.msra.mxu1 %v757_v1  ;;  %709 = vst.msk [vmem:[#allocation3 + $0x10] sm:$0xff] %vm706_vm0, %v4091_v3  ;;  %v743_v6 = vld [vmem:[%s6674_s1 + $0x20] sm:$0xff]  ;;  %v748_v11 = vld [vmem:[%s6674_s1 + $0x48] sm:$0xff]  ;;  %v749_v15 = vld [vmem:[%s6674_s1 + $0x50] sm:$0xff] }
  0xfb   : > { %3284 = vmatpush.msra.mxu2 %v757_v1  ;;  %3285 = vmatpush.msra.mxu3 %v757_v1  ;;  %710 = vst.msk [vmem:[#allocation3 + $0x18] sm:$0xff] %vm706_vm0, %v4091_v3  ;;  %v747_v7 = vld [vmem:[%s6674_s1 + $0x40] sm:$0xff]  ;;  %v752_v12 = vld [vmem:[%s6674_s1 + $0x68] sm:$0xff]  ;;  %v753_v16 = vld [vmem:[%s6674_s1 + $0x70] sm:$0xff] }
  0xfc   : > { %838 = vmatpush.msra.mxu0 %v756_v2  ;;  %3286 = vmatpush.msra.mxu1 %v756_v2  ;;  %v751_v8 = vld [vmem:[%s6674_s1 + $0x60] sm:$0xff]  ;;  %711 = vst.msk [vmem:[#allocation3 + $0x20] sm:$0xff] %vm706_vm0, %v4091_v3  ;;  %v742_v17 = vld [vmem:[%s6674_s1 + $0x18] sm:$0xff]  ;;  %v760_v31 = vld [vmem:[%s6675_s2 + $0x8] sm:$0xff] }
  0xfd   : > { %3287 = vmatpush.msra.mxu2 %v756_v2  ;;  %3288 = vmatpush.msra.mxu3 %v756_v2  ;;  %712 = vst.msk [vmem:[#allocation3 + $0x28] sm:$0xff] %vm706_vm0, %v4091_v3  ;;  %v746_v18 = vld [vmem:[%s6674_s1 + $0x38] sm:$0xff]  ;;  %v759_v21 = vld [vmem:[%s6675_s2] sm:$0xff]  ;;  %v764_v32 = vld [vmem:[%s6675_s2 + $0x28] sm:$0xff] }
  0xfe   : > { %839 = vmatpush.msra.mxu0 %v755_v4  ;;  %3289 = vmatpush.msra.mxu1 %v755_v4  ;;  %713 = vst.msk [vmem:[#allocation3 + $0x30] sm:$0xff] %vm706_vm0, %v4091_v3  ;;  %v750_v19 = vld [vmem:[%s6674_s1 + $0x58] sm:$0xff]  ;;  %v763_v22 = vld [vmem:[%s6675_s2 + $0x20] sm:$0xff]  ;;  %v768_v49 = vld [vmem:[%s6675_s2 + $0x48] sm:$0xff] }
  0xff   : > { %3290 = vmatpush.msra.mxu2 %v755_v4  ;;  %3291 = vmatpush.msra.mxu3 %v755_v4  ;;  %714 = vst.msk [vmem:[#allocation3 + $0x38] sm:$0xff] %vm706_vm0, %v4091_v3  ;;  %v754_v20 = vld [vmem:[%s6674_s1 + $0x78] sm:$0xff]  ;;  %v767_v29 = vld [vmem:[%s6675_s2 + $0x40] sm:$0xff]  ;;  %v772_v51 = vld [vmem:[%s6675_s2 + $0x68] sm:$0xff] }
 0x100   : > { %3166 = vmatmul.msk.f32.vlgmr.msra.gmra.mxu0 %vm775_vm1, %v739_v5  ;;  %3170 = vmatmul.msk.f32.vlgmr.msra.gmra.mxu1 %vm775_vm1, %v743_v6  ;;  %715 = vst.msk [vmem:[#allocation3 + $0x40] sm:$0xff] %vm706_vm0, %v4091_v3  ;;  %v771_v30 = vld [vmem:[%s6675_s2 + $0x60] sm:$0xff]  ;;  %v761_v56 = vld [vmem:[%s6675_s2 + $0x10] sm:$0xff] }
 0x101   : > { %3174 = vmatmul.msk.f32.vlgmr.msra.gmra.mxu2 %vm775_vm1, %v747_v7  ;;  %3178 = vmatmul.msk.f32.vlgmr.msra.gmra.mxu3 %vm775_vm1, %v751_v8  ;;  %716 = vst.msk [vmem:[#allocation3 + $0x48] sm:$0xff] %vm706_vm0, %v4091_v3  ;;  %v765_v4 = vld [vmem:[%s6675_s2 + $0x30] sm:$0xff] }
 0x102   : > { %717 = vst.msk [vmem:[#allocation3 + $0x50] sm:$0xff] %vm706_vm0, %v4091_v3 }
 0x103   : > { %718 = vst.msk [vmem:[#allocation3 + $0x58] sm:$0xff] %vm706_vm0, %v4091_v3 }
 0x104   : > { %719 = vst.msk [vmem:[#allocation3 + $0x60] sm:$0xff] %vm706_vm0, %v4091_v3 }
 0x105   : > { %720 = vst.msk [vmem:[#allocation3 + $0x68] sm:$0xff] %vm706_vm0, %v4091_v3 }
 0x106   : > { %721 = vst.msk [vmem:[#allocation3 + $0x70] sm:$0xff] %vm706_vm0, %v4091_v3 }
 0x107   : > { %722 = vst.msk [vmem:[#allocation3 + $0x78] sm:$0xff] %vm706_vm0, %v4091_v3 }
 0x108   : > { %3167 = vmatmul.msk.f32.gmra.mxu0 %vm775_vm1, %v740_v9  ;;  %3171 = vmatmul.msk.f32.gmra.mxu1 %vm775_vm1, %v744_v10  ;;  %723 = vst.msk [vmem:[#allocation4] sm:$0xff] %vm706_vm0, %v4091_v3 }
 0x109   : > { %3175 = vmatmul.msk.f32.gmra.mxu2 %vm775_vm1, %v748_v11  ;;  %3179 = vmatmul.msk.f32.gmra.mxu3 %vm775_vm1, %v752_v12  ;;  %724 = vst.msk [vmem:[#allocation4 + $0x8] sm:$0xff] %vm706_vm0, %v4091_v3 }
 0x10a   : > { %725 = vst.msk [vmem:[#allocation4 + $0x10] sm:$0xff] %vm706_vm0, %v4091_v3 }
 0x10b   : > { %726 = vst.msk [vmem:[#allocation4 + $0x18] sm:$0xff] %vm706_vm0, %v4091_v3 }
 0x10c   : > { %727 = vst.msk [vmem:[#allocation4 + $0x20] sm:$0xff] %vm706_vm0, %v4091_v3 }
 0x10d   : > { %728 = vst.msk [vmem:[#allocation4 + $0x28] sm:$0xff] %vm706_vm0, %v4091_v3 }
 0x10e   : > { %729 = vst.msk [vmem:[#allocation4 + $0x30] sm:$0xff] %vm706_vm0, %v4091_v3 }
 0x10f   : > { %730 = vst.msk [vmem:[#allocation4 + $0x38] sm:$0xff] %vm706_vm0, %v4091_v3 }
 0x110   : > { %3168 = vmatmul.msk.f32.gmra.mxu0 %vm775_vm1, %v741_v13  ;;  %3172 = vmatmul.msk.f32.gmra.mxu1 %vm775_vm1, %v745_v14  ;;  %731 = vst.msk [vmem:[#allocation4 + $0x40] sm:$0xff] %vm706_vm0, %v4091_v3 }
 0x111   : > { %3176 = vmatmul.msk.f32.gmra.mxu2 %vm775_vm1, %v749_v15  ;;  %3180 = vmatmul.msk.f32.gmra.mxu3 %vm775_vm1, %v753_v16  ;;  %732 = vst.msk [vmem:[#allocation4 + $0x48] sm:$0xff] %vm706_vm0, %v4091_v3 }
 0x112   : > { %733 = vst.msk [vmem:[#allocation4 + $0x50] sm:$0xff] %vm706_vm0, %v4091_v3 }
 0x113   : > { %734 = vst.msk [vmem:[#allocation4 + $0x58] sm:$0xff] %vm706_vm0, %v4091_v3 }
 0x114   : > { %735 = vst.msk [vmem:[#allocation4 + $0x60] sm:$0xff] %vm706_vm0, %v4091_v3 }
 0x115   : > { %736 = vst.msk [vmem:[#allocation4 + $0x68] sm:$0xff] %vm706_vm0, %v4091_v3 }
 0x116   : > { %737 = vst.msk [vmem:[#allocation4 + $0x70] sm:$0xff] %vm706_vm0, %v4091_v3 }
 0x117   : > { %738 = vst.msk [vmem:[#allocation4 + $0x78] sm:$0xff] %vm706_vm0, %v4091_v3 }
 0x118   : > { %3169 = vmatmul.msk.f32.gmra.mxu0 %vm775_vm1, %v742_v17  ;;  %3173 = vmatmul.msk.f32.gmra.mxu1 %vm775_vm1, %v746_v18 }
 0x119   : > { %3177 = vmatmul.msk.f32.gmra.mxu2 %vm775_vm1, %v750_v19  ;;  %3181 = vmatmul.msk.f32.gmra.mxu3 %vm775_vm1, %v754_v20 }
 0x17d   : > { %v841_v23 = vpop.f32.mrf.mxu0  ;;  %v853_v24 = vpop.f32.mrf.mxu1 }
 0x17e   : > { %v842_v25 = vadd.f32 %v841_v23, %v759_v21  ;;  %v854_v26 = vadd.f32 %v853_v24, %v763_v22 }
 0x180   : > { %v3182_v27 = vmul.f32 -1.442695, %v842_v25  ;;  %v3186_v28 = vmul.f32 -1.442695, %v854_v26 }
 0x182   : > { %3659 = vpow2.f32 %v3182_v27 }
 0x183   : > { %3661 = vpow2.f32 %v3186_v28 }
 0x184   : > { %v865_v33 = vpop.f32.mrf.mxu2  ;;  %v877_v34 = vpop.f32.mrf.mxu3 }
 0x185   : > { %v866_v35 = vadd.f32 %v865_v33, %v767_v29  ;;  %v878_v36 = vadd.f32 %v877_v34, %v771_v30  ;;  %v844_v37 = vpop.f32.mrf.mxu0  ;;  %v856_v38 = vpop.f32.mrf.mxu1  ;;  %v769_v34 = vld [vmem:[%s6675_s2 + $0x50] sm:$0xff] }
 0x186   : > { %v845_v39 = vadd.f32 %v844_v37, %v760_v31  ;;  %v857_v40 = vadd.f32 %v856_v38, %v764_v32 }
 0x187   : > { %v3190_v41 = vmul.f32 -1.442695, %v866_v35  ;;  %v3194_v42 = vmul.f32 -1.442695, %v878_v36 }
 0x188   : > { %v3660_v43 = vpop.eup %3659  ;;  %v3183_v46 = vmul.f32 -1.442695, %v845_v39  ;;  %v3187_v48 = vmul.f32 -1.442695, %v857_v40 }
 0x189   : > { %v3662_v44 = vpop.eup %3661  ;;  %v4947_v45 = vadd.f32 1.0, %v3660_v43  ;;  %3663 = vpow2.f32 %v3190_v41 }
 0x18a   : > { %v4949_v47 = vadd.f32 1.0, %v3662_v44  ;;  %3665 = vpow2.f32 %v3194_v42 }
 0x18b   : > { %3667 = vrcp.f32 %v4947_v45  ;;  %v962_v54 = vand.u32 2147483647, %v4947_v45  ;;  %v964_v55 = vand.u32 2147483648, %v4947_v45  ;;  %vm958_vm2 = vweird.f32 %v4947_v45 }
 0x18c   : > { %3669 = vrcp.f32 %v4949_v47  ;;  %v868_v50 = vpop.f32.mrf.mxu2  ;;  %v880_v52 = vpop.f32.mrf.mxu3  ;;  %v1022_v59 = vand.u32 2147483647, %v4949_v47  ;;  %v1024_v63 = vand.u32 2147483648, %v4949_v47  ;;  %vm1018_vm3 = vweird.f32 %v4949_v47 }
 0x18d   : > { %3671 = vpow2.f32 %v3183_v46  ;;  %v869_v53 = vadd.f32 %v868_v50, %v768_v49  ;;  %v847_v57 = vpop.f32.mrf.mxu0  ;;  %v881_v61 = vadd.f32 %v880_v52, %v772_v51  ;;  %v859_v5 = vpop.f32.mrf.mxu1  ;;  %vm4976_vm4 = vcmp.eq.f32.partialorder %v962_v54, 8.507059e+37 }
 0x18e   : > { %3673 = vpow2.f32 %v3187_v48  ;;  %v848_v3 = vadd.f32 %v847_v57, %v761_v56  ;;  %v965_v9 = vor.u32 1.1754944e-38, %v964_v55  ;;  %vm4982_vm5 = vcmp.eq.f32.partialorder %v1022_v59, 8.507059e+37 }
 0x18f   : > { %v3664_v58 = vpop.eup %3663  ;;  %v3191_v60 = vmul.f32 -1.442695, %v869_v53  ;;  %v3195_v13 = vmul.f32 -1.442695, %v881_v61  ;;  %v1025_v16 = vor.u32 1.1754944e-38, %v1024_v63  ;;  %v860_v17 = vadd.f32 %v859_v5, %v765_v4 }
 0x190   : > { %v3666_v62 = vpop.eup %3665  ;;  %v4966_v0 = vadd.f32 1.0, %v3664_v58  ;;  %v3184_v20 = vmul.f32 -1.442695, %v848_v3 }
 0x191   : > { %v3668_v1 = vpop.eup %3667  ;;  %v4970_v2 = vadd.f32 1.0, %v3666_v62  ;;  %v4996_v30 = vmul.f32 -1.442695, %v860_v17 }
 0x192   : > { %v3670_v6 = vpop.eup %3669  ;;  %v954_v7 = vmul.f32 %v3668_v1, %v4947_v45  ;;  %3675 = vrcp.f32 %v4966_v0  ;;  %vm959_vm6 = vweird.f32 %v3668_v1  ;;  %v1082_v19 = vand.u32 2147483647, %v4966_v0 }
 0x193   : > { %v3672_v10 = vpop.eup %3671  ;;  %v1014_v11 = vmul.f32 %v3670_v6, %v4949_v47  ;;  %3677 = vpow2.f32 %v3191_v60  ;;  %v1084_v22 = vand.u32 2147483648, %v4966_v0  ;;  %vm1019_vm7 = vweird.f32 %v3670_v6  ;;  %vm960_vm8 = vmor %vm958_vm2, %vm959_vm6 }
 0x194   : > { %v3674_v14 = vpop.eup %3673  ;;  %v955_v15 = vsub.f32 1.0, %v954_v7  ;;  %3679 = vrcp.f32 %v4970_v2  ;;  %v4989_v23 = vadd.f32 1.0, %v3672_v10  ;;  %v1142_v26 = vand.u32 2147483647, %v4970_v2  ;;  %v871_v35 = vpop.f32.mrf.mxu2  ;;  %vm1020_vm11 = vmor %vm1018_vm3, %vm1019_vm7 }
 0x195   : > { %v1015_v18 = vsub.f32 1.0, %v1014_v11  ;;  %v4991_v24 = vadd.f32 1.0, %v3674_v14  ;;  %3681 = vpow2.f32 %v3195_v13  ;;  %v1144_v29 = vand.u32 2147483648, %v4970_v2  ;;  %v883_v62 = vpop.f32.mrf.mxu3  ;;  %v773_v14 = vld [vmem:[%s6675_s2 + $0x70] sm:$0xff] }
 0x196   : > { %v956_v21 = vmul.f32 %v3668_v1, %v955_v15  ;;  %3683 = vrcp.f32 %v4989_v23  ;;  %vm1078_vm9 = vweird.f32 %v4966_v0  ;;  %vm1138_vm10 = vweird.f32 %v4970_v2 }
 0x197   : > { %v1016_v25 = vmul.f32 %v3670_v6, %v1015_v18  ;;  %vm5010_vm12 = vcmp.eq.f32.partialorder %v1082_v19, 8.507059e+37  ;;  %v1085_v39 = vor.u32 1.1754944e-38, %v1084_v22  ;;  %3685 = vrcp.f32 %v4991_v24  ;;  %v762_v18 = vld [vmem:[%s6675_s2 + $0x18] sm:$0xff]  ;;  %v850_v19 = vpop.f32.mrf.mxu0 }
 0x198   : > { %v3676_v27 = vpop.eup %3675  ;;  %v957_v28 = vadd.f32 %v3668_v1, %v956_v21  ;;  %vm5018_vm13 = vcmp.eq.f32.partialorder %v1142_v26, 8.507059e+37  ;;  %v1145_v46 = vor.u32 1.1754944e-38, %v1144_v29  ;;  %v977_v47 = vand.u32 2147483647, %v4989_v23 }
 0x199   : > { %v3678_v31 = vpop.eup %3677  ;;  %v1017_v32 = vadd.f32 %v3670_v6, %v1016_v25  ;;  %v1074_v33 = vmul.f32 %v3676_v27, %v4966_v0  ;;  %v872_v48 = vadd.f32 %v871_v35, %v769_v34  ;;  %vm1079_vm14 = vweird.f32 %v3676_v27 }
 0x19a   : > { %v3680_v36 = vpop.eup %3679  ;;  %v961_v37 = vsel %vm960_vm8, %v3668_v1, %v957_v28  ;;  %v5027_v52 = vadd.f32 1.0, %v3678_v31  ;;  %vm973_vm1 = vweird.f32 %v4989_v23  ;;  %v979_v54 = vand.u32 2147483648, %v4989_v23  ;;  %vm1080_vm2 = vmor %vm1078_vm9, %vm1079_vm14 }
 0x19b   : > { %v966_v40 = vsel %vm4976_vm4, %v965_v9, %v961_v37  ;;  %v1021_v41 = vsel %vm1020_vm11, %v3670_v6, %v1017_v32  ;;  %v1075_v42 = vsub.f32 1.0, %v1074_v33  ;;  %v1134_v43 = vmul.f32 %v3680_v36, %v4970_v2  ;;  %v3682_v49 = vpop.eup %3681  ;;  %v862_v37 = vpop.f32.mrf.mxu1 }
 0x19c   : > { %1193 = vst.msk [vmem:[#allocation2] sm:$0xff] %vm706_vm0, %v966_v40  ;;  %v1026_v45 = vsel %vm4982_vm5, %v1025_v16, %v1021_v41  ;;  %v3684_v53 = vpop.eup %3683  ;;  %vm1139_vm15 = vweird.f32 %v3680_v36  ;;  %3687 = vpow2.f32 %v3184_v20  ;;  %v5032_v58 = vadd.f32 1.0, %v3682_v49  ;;  %v874_v38 = vpop.f32.mrf.mxu2 }
 0x19d   : > { %1197 = vst.msk [vmem:[#allocation2 + $0x20] sm:$0xff] %vm706_vm0, %v1026_v45  ;;  %v1076_v50 = vmul.f32 %v3676_v27, %v1075_v42  ;;  %v1135_v51 = vsub.f32 1.0, %v1134_v43  ;;  %v969_v57 = vmul.f32 %v3684_v53, %v4989_v23  ;;  %v3686_v59 = vpop.eup %3685  ;;  %vm5036_vm3 = vcmp.eq.f32.partialorder %v977_v47, 8.507059e+37  ;;  %vm1140_vm5 = vmor %vm1138_vm10, %vm1139_vm15  ;;  %v774_v42 = vld [vmem:[%s6675_s2 + $0x78] sm:$0xff]  ;;  %v886_v43 = vpop.f32.mrf.mxu3 }
 0x19e   : > { %vm1033_vm4 = vweird.f32 %v4991_v24  ;;  %v1037_v61 = vand.u32 2147483647, %v4991_v24  ;;  %3689 = vrcp.f32 %v5027_v52  ;;  %v1029_v4 = vmul.f32 %v3686_v59, %v4991_v24 }
 0x19f   : > { %v1077_v55 = vadd.f32 %v3676_v27, %v1076_v50  ;;  %v1136_v56 = vmul.f32 %v3680_v36, %v1135_v51  ;;  %v970_v3 = vsub.f32 1.0, %v969_v57  ;;  %vm974_vm6 = vweird.f32 %v3684_v53 }
 0x1a0   : > { %v1039_v5 = vand.u32 2147483648, %v4991_v24  ;;  %v1097_v6 = vand.u32 2147483647, %v5027_v52  ;;  %v1030_v9 = vsub.f32 1.0, %v1029_v4  ;;  %3691 = vrcp.f32 %v5032_v58  ;;  %vm975_vm9 = vmor %vm973_vm1, %vm974_vm6  ;;  %v770_v24 = vld [vmem:[%s6675_s2 + $0x58] sm:$0xff] }
 0x1a1   : > { %v1081_v63 = vsel %vm1080_vm2, %v3676_v27, %v1077_v55  ;;  %v1137_v1 = vadd.f32 %v3680_v36, %v1136_v56  ;;  %v971_v8 = vmul.f32 %v3684_v53, %v970_v3  ;;  %v980_v12 = vor.u32 1.1754944e-38, %v979_v54 }
 0x1a2   : > { %v1086_v0 = vsel %vm5010_vm12, %v1085_v39, %v1081_v63  ;;  %v3688_v10 = vpop.eup %3687  ;;  %vm5055_vm7 = vcmp.eq.f32.partialorder %v1037_v61, 8.507059e+37  ;;  %v1099_v13 = vand.u32 2147483648, %v5027_v52  ;;  %v1031_v16 = vmul.f32 %v3686_v59, %v1030_v9 }
 0x1a3   : > { %1201 = vst.msk [vmem:[#allocation2 + $0x40] sm:$0xff] %vm706_vm0, %v1086_v0  ;;  %v1141_v7 = vsel %vm1140_vm5, %v3680_v36, %v1137_v1  ;;  %v972_v15 = vadd.f32 %v3684_v53, %v971_v8  ;;  %vm1034_vm8 = vweird.f32 %v3686_v59  ;;  %v5064_v17 = vadd.f32 1.0, %v3688_v10  ;;  %v766_v36 = vld [vmem:[%s6675_s2 + $0x38] sm:$0xff] }
 0x1a4   : > { %v1146_v11 = vsel %vm5018_vm13, %v1145_v46, %v1141_v7  ;;  %v3690_v20 = vpop.eup %3689  ;;  %v1040_v21 = vor.u32 1.1754944e-38, %v1039_v5  ;;  %vm1093_vm10 = vweird.f32 %v5027_v52  ;;  %3693 = vpow2.f32 %v4996_v30  ;;  %vm1035_vm12 = vmor %vm1033_vm4, %vm1034_vm8 }
 0x1a5   : > { %1205 = vst.msk [vmem:[#allocation2 + $0x60] sm:$0xff] %vm706_vm0, %v1146_v11  ;;  %v3192_v22 = vmul.f32 -1.442695, %v872_v48  ;;  %v976_v25 = vsel %vm975_vm9, %v3684_v53, %v972_v15  ;;  %v1032_v26 = vadd.f32 %v3686_v59, %v1031_v16  ;;  %v1089_v27 = vmul.f32 %v3690_v20, %v5027_v52 }
 0x1a6   : > { %vm5075_vm11 = vcmp.eq.f32.partialorder %v1097_v6, 8.507059e+37  ;;  %v884_v29 = vadd.f32 %v883_v62, %v773_v14  ;;  %v981_v31 = vsel %vm5036_vm3, %v980_v12, %v976_v25  ;;  %v1100_v23 = vor.u32 1.1754944e-38, %v1099_v13  ;;  %v3692_v32 = vpop.eup %3691 }
 0x1a7   : > { %3695 = vrcp.f32 %v5064_v17  ;;  %v851_v30 = vadd.f32 %v850_v19, %v762_v18  ;;  %1194 = vst.msk [vmem:[#allocation2 + $0x8] sm:$0xff] %vm706_vm0, %v981_v31  ;;  %v1036_v33 = vsel %vm1035_vm12, %v3686_v59, %v1032_v26  ;;  %v1090_v34 = vsub.f32 1.0, %v1089_v27 }
 0x1a8   : > { %vm1153_vm13 = vweird.f32 %v5032_v58  ;;  %v1157_v35 = vand.u32 2147483647, %v5032_v58  ;;  %v1041_v39 = vsel %vm5055_vm7, %v1040_v21, %v1036_v33  ;;  %v1149_v40 = vmul.f32 %v3692_v32, %v5032_v58 }
 0x1a9   : > { %v1159_v41 = vand.u32 2147483648, %v5032_v58  ;;  %3697 = vpow2.f32 %v3192_v22  ;;  %1198 = vst.msk [vmem:[#allocation2 + $0x28] sm:$0xff] %vm706_vm0, %v1041_v39  ;;  %v1091_v44 = vmul.f32 %v3690_v20, %v1090_v34  ;;  %vm1094_vm14 = vweird.f32 %v3690_v20 }
 0x1aa   : > { %vm1154_vm15 = vweird.f32 %v3692_v32  ;;  %v3196_v45 = vmul.f32 -1.442695, %v884_v29  ;;  %v3694_v46 = vpop.eup %3693  ;;  %v1150_v47 = vsub.f32 1.0, %v1149_v40  ;;  %v3185_v48 = vmul.f32 -1.442695, %v851_v30  ;;  %vm1095_vm1 = vmor %vm1093_vm10, %vm1094_vm14 }
 0x1ab   : > { %v863_v49 = vadd.f32 %v862_v37, %v766_v36  ;;  %v875_v50 = vadd.f32 %v874_v38, %v770_v24  ;;  %v1092_v51 = vadd.f32 %v3690_v20, %v1091_v44  ;;  %v5102_v53 = vadd.f32 1.0, %v3694_v46  ;;  %vm1155_vm4 = vmor %vm1153_vm13, %vm1154_vm15 }
 0x1ac   : > { %3699 = vpow2.f32 %v3196_v45  ;;  %v887_v54 = vadd.f32 %v886_v43, %v774_v42  ;;  %v1151_v56 = vmul.f32 %v3692_v32, %v1150_v47  ;;  %vm5106_vm2 = vcmp.eq.f32.partialorder %v1157_v35, 8.507059e+37 }
 0x1ad   : > { %v3696_v55 = vpop.eup %3695  ;;  %3701 = vpow2.f32 %v3185_v48  ;;  %v3189_v57 = vmul.f32 -1.442695, %v863_v49  ;;  %v3193_v59 = vmul.f32 -1.442695, %v875_v50  ;;  %v1096_v60 = vsel %vm1095_vm1, %v3690_v20, %v1092_v51 }
 0x1ae   : > { %v984_v62 = vmul.f32 %v3696_v55, %v5064_v17  ;;  %3703 = vrcp.f32 %v5102_v53  ;;  %v1101_v1 = vsel %vm5075_vm11, %v1100_v23, %v1096_v60  ;;  %v1152_v3 = vadd.f32 %v3692_v32, %v1151_v56 }
 0x1af   : > { %v3698_v63 = vpop.eup %3697  ;;  %v1160_v52 = vor.u32 1.1754944e-38, %v1159_v41  ;;  %vm988_vm3 = vweird.f32 %v5064_v17  ;;  %1202 = vst.msk [vmem:[#allocation2 + $0x48] sm:$0xff] %vm706_vm0, %v1101_v1  ;;  %v992_v0 = vand.u32 2147483647, %v5064_v17  ;;  %3705 = vpow2.f32 %v3189_v57 }
 0x1b0   : > { %v985_v4 = vsub.f32 1.0, %v984_v62  ;;  %v5120_v5 = vadd.f32 1.0, %v3698_v63  ;;  %v1156_v6 = vsel %vm1155_vm4, %v3692_v32, %v1152_v3  ;;  %v994_v7 = vand.u32 2147483648, %v5064_v17 }
 0x1b1   : > { %3707 = vpow2.f32 %v3193_v59  ;;  %v3197_v8 = vmul.f32 -1.442695, %v887_v54  ;;  %v1161_v10 = vsel %vm5106_vm2, %v1160_v52, %v1156_v6  ;;  %vm989_vm5 = vweird.f32 %v3696_v55 }
 0x1b2   : > { %v3700_v9 = vpop.eup %3699  ;;  %v986_v11 = vmul.f32 %v3696_v55, %v985_v4  ;;  %3709 = vrcp.f32 %v5120_v5  ;;  %1206 = vst.msk [vmem:[#allocation2 + $0x68] sm:$0xff] %vm706_vm0, %v1161_v10  ;;  %vm990_vm6 = vmor %vm988_vm3, %vm989_vm5  ;;  %v995_v15 = vor.u32 1.1754944e-38, %v994_v7  ;;  %vm993_vm7 = vcmp.eq.f32.partialorder %v992_v0, 8.507059e+37 }
 0x1b3   : > { %v3702_v58 = vpop.eup %3701  ;;  %v5127_v12 = vadd.f32 1.0, %v3700_v9  ;;  %3711 = vpow2.f32 %v3197_v8  ;;  %v1052_v25 = vand.u32 2147483647, %v5102_v53  ;;  %v1054_v17 = vand.u32 2147483648, %v5102_v53 }
 0x1b4   : > { %v3704_v2 = vpop.eup %3703  ;;  %v987_v13 = vadd.f32 %v3696_v55, %v986_v11  ;;  %v5129_v14 = vadd.f32 1.0, %v3702_v58  ;;  %vm1048_vm8 = vweird.f32 %v5102_v53  ;;  %v1112_v31 = vand.u32 2147483647, %v5120_v5 }
 0x1b5   : > { %v1044_v16 = vmul.f32 %v3704_v2, %v5102_v53  ;;  %v3706_v18 = vpop.eup %3705  ;;  %3713 = vrcp.f32 %v5127_v12  ;;  %vm1049_vm9 = vweird.f32 %v3704_v2  ;;  %v1114_v23 = vand.u32 2147483648, %v5120_v5 }
 0x1b6   : > { %v991_v19 = vsel %vm990_vm6, %v3696_v55, %v987_v13  ;;  %3715 = vrcp.f32 %v5129_v14  ;;  %v5143_v30 = vadd.f32 1.0, %v3706_v18  ;;  %vm1053_vm10 = vcmp.eq.f32.partialorder %v1052_v25, 8.507059e+37  ;;  %vm1050_vm11 = vmor %vm1048_vm8, %vm1049_vm9 }
 0x1b7   : > { %v3708_v20 = vpop.eup %3707  ;;  %v996_v21 = vsel %vm993_vm7, %v995_v15, %v991_v19  ;;  %v1045_v22 = vsub.f32 1.0, %v1044_v16  ;;  %v1055_v36 = vor.u32 1.1754944e-38, %v1054_v17  ;;  %vm1108_vm12 = vweird.f32 %v5120_v5 }
 0x1b8   : > { %v3710_v26 = vpop.eup %3709  ;;  %1195 = vst.msk [vmem:[#allocation2 + $0x10] sm:$0xff] %vm706_vm0, %v996_v21  ;;  %v5145_v34 = vadd.f32 1.0, %v3708_v20  ;;  %3717 = vrcp.f32 %v5143_v30  ;;  %vm5152_vm14 = vcmp.eq.f32.partialorder %v1112_v31, 8.507059e+37  ;;  %v1115_v43 = vor.u32 1.1754944e-38, %v1114_v23 }
 0x1b9   : > { %v1046_v27 = vmul.f32 %v3704_v2, %v1045_v22  ;;  %v1104_v28 = vmul.f32 %v3710_v26, %v5120_v5  ;;  %v3712_v29 = vpop.eup %3711  ;;  %vm1109_vm13 = vweird.f32 %v3710_v26  ;;  %v1172_v47 = vand.u32 2147483647, %v5127_v12 }
 0x1ba   : > { %v5150_v40 = vadd.f32 1.0, %v3712_v29  ;;  %3719 = vrcp.f32 %v5145_v34  ;;  %vm1110_vm15 = vmor %vm1108_vm12, %vm1109_vm13  ;;  %v1174_v48 = vand.u32 2147483648, %v5127_v12  ;;  %vm1003_vm1 = vweird.f32 %v5129_v14 }
 0x1bb   : > { %v1047_v32 = vadd.f32 %v3704_v2, %v1046_v27  ;;  %v1105_v33 = vsub.f32 1.0, %v1104_v28  ;;  %v3714_v35 = vpop.eup %3713  ;;  %v1009_v50 = vand.u32 2147483648, %v5129_v14  ;;  %v1007_v57 = vand.u32 2147483647, %v5129_v14 }
 0x1bc   : > { %v3716_v37 = vpop.eup %3715  ;;  %v1164_v39 = vmul.f32 %v3714_v35, %v5127_v12  ;;  %vm1169_vm2 = vweird.f32 %v3714_v35  ;;  %3721 = vrcp.f32 %v5150_v40  ;;  %vm1168_vm4 = vweird.f32 %v5127_v12 }
 0x1bd   : > { %v1051_v24 = vsel %vm1050_vm11, %v3704_v2, %v1047_v32  ;;  %v1106_v38 = vmul.f32 %v3710_v26, %v1105_v33  ;;  %v999_v44 = vmul.f32 %v3716_v37, %v5129_v14  ;;  %vm1004_vm3 = vweird.f32 %v3716_v37  ;;  %vm1170_vm5 = vmor %vm1168_vm4, %vm1169_vm2 }
 0x1be   : > { %v1056_v41 = vsel %vm1053_vm10, %v1055_v36, %v1051_v24  ;;  %v1165_v46 = vsub.f32 1.0, %v1164_v39  ;;  %v3718_v54 = vpop.eup %3717  ;;  %vm1173_vm6 = vcmp.eq.f32.partialorder %v1172_v47, 8.507059e+37  ;;  %v1175_v61 = vor.u32 1.1754944e-38, %v1174_v48  ;;  %vm1005_vm7 = vmor %vm1003_vm1, %vm1004_vm3 }
 0x1bf   : > { %1199 = vst.msk [vmem:[#allocation2 + $0x30] sm:$0xff] %vm706_vm0, %v1056_v41  ;;  %v1107_v45 = vadd.f32 %v3710_v26, %v1106_v38  ;;  %v1000_v49 = vsub.f32 1.0, %v999_v44  ;;  %v1059_v60 = vmul.f32 %v3718_v54, %v5143_v30  ;;  %v1010_v63 = vor.u32 1.1754944e-38, %v1009_v50 }
 0x1c0   : > { %v1166_v53 = vmul.f32 %v3714_v35, %v1165_v46  ;;  %v3720_v1 = vpop.eup %3719  ;;  %v1067_v4 = vand.u32 2147483647, %v5143_v30  ;;  %v1069_v0 = vand.u32 2147483648, %v5143_v30  ;;  %vm1008_vm8 = vcmp.eq.f32.partialorder %v1007_v57, 8.507059e+37 }
 0x1c1   : > { %v1111_v51 = vsel %vm1110_vm15, %v3710_v26, %v1107_v45  ;;  %v1001_v56 = vmul.f32 %v3716_v37, %v1000_v49  ;;  %v1060_v52 = vsub.f32 1.0, %v1059_v60  ;;  %v1119_v7 = vmul.f32 %v3720_v1, %v5145_v34 }
 0x1c2   : > { %v1116_v55 = vsel %vm5152_vm14, %v1115_v43, %v1111_v51  ;;  %v1167_v59 = vadd.f32 %v3714_v35, %v1166_v53  ;;  %v3722_v8 = vpop.eup %3721  ;;  %vm1063_vm9 = vweird.f32 %v5143_v30  ;;  %vm1064_vm10 = vweird.f32 %v3718_v54 }
 0x1c3   : > { %1203 = vst.msk [vmem:[#allocation2 + $0x50] sm:$0xff] %vm706_vm0, %v1116_v55  ;;  %v1002_v62 = vadd.f32 %v3716_v37, %v1001_v56  ;;  %v1061_v10 = vmul.f32 %v3718_v54, %v1060_v52  ;;  %v1120_v11 = vsub.f32 1.0, %v1119_v7  ;;  %v1179_v58 = vmul.f32 %v3722_v8, %v5150_v40  ;;  %vm1065_vm12 = vmor %vm1063_vm9, %vm1064_vm10 }
 0x1c4   : > { %v1171_v3 = vsel %vm1170_vm5, %v3714_v35, %v1167_v59  ;;  %vm1068_vm11 = vcmp.eq.f32.partialorder %v1067_v4, 8.507059e+37  ;;  %v1070_v2 = vor.u32 1.1754944e-38, %v1069_v0  ;;  %v1129_v13 = vand.u32 2147483648, %v5145_v34 }
 0x1c5   : > { %v1176_v5 = vsel %vm1173_vm6, %v1175_v61, %v1171_v3  ;;  %v1006_v6 = vsel %vm1005_vm7, %v3716_v37, %v1002_v62  ;;  %v1062_v12 = vadd.f32 %v3718_v54, %v1061_v10  ;;  %v1121_v14 = vmul.f32 %v3720_v1, %v1120_v11 }
 0x1c6   : > { %1207 = vst.msk [vmem:[#allocation2 + $0x70] sm:$0xff] %vm706_vm0, %v1176_v5  ;;  %v1011_v9 = vsel %vm1008_vm8, %v1010_v63, %v1006_v6  ;;  %vm1124_vm13 = vweird.f32 %v3720_v1  ;;  %v1127_v15 = vand.u32 2147483647, %v5145_v34  ;;  %v1180_v16 = vsub.f32 1.0, %v1179_v58 }
 0x1c7   : > { %1196 = vst.msk [vmem:[#allocation2 + $0x18] sm:$0xff] %vm706_vm0, %v1011_v9  ;;  %v1066_v18 = vsel %vm1065_vm12, %v3718_v54, %v1062_v12  ;;  %vm1123_vm14 = vweird.f32 %v5145_v34  ;;  %v1187_v19 = vand.u32 2147483647, %v5150_v40  ;;  %v1189_v20 = vand.u32 2147483648, %v5150_v40 }
 0x1c8   : > { %v1071_v21 = vsel %vm1068_vm11, %v1070_v2, %v1066_v18  ;;  %v1122_v22 = vadd.f32 %v3720_v1, %v1121_v14  ;;  %v1181_v25 = vmul.f32 %v3722_v8, %v1180_v16  ;;  %vm1184_vm15 = vweird.f32 %v3722_v8  ;;  %vm1125_vm1 = vmor %vm1123_vm14, %vm1124_vm13 }
 0x1c9   : > { %1200 = vst.msk [vmem:[#allocation2 + $0x38] sm:$0xff] %vm706_vm0, %v1071_v21  ;;  %v1130_v26 = vor.u32 1.1754944e-38, %v1129_v13  ;;  %vm1128_vm2 = vcmp.eq.f32.partialorder %v1127_v15, 8.507059e+37  ;;  %vm1183_vm3 = vweird.f32 %v5150_v40  ;;  %v1190_v29 = vor.u32 1.1754944e-38, %v1189_v20 }
 0x1ca   : > { %v1126_v17 = vsel %vm1125_vm1, %v3720_v1, %v1122_v22  ;;  %v1182_v27 = vadd.f32 %v3722_v8, %v1181_v25  ;;  %vm1185_vm4 = vmor %vm1183_vm3, %vm1184_vm15  ;;  %vm1188_vm5 = vcmp.eq.f32.partialorder %v1187_v19, 8.507059e+37 }
 0x1cb   : > { %v1131_v28 = vsel %vm1128_vm2, %v1130_v26, %v1126_v17 }
 0x1cc   : > { %1204 = vst.msk [vmem:[#allocation2 + $0x58] sm:$0xff] %vm706_vm0, %v1131_v28  ;;  %v1186_v31 = vsel %vm1185_vm4, %v3722_v8, %v1182_v27 }
 0x1cd   : > { %v1191_v23 = vsel %vm1188_vm5, %v1190_v29, %v1186_v31 }
 0x1ce   : > { %1208 = vst.msk [vmem:[#allocation2 + $0x78] sm:$0xff] %vm706_vm0, %v1191_v23 }
 0x1cf PF: > { %p3198_p11 = scmp.ne.s32.totalorder %s3947_s29, 0 }
 0x1d0   : > { %s3199_s22 = sshll.u32 (!%p3198_p11), %s3943_s28, 8 }
 0x1d1   : > { %1211 = sbr.rel (%p3198_p11) target bundleno = 966 (0x3c6), region = 122  ;;  %s5411_s8 = scalar_lea.vmem (!%p3198_p11), [#allocation5], %s3199_s22 }
 0x1d6   : > { %v1259_v30 = vld [vmem:[#allocation2 + $0x78] sm:$0xff]  ;;  %v1257_v32 = vld [vmem:[#allocation2 + $0x68] sm:$0xff]  ;;  %v4092_v34 = vmov 0   ;;  %v1256_v35 = vld [vmem:[#allocation2 + $0x60] sm:$0xff]  ;;  %v1373_v47 = vlaneseq  ;;  %v1376_v49 = vstv %s3199_s22  ;;  %vm1678_vm7 = vcmask 7168  }
 0x1d7   : > { %v1255_v33 = vld [vmem:[#allocation2 + $0x58] sm:$0xff]  ;;  %3725 = vset.pattern.permute.xlu2 %v4092_v34  ;;  %3724 = vset.pattern.permute.xlu1 %v4092_v34  ;;  %v1258_v36 = vld [vmem:[#allocation2 + $0x70] sm:$0xff]  ;;  %v1252_v24 = vld [vmem:[#allocation2 + $0x40] sm:$0xff] }
 0x1d8   : > { %3723 = vset.pattern.permute.xlu0 %v4092_v34  ;;  %1327 = vperm.xlu1 %3724, %v1257_v32   ;;  %v1254_v37 = vld [vmem:[#allocation2 + $0x50] sm:$0xff]  ;;  %v1253_v38 = vld [vmem:[#allocation2 + $0x48] sm:$0xff]  ;;  %v1251_v39 = vld [vmem:[#allocation2 + $0x38] sm:$0xff]  ;;  %v1374_v48 = vand.u32 127, %v1373_v47 }
 0x1d9   : > { %1337 = vperm.xlu0 %3723, %v1259_v30   ;;  %1317 = vperm.xlu2 %3725, %v1255_v33   ;;  %v1249_v40 = vld [vmem:[#allocation2 + $0x28] sm:$0xff]  ;;  %v1250_v41 = vld [vmem:[#allocation2 + $0x30] sm:$0xff]  ;;  %v1248_v42 = vld [vmem:[#allocation2 + $0x20] sm:$0xff] }
 0x1da   : > { %v1246_v43 = vld [vmem:[#allocation2 + $0x10] sm:$0xff]  ;;  %v1247_v44 = vld [vmem:[#allocation2 + $0x18] sm:$0xff]  ;;  %v1245_v45 = vld [vmem:[#allocation2 + $0x8] sm:$0xff]  ;;  %v1375_v50 = vadd.s32 128, %v1374_v48  ;;  %v5195_v53 = vadd.s32 %v1376_v49, %v1374_v48 }
 0x1db   : > { %v1244_v46 = vld [vmem:[#allocation2] sm:$0xff]  ;;  %v1242_v55 = vld [vmem:[%s4785_s16 + $0xf0] sm:$0xff]  ;;  %v1243_v56 = vld [vmem:[%s4785_s16 + $0xf8] sm:$0xff] }
 0x1dc   : > { %v5197_v54 = vadd.s32 %v1376_v49, %v1375_v50  ;;  %vm1379_vm0 = vcmp.lt.s32.totalorder %v5195_v53, 784  ;;  %v1240_v63 = vld [vmem:[%s4785_s16 + $0xe0] sm:$0xff]  ;;  %v1241_v1 = vld [vmem:[%s4785_s16 + $0xe8] sm:$0xff]  ;;  %v1238_v52 = vld [vmem:[%s4785_s16 + $0xd0] sm:$0xff] }
 0x1dd   : > { %v1239_v0 = vld [vmem:[%s4785_s16 + $0xd8] sm:$0xff]  ;;  %v1236_v7 = vld [vmem:[%s4785_s16 + $0xc0] sm:$0xff]  ;;  %v1237_v9 = vld [vmem:[%s4785_s16 + $0xc8] sm:$0xff] }
 0x1de   : > { %vm1380_vm6 = vcmp.lt.s32.totalorder %v5197_v54, 784  ;;  %v1234_v10 = vld [vmem:[%s4785_s16 + $0xb0] sm:$0xff]  ;;  %v1235_v58 = vld [vmem:[%s4785_s16 + $0xb8] sm:$0xff]  ;;  %v1232_v2 = vld [vmem:[%s4785_s16 + $0xa0] sm:$0xff] }
 0x1df   : > { %v1233_v16 = vld [vmem:[%s4785_s16 + $0xa8] sm:$0xff]  ;;  %v1230_v21 = vld [vmem:[%s4785_s16 + $0x90] sm:$0xff]  ;;  %v1231_v25 = vld [vmem:[%s4785_s16 + $0x98] sm:$0xff] }
 0x1e0   : > { %1322 = vperm.xlu1 %3724, %v1256_v35   ;;  %v1228_v17 = vld [vmem:[%s4785_s16 + $0x80] sm:$0xff]  ;;  %v1229_v28 = vld [vmem:[%s4785_s16 + $0x88] sm:$0xff]  ;;  %v1226_v29 = vld [vmem:[%s4785_s16 + $0x70] sm:$0xff] }
 0x1e1   : > { %1332 = vperm.xlu0 %3723, %v1258_v36   ;;  %1312 = vperm.xlu2 %3725, %v1254_v37   ;;  %v1227_v23 = vld [vmem:[%s4785_s16 + $0x78] sm:$0xff]  ;;  %v1224_v33 = vld [vmem:[%s4785_s16 + $0x60] sm:$0xff]  ;;  %v1225_v34 = vld [vmem:[%s4785_s16 + $0x68] sm:$0xff] }
 0x1e2   : > { %v1218_v49 = vld [vmem:[%s4785_s16 + $0x30] sm:$0xff]  ;;  %v1219_v50 = vld [vmem:[%s4785_s16 + $0x38] sm:$0xff] }
 0x1e3   : > { %v1427_v53 = vld [vmem:[%s6677_s4 + $0x50] sm:$0xff] }
 0x1e4   : > { %v1419_v54 = vld [vmem:[%s6677_s4 + $0x10] sm:$0xff] }
 0x1e8   : > { %1302 = vperm.xlu1 %3724, %v1252_v24  }
 0x1e9   : > { %1307 = vperm.xlu0 %3723, %v1253_v38   ;;  %1297 = vperm.xlu2 %3725, %v1251_v39   ;;  %v1222_v39 = vld [vmem:[%s4785_s16 + $0x50] sm:$0xff] }
 0x1f0   : > { %1287 = vperm.xlu1 %3724, %v1249_v40  }
 0x1f1   : > { %1292 = vperm.xlu0 %3723, %v1250_v41   ;;  %1282 = vperm.xlu2 %3725, %v1248_v42   ;;  %v1223_v42 = vld [vmem:[%s4785_s16 + $0x58] sm:$0xff] }
 0x1f8   : > { %1272 = vperm.xlu1 %3724, %v1246_v43   ;;  %v1220_v43 = vld [vmem:[%s4785_s16 + $0x40] sm:$0xff] }
 0x1f9   : > { %1277 = vperm.xlu0 %3723, %v1247_v44   ;;  %1267 = vperm.xlu2 %3725, %v1245_v45   ;;  %v1221_v44 = vld [vmem:[%s4785_s16 + $0x48] sm:$0xff] }
 0x201   : > { %1262 = vperm.xlu0 %3723, %v1244_v46  }
 0x233   : > { %v1318_v51 = vpop.permute.xlu2 %1317 }
 0x234   : > { %v1362_v15 = vmul.f32 %v1318_v51, %v1234_v10  ;;  %v1363_v19 = vmul.f32 %v1318_v51, %v1235_v58  ;;  %v1425_v10 = vld [vmem:[%s6677_s4 + $0x40] sm:$0xff]  ;;  %v1418_v58 = vld [vmem:[%s6677_s4 + $0x8] sm:$0xff] }
 0x23b   : > { %v1313_v62 = vpop.permute.xlu2 %1312 }
 0x23c   : > { %v1360_v22 = vmul.f32 %v1313_v62, %v1232_v2  ;;  %v1361_v26 = vmul.f32 %v1313_v62, %v1233_v16  ;;  %v1214_v62 = vld [vmem:[%s4785_s16 + $0x10] sm:$0xff]  ;;  %v1428_v2 = vld [vmem:[%s6677_s4 + $0x58] sm:$0xff]  ;;  %v1422_v16 = vld [vmem:[%s6677_s4 + $0x28] sm:$0xff] }
 0x243   : > { %v1298_v13 = vpop.permute.xlu2 %1297 }
 0x244   : > { %v1354_v35 = vmul.f32 %v1298_v13, %v1226_v29  ;;  %v1355_v37 = vmul.f32 %v1298_v13, %v1227_v23  ;;  %v1421_v13 = vld [vmem:[%s6677_s4 + $0x20] sm:$0xff] }
 0x24a   : > { %v1328_v57 = vpop.permute.xlu1 %1327 }
 0x24b   : > { %v1338_v59 = vpop.permute.xlu0 %1337  ;;  %v1366_v8 = vmul.f32 %v1328_v57, %v1238_v52  ;;  %v1367_v11 = vmul.f32 %v1328_v57, %v1239_v0  ;;  %v1283_v24 = vpop.permute.xlu2 %1282  ;;  %v1212_v0 = vld [vmem:[%s4785_s16] sm:$0xff] }
 0x24c   : > { %v1370_v60 = vmul.f32 %v1338_v59, %v1242_v55  ;;  %v1371_v61 = vmul.f32 %v1338_v59, %v1243_v56  ;;  %v1348_v47 = vmul.f32 %v1283_v24, %v1220_v43  ;;  %v1349_v48 = vmul.f32 %v1283_v24, %v1221_v44  ;;  %v1216_v56 = vld [vmem:[%s4785_s16 + $0x20] sm:$0xff] }
 0x24e   : > { %3200 = vmatpush.msk.msra.mxu0 %vm1379_vm0, %v1370_v60  ;;  %3292 = vmatpush.msk.msra.mxu2 %vm1379_vm0, %v1370_v60  ;;  %v1217_v60 = vld [vmem:[%s4785_s16 + $0x28] sm:$0xff] }
 0x24f   : > { %3216 = vmatpush.msk.msra.mxu1 %vm1380_vm6, %v1371_v61  ;;  %3308 = vmatpush.msk.msra.mxu3 %vm1380_vm6, %v1371_v61 }
 0x252   : > { %v1323_v3 = vpop.permute.xlu1 %1322 }
 0x253   : > { %v1333_v4 = vpop.permute.xlu0 %1332  ;;  %v1364_v12 = vmul.f32 %v1323_v3, %v1236_v7  ;;  %v1365_v14 = vmul.f32 %v1323_v3, %v1237_v9  ;;  %v1268_v61 = vpop.permute.xlu2 %1267  ;;  %v1417_v9 = vld [vmem:[%s6677_s4] sm:$0xff] }
 0x254   : > { %v1368_v5 = vmul.f32 %v1333_v4, %v1240_v63  ;;  %v1369_v6 = vmul.f32 %v1333_v4, %v1241_v1  ;;  %v1215_v63 = vld [vmem:[%s4785_s16 + $0x18] sm:$0xff]  ;;  %v1342_v52 = vmul.f32 %v1268_v61, %v1214_v62 }
 0x255   : > { %v1343_v4 = vmul.f32 %v1268_v61, %v1215_v63 }
 0x256   : > { %3201 = vmatpush.msk.msra.mxu0 %vm1379_vm0, %v1368_v5  ;;  %3293 = vmatpush.msk.msra.mxu2 %vm1379_vm0, %v1368_v5  ;;  %v1213_v5 = vld [vmem:[%s4785_s16 + $0x8] sm:$0xff] }
 0x257   : > { %3217 = vmatpush.msk.msra.mxu1 %vm1380_vm6, %v1369_v6  ;;  %3309 = vmatpush.msk.msra.mxu3 %vm1380_vm6, %v1369_v6 }
 0x258   : > { %3202 = vmatpush.msk.msra.mxu0 %vm1379_vm0, %v1366_v8  ;;  %3294 = vmatpush.msk.msra.mxu2 %vm1379_vm0, %v1366_v8 }
 0x259   : > { %3218 = vmatpush.msk.msra.mxu1 %vm1380_vm6, %v1367_v11  ;;  %3310 = vmatpush.msk.msra.mxu3 %vm1380_vm6, %v1367_v11  ;;  %v1426_v11 = vld [vmem:[%s6677_s4 + $0x48] sm:$0xff] }
 0x25a   : > { %3203 = vmatpush.msk.msra.mxu0 %vm1379_vm0, %v1364_v12  ;;  %3295 = vmatpush.msk.msra.mxu2 %vm1379_vm0, %v1364_v12  ;;  %v1303_v18 = vpop.permute.xlu1 %1302  ;;  %v1420_v12 = vld [vmem:[%s6677_s4 + $0x18] sm:$0xff] }
 0x25b   : > { %3219 = vmatpush.msk.msra.mxu1 %vm1380_vm6, %v1365_v14  ;;  %3311 = vmatpush.msk.msra.mxu3 %vm1380_vm6, %v1365_v14  ;;  %v1308_v20 = vpop.permute.xlu0 %1307  ;;  %v1356_v30 = vmul.f32 %v1303_v18, %v1228_v17  ;;  %v1357_v32 = vmul.f32 %v1303_v18, %v1229_v28  ;;  %v1429_v14 = vld [vmem:[%s6677_s4 + $0x60] sm:$0xff]  ;;  %v1431_v18 = vld [vmem:[%s6677_s4 + $0x70] sm:$0xff] }
 0x25c   : > { %3204 = vmatpush.msk.msra.mxu0 %vm1379_vm0, %v1362_v15  ;;  %3296 = vmatpush.msk.msra.mxu2 %vm1379_vm0, %v1362_v15  ;;  %v1358_v27 = vmul.f32 %v1308_v20, %v1230_v21  ;;  %v1359_v31 = vmul.f32 %v1308_v20, %v1231_v25  ;;  %v1430_v15 = vld [vmem:[%s6677_s4 + $0x68] sm:$0xff]  ;;  %v1432_v20 = vld [vmem:[%s6677_s4 + $0x78] sm:$0xff] }
 0x25d   : > { %3220 = vmatpush.msk.msra.mxu1 %vm1380_vm6, %v1363_v19  ;;  %3312 = vmatpush.msk.msra.mxu3 %vm1380_vm6, %v1363_v19  ;;  %v1423_v19 = vld [vmem:[%s6677_s4 + $0x30] sm:$0xff]  ;;  %v1424_v21 = vld [vmem:[%s6677_s4 + $0x38] sm:$0xff] }
 0x25e   : > { %3205 = vmatpush.msk.msra.mxu0 %vm1379_vm0, %v1360_v22  ;;  %3297 = vmatpush.msk.msra.mxu2 %vm1379_vm0, %v1360_v22 }
 0x25f   : > { %3221 = vmatpush.msk.msra.mxu1 %vm1380_vm6, %v1361_v26  ;;  %3313 = vmatpush.msk.msra.mxu3 %vm1380_vm6, %v1361_v26 }
 0x260   : > { %3206 = vmatpush.msk.msra.mxu0 %vm1379_vm0, %v1358_v27  ;;  %3298 = vmatpush.msk.msra.mxu2 %vm1379_vm0, %v1358_v27 }
 0x261   : > { %3222 = vmatpush.msk.msra.mxu1 %vm1380_vm6, %v1359_v31  ;;  %3314 = vmatpush.msk.msra.mxu3 %vm1380_vm6, %v1359_v31 }
 0x262   : > { %3207 = vmatpush.msk.msra.mxu0 %vm1379_vm0, %v1356_v30  ;;  %3299 = vmatpush.msk.msra.mxu2 %vm1379_vm0, %v1356_v30  ;;  %v1288_v36 = vpop.permute.xlu1 %1287 }
 0x263   : > { %3223 = vmatpush.msk.msra.mxu1 %vm1380_vm6, %v1357_v32  ;;  %3315 = vmatpush.msk.msra.mxu3 %vm1380_vm6, %v1357_v32  ;;  %v1293_v38 = vpop.permute.xlu0 %1292  ;;  %v1350_v45 = vmul.f32 %v1288_v36, %v1222_v39  ;;  %v1351_v46 = vmul.f32 %v1288_v36, %v1223_v42 }
 0x264   : > { %v1352_v40 = vmul.f32 %v1293_v38, %v1224_v33  ;;  %v1353_v41 = vmul.f32 %v1293_v38, %v1225_v34  ;;  %3208 = vmatpush.msk.msra.mxu0 %vm1379_vm0, %v1354_v35  ;;  %3300 = vmatpush.msk.msra.mxu2 %vm1379_vm0, %v1354_v35 }
 0x265   : > { %3224 = vmatpush.msk.msra.mxu1 %vm1380_vm6, %v1355_v37  ;;  %3316 = vmatpush.msk.msra.mxu3 %vm1380_vm6, %v1355_v37 }
 0x266   : > { %3209 = vmatpush.msk.msra.mxu0 %vm1379_vm0, %v1352_v40  ;;  %3301 = vmatpush.msk.msra.mxu2 %vm1379_vm0, %v1352_v40 }
 0x267   : > { %3225 = vmatpush.msk.msra.mxu1 %vm1380_vm6, %v1353_v41  ;;  %3317 = vmatpush.msk.msra.mxu3 %vm1380_vm6, %v1353_v41 }
 0x268   : > { %3210 = vmatpush.msk.msra.mxu0 %vm1379_vm0, %v1350_v45  ;;  %3302 = vmatpush.msk.msra.mxu2 %vm1379_vm0, %v1350_v45 }
 0x269   : > { %3226 = vmatpush.msk.msra.mxu1 %vm1380_vm6, %v1351_v46  ;;  %3318 = vmatpush.msk.msra.mxu3 %vm1380_vm6, %v1351_v46 }
 0x26a   : > { %3211 = vmatpush.msk.msra.mxu0 %vm1379_vm0, %v1348_v47  ;;  %3303 = vmatpush.msk.msra.mxu2 %vm1379_vm0, %v1348_v47  ;;  %v1273_v55 = vpop.permute.xlu1 %1272 }
 0x26b   : > { %3227 = vmatpush.msk.msra.mxu1 %vm1380_vm6, %v1349_v48  ;;  %3319 = vmatpush.msk.msra.mxu3 %vm1380_vm6, %v1349_v48  ;;  %v1278_v51 = vpop.permute.xlu0 %1277  ;;  %v1344_v1 = vmul.f32 %v1273_v55, %v1216_v56  ;;  %v1345_v3 = vmul.f32 %v1273_v55, %v1217_v60 }
 0x26c   : > { %v1346_v57 = vmul.f32 %v1278_v51, %v1218_v49  ;;  %v1347_v59 = vmul.f32 %v1278_v51, %v1219_v50 }
 0x26e   : > { %3212 = vmatpush.msk.msra.mxu0 %vm1379_vm0, %v1346_v57  ;;  %3304 = vmatpush.msk.msra.mxu2 %vm1379_vm0, %v1346_v57 }
 0x26f   : > { %3228 = vmatpush.msk.msra.mxu1 %vm1380_vm6, %v1347_v59  ;;  %3320 = vmatpush.msk.msra.mxu3 %vm1380_vm6, %v1347_v59 }
 0x270   : > { %3213 = vmatpush.msk.msra.mxu0 %vm1379_vm0, %v1344_v1  ;;  %3305 = vmatpush.msk.msra.mxu2 %vm1379_vm0, %v1344_v1 }
 0x271   : > { %3229 = vmatpush.msk.msra.mxu1 %vm1380_vm6, %v1345_v3  ;;  %3321 = vmatpush.msk.msra.mxu3 %vm1380_vm6, %v1345_v3 }
 0x272   : > { %3214 = vmatpush.msk.msra.mxu0 %vm1379_vm0, %v1342_v52  ;;  %3306 = vmatpush.msk.msra.mxu2 %vm1379_vm0, %v1342_v52 }
 0x273   : > { %3230 = vmatpush.msk.msra.mxu1 %vm1380_vm6, %v1343_v4  ;;  %3322 = vmatpush.msk.msra.mxu3 %vm1380_vm6, %v1343_v4  ;;  %v1263_v6 = vpop.permute.xlu0 %1262 }
 0x274   : > { %v1340_v7 = vmul.f32 %v1263_v6, %v1212_v0  ;;  %v1341_v8 = vmul.f32 %v1263_v6, %v1213_v5 }
 0x276   : > { %3215 = vmatpush.msk.msra.mxu0 %vm1379_vm0, %v1340_v7  ;;  %3307 = vmatpush.msk.msra.mxu2 %vm1379_vm0, %v1340_v7 }
 0x277   : > { %3231 = vmatpush.msk.msra.mxu1 %vm1380_vm6, %v1341_v8  ;;  %3323 = vmatpush.msk.msra.mxu3 %vm1380_vm6, %v1341_v8 }
 0x278   : > { %1449 = vmatmul.f32.vlgmr.msra.gmra.mxu0 %v1417_v9  ;;  %1473 = vmatmul.f32.vlgmr.msra.gmra.mxu2 %v1425_v10 }
 0x279   : > { %1514 = vmatmul.f32.vlgmr.msra.gmra.mxu1 %v1417_v9  ;;  %1538 = vmatmul.f32.vlgmr.msra.gmra.mxu3 %v1425_v10 }
 0x280   : > { %1476 = vmatmul.f32.gmra.mxu2 %v1426_v11  ;;  %1452 = vmatmul.f32.gmra.mxu0 %v1418_v58 }
 0x281   : > { %1541 = vmatmul.f32.gmra.mxu3 %v1426_v11  ;;  %1517 = vmatmul.f32.gmra.mxu1 %v1418_v58 }
 0x288   : > { %1479 = vmatmul.f32.gmra.mxu2 %v1427_v53  ;;  %1455 = vmatmul.f32.gmra.mxu0 %v1419_v54 }
 0x289   : > { %1544 = vmatmul.f32.gmra.mxu3 %v1427_v53  ;;  %1520 = vmatmul.f32.gmra.mxu1 %v1419_v54 }
 0x290   : > { %1458 = vmatmul.f32.gmra.mxu0 %v1420_v12  ;;  %1482 = vmatmul.f32.gmra.mxu2 %v1428_v2 }
 0x291   : > { %1523 = vmatmul.f32.gmra.mxu1 %v1420_v12  ;;  %1547 = vmatmul.f32.gmra.mxu3 %v1428_v2 }
 0x298   : > { %1461 = vmatmul.f32.gmra.mxu0 %v1421_v13  ;;  %1485 = vmatmul.f32.gmra.mxu2 %v1429_v14 }
 0x299   : > { %1526 = vmatmul.f32.gmra.mxu1 %v1421_v13  ;;  %1550 = vmatmul.f32.gmra.mxu3 %v1429_v14 }
 0x2a0   : > { %1488 = vmatmul.f32.gmra.mxu2 %v1430_v15  ;;  %1464 = vmatmul.f32.gmra.mxu0 %v1422_v16 }
 0x2a1   : > { %1553 = vmatmul.f32.gmra.mxu3 %v1430_v15  ;;  %1529 = vmatmul.f32.gmra.mxu1 %v1422_v16 }
 0x2a8   : > { %1491 = vmatmul.f32.gmra.mxu2 %v1431_v18  ;;  %1467 = vmatmul.f32.gmra.mxu0 %v1423_v19 }
 0x2a9   : > { %1556 = vmatmul.f32.gmra.mxu3 %v1431_v18  ;;  %1532 = vmatmul.f32.gmra.mxu1 %v1423_v19 }
 0x2b0   : > { %1494 = vmatmul.f32.gmra.mxu2 %v1432_v20  ;;  %1470 = vmatmul.f32.gmra.mxu0 %v1424_v21 }
 0x2b1   : > { %1559 = vmatmul.f32.gmra.mxu3 %v1432_v20  ;;  %1535 = vmatmul.f32.gmra.mxu1 %v1424_v21 }
 0x2f5   : > { %v1450_v22 = vpop.f32.mrf.mxu0 }
 0x2f6   : > { %1566 = vst [vmem:[%s5411_s8] sm:$0xff] %v1450_v22  ;;  %v1515_v25 = vpop.f32.mrf.mxu1  ;;  %v1711_v17 = vmul.f32 %v1450_v22, %v1450_v22 }
 0x2f7   : > { %1567 = vst [vmem:[%s5411_s8 + $0x8] sm:$0xff] %v1515_v25  ;;  %v1614_v26 = vadd.f32 %v1515_v25, %v1450_v22  ;;  %v1712_v27 = vmul.f32 %v1515_v25, %v1515_v25 }
 0x2f9   : > { %1615 = vadd.xlane.f32.xlu1 %v1614_v26  ;;  %v1743_v32 = vadd.f32 %v1712_v27, %v1711_v17 }
 0x2fb   : > { %v1474_v28 = vpop.f32.mrf.mxu2 }
 0x2fc   : > { %1582 = vst [vmem:[%s5411_s8 + $0x80] sm:$0xff] %v1474_v28  ;;  %v1539_v29 = vpop.f32.mrf.mxu3  ;;  %v1727_v31 = vmul.f32 %v1474_v28, %v1474_v28 }
 0x2fd   : > { %1583 = vst [vmem:[%s5411_s8 + $0x88] sm:$0xff] %v1539_v29  ;;  %v1638_v23 = vadd.f32 %v1539_v29, %v1474_v28  ;;  %v1728_v30 = vmul.f32 %v1539_v29, %v1539_v29  ;;  %v1453_v33 = vpop.f32.mrf.mxu0 }
 0x2fe   : > { %1568 = vst [vmem:[%s5411_s8 + $0x10] sm:$0xff] %v1453_v33  ;;  %v1518_v34 = vpop.f32.mrf.mxu1  ;;  %v1713_v44 = vmul.f32 %v1453_v33, %v1453_v33 }
 0x2ff   : > { %1639 = vadd.xlane.f32.xlu2 %v1638_v23  ;;  %v1767_v35 = vadd.f32 %v1728_v30, %v1727_v31  ;;  %1569 = vst [vmem:[%s5411_s8 + $0x18] sm:$0xff] %v1518_v34  ;;  %v1617_v37 = vadd.f32 %v1518_v34, %v1453_v33  ;;  %v1714_v45 = vmul.f32 %v1518_v34, %v1518_v34 }
 0x301   : > { %1768 = vadd.xlane.f32.xlu0 %v1767_v35  ;;  %1744 = vadd.xlane.f32.xlu1 %v1743_v32  ;;  %v1746_v48 = vadd.f32 %v1714_v45, %v1713_v44 }
 0x303   : > { %v1477_v36 = vpop.f32.mrf.mxu2 }
 0x304   : > { %1584 = vst [vmem:[%s5411_s8 + $0x90] sm:$0xff] %v1477_v36  ;;  %v1542_v24 = vpop.f32.mrf.mxu3  ;;  %v1729_v38 = vmul.f32 %v1477_v36, %v1477_v36 }
 0x305   : > { %1585 = vst [vmem:[%s5411_s8 + $0x98] sm:$0xff] %v1542_v24  ;;  %v1641_v39 = vadd.f32 %v1542_v24, %v1477_v36  ;;  %v1730_v40 = vmul.f32 %v1542_v24, %v1542_v24  ;;  %v1456_v41 = vpop.f32.mrf.mxu0 }
 0x306   : > { %1570 = vst [vmem:[%s5411_s8 + $0x20] sm:$0xff] %v1456_v41  ;;  %v1521_v42 = vpop.f32.mrf.mxu1  ;;  %v1715_v60 = vmul.f32 %v1456_v41, %v1456_v41 }
 0x307   : > { %1618 = vadd.xlane.f32.xlu2 %v1617_v37  ;;  %v1770_v43 = vadd.f32 %v1730_v40, %v1729_v38  ;;  %1571 = vst [vmem:[%s5411_s8 + $0x28] sm:$0xff] %v1521_v42  ;;  %v1620_v55 = vadd.f32 %v1521_v42, %v1456_v41  ;;  %v1716_v61 = vmul.f32 %v1521_v42, %v1521_v42 }
 0x309   : > { %1642 = vadd.xlane.f32.xlu0 %v1641_v39  ;;  %1771 = vadd.xlane.f32.xlu1 %v1770_v43  ;;  %v1749_v4 = vadd.f32 %v1716_v61, %v1715_v60  ;;  %v1606_v60 = vld [vmem:[#allocation3 + $0x40] sm:$0xff] }
 0x30b   : > { %v1480_v46 = vpop.f32.mrf.mxu2 }
 0x30c   : > { %1586 = vst [vmem:[%s5411_s8 + $0xa0] sm:$0xff] %v1480_v46  ;;  %v1545_v47 = vpop.f32.mrf.mxu3  ;;  %v1731_v0 = vmul.f32 %v1480_v46, %v1480_v46 }
 0x30d   : > { %1587 = vst [vmem:[%s5411_s8 + $0xa8] sm:$0xff] %v1545_v47  ;;  %v1644_v49 = vadd.f32 %v1545_v47, %v1480_v46  ;;  %v1459_v50 = vpop.f32.mrf.mxu0  ;;  %v1732_v5 = vmul.f32 %v1545_v47, %v1545_v47 }
 0x30e   : > { %1572 = vst [vmem:[%s5411_s8 + $0x30] sm:$0xff] %v1459_v50  ;;  %v1524_v51 = vpop.f32.mrf.mxu1  ;;  %v1717_v56 = vmul.f32 %v1459_v50, %v1459_v50 }
 0x30f   : > { %1747 = vadd.xlane.f32.xlu2 %v1746_v48  ;;  %1573 = vst [vmem:[%s5411_s8 + $0x38] sm:$0xff] %v1524_v51  ;;  %v1718_v57 = vmul.f32 %v1524_v51, %v1524_v51  ;;  %v1623_v59 = vadd.f32 %v1524_v51, %v1459_v50  ;;  %v1773_v10 = vadd.f32 %v1732_v5, %v1731_v0  ;;  %v1599_v5 = vld [vmem:[#allocation3 + $0x8] sm:$0xff] }
 0x311   : > { %1645 = vadd.xlane.f32.xlu1 %v1644_v49  ;;  %1621 = vadd.xlane.f32.xlu0 %v1620_v55  ;;  %v1752_v1 = vadd.f32 %v1718_v57, %v1717_v56  ;;  %v1598_v56 = vld [vmem:[#allocation3] sm:$0xff] }
 0x313   : > { %v1483_v62 = vpop.f32.mrf.mxu2 }
 0x314   : > { %1588 = vst [vmem:[%s5411_s8 + $0xb0] sm:$0xff] %v1483_v62  ;;  %v1548_v63 = vpop.f32.mrf.mxu3  ;;  %v1733_v6 = vmul.f32 %v1483_v62, %v1483_v62 }
 0x315   : > { %1589 = vst [vmem:[%s5411_s8 + $0xb8] sm:$0xff] %v1548_v63  ;;  %v1462_v3 = vpop.f32.mrf.mxu0  ;;  %v1734_v7 = vmul.f32 %v1548_v63, %v1548_v63  ;;  %v1647_v15 = vadd.f32 %v1548_v63, %v1483_v62  ;;  %v1703_v62 = vld [vmem:[#allocation4 + $0x40] sm:$0xff] }
 0x316   : > { %1574 = vst [vmem:[%s5411_s8 + $0x40] sm:$0xff] %v1462_v3  ;;  %v1527_v52 = vpop.f32.mrf.mxu1  ;;  %v1719_v21 = vmul.f32 %v1462_v3, %v1462_v3  ;;  %v1695_v63 = vld [vmem:[#allocation4] sm:$0xff] }
 0x317   : > { %1624 = vadd.xlane.f32.xlu2 %v1623_v59  ;;  %1575 = vst [vmem:[%s5411_s8 + $0x48] sm:$0xff] %v1527_v52  ;;  %v1776_v11 = vadd.f32 %v1734_v7, %v1733_v6  ;;  %v1626_v58 = vadd.f32 %v1527_v52, %v1462_v3  ;;  %v1720_v22 = vmul.f32 %v1527_v52, %v1527_v52  ;;  %v1607_v7 = vld [vmem:[#allocation3 + $0x48] sm:$0xff] }
 0x319   : > { %1750 = vadd.xlane.f32.xlu0 %v1749_v4  ;;  %1753 = vadd.xlane.f32.xlu1 %v1752_v1  ;;  %v1755_v28 = vadd.f32 %v1720_v22, %v1719_v21  ;;  %v1697_v22 = vld [vmem:[#allocation4 + $0x10] sm:$0xff] }
 0x31b   : > { %v1486_v8 = vpop.f32.mrf.mxu2 }
 0x31c   : > { %1590 = vst [vmem:[%s5411_s8 + $0xc0] sm:$0xff] %v1486_v8  ;;  %v1551_v9 = vpop.f32.mrf.mxu3  ;;  %v1735_v12 = vmul.f32 %v1486_v8, %v1486_v8 }
 0x31d   : > { %1591 = vst [vmem:[%s5411_s8 + $0xc8] sm:$0xff] %v1551_v9  ;;  %v1465_v53 = vpop.f32.mrf.mxu0  ;;  %v1736_v2 = vmul.f32 %v1551_v9, %v1551_v9  ;;  %v1650_v16 = vadd.f32 %v1551_v9, %v1486_v8  ;;  %v1704_v8 = vld [vmem:[#allocation4 + $0x48] sm:$0xff] }
 0x31e   : > { %1576 = vst [vmem:[%s5411_s8 + $0x50] sm:$0xff] %v1465_v53  ;;  %v1530_v54 = vpop.f32.mrf.mxu1  ;;  %v1721_v25 = vmul.f32 %v1465_v53, %v1465_v53 }
 0x31f   : > { %1774 = vadd.xlane.f32.xlu2 %v1773_v10  ;;  %1577 = vst [vmem:[%s5411_s8 + $0x58] sm:$0xff] %v1530_v54  ;;  %v1779_v18 = vadd.f32 %v1736_v2, %v1735_v12  ;;  %v1722_v26 = vmul.f32 %v1530_v54, %v1530_v54  ;;  %v1629_v36 = vadd.f32 %v1530_v54, %v1465_v53  ;;  %v1696_v54 = vld [vmem:[#allocation4 + $0x8] sm:$0xff]  ;;  %v1608_v2 = vld [vmem:[#allocation3 + $0x50] sm:$0xff] }
 0x321   : > { %1777 = vadd.xlane.f32.xlu0 %v1776_v11  ;;  %1627 = vadd.xlane.f32.xlu1 %v1626_v58  ;;  %v1758_v31 = vadd.f32 %v1722_v26, %v1721_v25  ;;  %v1698_v25 = vld [vmem:[#allocation4 + $0x18] sm:$0xff] }
 0x323   : > { %v1489_v13 = vpop.f32.mrf.mxu2 }
 0x324   : > { %1592 = vst [vmem:[%s5411_s8 + $0xd0] sm:$0xff] %v1489_v13  ;;  %v1554_v14 = vpop.f32.mrf.mxu3  ;;  %v1737_v50 = vmul.f32 %v1489_v13, %v1489_v13 }
 0x325   : > { %1593 = vst [vmem:[%s5411_s8 + $0xd8] sm:$0xff] %v1554_v14  ;;  %v1468_v19 = vpop.f32.mrf.mxu0  ;;  %v1653_v29 = vadd.f32 %v1554_v14, %v1489_v13  ;;  %v1738_v51 = vmul.f32 %v1554_v14, %v1554_v14  ;;  %v1600_v13 = vld [vmem:[#allocation3 + $0x10] sm:$0xff] }
 0x326   : > { %1578 = vst [vmem:[%s5411_s8 + $0x60] sm:$0xff] %v1468_v19  ;;  %v1533_v20 = vpop.f32.mrf.mxu1  ;;  %v1723_v32 = vmul.f32 %v1468_v19, %v1468_v19 }
 0x327   : > { %1648 = vadd.xlane.f32.xlu2 %v1647_v15  ;;  %1579 = vst [vmem:[%s5411_s8 + $0x68] sm:$0xff] %v1533_v20  ;;  %v1724_v33 = vmul.f32 %v1533_v20, %v1533_v20  ;;  %v1632_v24 = vadd.f32 %v1533_v20, %v1468_v19  ;;  %v1782_v55 = vadd.f32 %v1738_v51, %v1737_v50  ;;  %v1601_v20 = vld [vmem:[#allocation3 + $0x18] sm:$0xff] }
 0x329   : > { %1651 = vadd.xlane.f32.xlu0 %v1650_v16  ;;  %1780 = vadd.xlane.f32.xlu1 %v1779_v18  ;;  %v1761_v37 = vadd.f32 %v1724_v33, %v1723_v32  ;;  %v1602_v32 = vld [vmem:[#allocation3 + $0x20] sm:$0xff] }
 0x32b   : > { %v1492_v17 = vpop.f32.mrf.mxu2 }
 0x32c   : > { %1594 = vst [vmem:[%s5411_s8 + $0xe0] sm:$0xff] %v1492_v17  ;;  %v1557_v27 = vpop.f32.mrf.mxu3  ;;  %v1739_v46 = vmul.f32 %v1492_v17, %v1492_v17 }
 0x32d   : > { %1595 = vst [vmem:[%s5411_s8 + $0xe8] sm:$0xff] %v1557_v27  ;;  %v1471_v23 = vpop.f32.mrf.mxu0  ;;  %v1656_v38 = vadd.f32 %v1557_v27, %v1492_v17  ;;  %v1740_v47 = vmul.f32 %v1557_v27, %v1557_v27 }
 0x32e   : > { %1580 = vst [vmem:[%s5411_s8 + $0x70] sm:$0xff] %v1471_v23  ;;  %v1536_v30 = vpop.f32.mrf.mxu1  ;;  %v1725_v41 = vmul.f32 %v1471_v23, %v1471_v23 }
 0x32f   : > { %1756 = vadd.xlane.f32.xlu2 %v1755_v28  ;;  %1581 = vst [vmem:[%s5411_s8 + $0x78] sm:$0xff] %v1536_v30  ;;  %v1635_v40 = vadd.f32 %v1536_v30, %v1471_v23  ;;  %v1726_v42 = vmul.f32 %v1536_v30, %v1536_v30  ;;  %v1785_v49 = vadd.f32 %v1740_v47, %v1739_v46  ;;  %v1706_v30 = vld [vmem:[#allocation4 + $0x58] sm:$0xff]  ;;  %v1699_v46 = vld [vmem:[#allocation4 + $0x20] sm:$0xff] }
 0x331   : > { %1654 = vadd.xlane.f32.xlu1 %v1653_v29  ;;  %1759 = vadd.xlane.f32.xlu0 %v1758_v31  ;;  %v1764_v45 = vadd.f32 %v1726_v42, %v1725_v41  ;;  %v1705_v31 = vld [vmem:[#allocation4 + $0x50] sm:$0xff] }
 0x333   : > { %v1495_v34 = vpop.f32.mrf.mxu2 }
 0x334   : > { %1596 = vst [vmem:[%s5411_s8 + $0xf0] sm:$0xff] %v1495_v34  ;;  %v1560_v35 = vpop.f32.mrf.mxu3  ;;  %v1741_v43 = vmul.f32 %v1495_v34, %v1495_v34 }
 0x335   : > { %1597 = vst [vmem:[%s5411_s8 + $0xf8] sm:$0xff] %v1560_v35  ;;  %v1659_v39 = vadd.f32 %v1560_v35, %v1495_v34  ;;  %v1742_v44 = vmul.f32 %v1560_v35, %v1560_v35 }
 0x337   : > { %1630 = vadd.xlane.f32.xlu2 %v1629_v36  ;;  %v1788_v48 = vadd.f32 %v1742_v44, %v1741_v43 }
 0x339   : > { %1762 = vadd.xlane.f32.xlu1 %v1761_v37  ;;  %1633 = vadd.xlane.f32.xlu0 %v1632_v24  ;;  %v1609_v24 = vld [vmem:[#allocation3 + $0x58] sm:$0xff] }
 0x33f   : > { %1657 = vadd.xlane.f32.xlu2 %v1656_v38 }
 0x341   : > { %1660 = vadd.xlane.f32.xlu0 %v1659_v39  ;;  %1636 = vadd.xlane.f32.xlu1 %v1635_v40  ;;  %v1610_v39 = vld [vmem:[#allocation3 + $0x60] sm:$0xff] }
 0x342   : > { %v1707_v40 = vld [vmem:[#allocation4 + $0x60] sm:$0xff] }
 0x347   : > { %1765 = vadd.xlane.f32.xlu2 %v1764_v45 }
 0x349   : > { %1786 = vadd.xlane.f32.xlu0 %v1785_v49  ;;  %1789 = vadd.xlane.f32.xlu1 %v1788_v48  ;;  %v1611_v48 = vld [vmem:[#allocation3 + $0x68] sm:$0xff] }
 0x34a   : > { %v1700_v49 = vld [vmem:[#allocation4 + $0x28] sm:$0xff] }
 0x34f   : > { %1783 = vadd.xlane.f32.xlu2 %v1782_v55 }
 0x36c   : > { %v1616_v57 = vpop.xlane.xlu1 %1615 }
 0x36d   : > { %v1662_v59 = vadd.f32 %v1616_v57, %v1598_v56 }
 0x36f   : > { %1679 = vst.msk [vmem:[#allocation3] sm:$0xff] %vm1678_vm7, %v1662_v59  ;;  %v1603_v59 = vld [vmem:[#allocation3 + $0x28] sm:$0xff] }
 0x372   : > { %v1640_v61 = vpop.xlane.xlu2 %1639 }
 0x373   : > { %v1670_v1 = vadd.f32 %v1640_v61, %v1606_v60  ;;  %v1701_v61 = vld [vmem:[#allocation4 + $0x30] sm:$0xff] }
 0x374   : > { %v1769_v3 = vpop.xlane.xlu0 %1768  ;;  %v1745_v52 = vpop.xlane.xlu1 %1744 }
 0x375   : > { %1687 = vst.msk [vmem:[#allocation3 + $0x40] sm:$0xff] %vm1678_vm7, %v1670_v1  ;;  %v1799_v4 = vadd.f32 %v1769_v3, %v1703_v62  ;;  %v1791_v0 = vadd.f32 %v1745_v52, %v1695_v63  ;;  %v1604_v62 = vld [vmem:[#allocation3 + $0x30] sm:$0xff] }
 0x377   : > { %1815 = vst.msk [vmem:[#allocation4 + $0x40] sm:$0xff] %vm1678_vm7, %v1799_v4 }
 0x378   : > { %1807 = vst.msk [vmem:[#allocation4] sm:$0xff] %vm1678_vm7, %v1791_v0  ;;  %v1612_v0 = vld [vmem:[#allocation3 + $0x70] sm:$0xff] }
 0x37a   : > { %v1619_v6 = vpop.xlane.xlu2 %1618 }
 0x37b   : > { %v1663_v9 = vadd.f32 %v1619_v6, %v1599_v5  ;;  %v1613_v6 = vld [vmem:[#allocation3 + $0x78] sm:$0xff] }
 0x37c   : > { %v1643_v10 = vpop.xlane.xlu0 %1642  ;;  %v1772_v11 = vpop.xlane.xlu1 %1771 }
 0x37d   : > { %1680 = vst.msk [vmem:[#allocation3 + $0x8] sm:$0xff] %vm1678_vm7, %v1663_v9  ;;  %v1671_v58 = vadd.f32 %v1643_v10, %v1607_v7  ;;  %v1800_v53 = vadd.f32 %v1772_v11, %v1704_v8  ;;  %v1605_v7 = vld [vmem:[#allocation3 + $0x38] sm:$0xff] }
 0x37f   : > { %1688 = vst.msk [vmem:[#allocation3 + $0x48] sm:$0xff] %vm1678_vm7, %v1671_v58 }
 0x380   : > { %1816 = vst.msk [vmem:[#allocation4 + $0x48] sm:$0xff] %vm1678_vm7, %v1800_v53  ;;  %v1702_v53 = vld [vmem:[#allocation4 + $0x38] sm:$0xff] }
 0x382   : > { %v1748_v12 = vpop.xlane.xlu2 %1747 }
 0x383   : > { %v1792_v14 = vadd.f32 %v1748_v12, %v1696_v54  ;;  %v1709_v12 = vld [vmem:[#allocation4 + $0x70] sm:$0xff] }
 0x384   : > { %v1646_v15 = vpop.xlane.xlu1 %1645  ;;  %v1622_v16 = vpop.xlane.xlu0 %1621 }
 0x385   : > { %1808 = vst.msk [vmem:[#allocation4 + $0x8] sm:$0xff] %vm1678_vm7, %v1792_v14  ;;  %v1672_v18 = vadd.f32 %v1646_v15, %v1608_v2  ;;  %v1664_v19 = vadd.f32 %v1622_v16, %v1600_v13  ;;  %v1710_v2 = vld [vmem:[#allocation4 + $0x78] sm:$0xff] }
 0x387   : > { %1689 = vst.msk [vmem:[#allocation3 + $0x50] sm:$0xff] %vm1678_vm7, %v1672_v18 }
 0x388   : > { %1681 = vst.msk [vmem:[#allocation3 + $0x10] sm:$0xff] %vm1678_vm7, %v1664_v19  ;;  %v1708_v19 = vld [vmem:[#allocation4 + $0x68] sm:$0xff] }
 0x38a   : > { %v1625_v21 = vpop.xlane.xlu2 %1624 }
 0x38b   : > { %v1665_v26 = vadd.f32 %v1625_v21, %v1601_v20 }
 0x38c   : > { %v1751_v17 = vpop.xlane.xlu0 %1750  ;;  %v1754_v27 = vpop.xlane.xlu1 %1753 }
 0x38d   : > { %1682 = vst.msk [vmem:[#allocation3 + $0x18] sm:$0xff] %vm1678_vm7, %v1665_v26  ;;  %v1793_v28 = vadd.f32 %v1751_v17, %v1697_v22  ;;  %v1794_v29 = vadd.f32 %v1754_v27, %v1698_v25 }
 0x38f   : > { %1809 = vst.msk [vmem:[#allocation4 + $0x10] sm:$0xff] %vm1678_vm7, %v1793_v28 }
 0x390   : > { %1810 = vst.msk [vmem:[#allocation4 + $0x18] sm:$0xff] %vm1678_vm7, %v1794_v29 }
 0x392   : > { %v1775_v23 = vpop.xlane.xlu2 %1774 }
 0x393   : > { %v1801_v33 = vadd.f32 %v1775_v23, %v1705_v31 }
 0x394   : > { %v1778_v34 = vpop.xlane.xlu0 %1777  ;;  %v1628_v35 = vpop.xlane.xlu1 %1627 }
 0x395   : > { %1817 = vst.msk [vmem:[#allocation4 + $0x50] sm:$0xff] %vm1678_vm7, %v1801_v33  ;;  %v1802_v36 = vadd.f32 %v1778_v34, %v1706_v30  ;;  %v1666_v37 = vadd.f32 %v1628_v35, %v1602_v32 }
 0x397   : > { %1818 = vst.msk [vmem:[#allocation4 + $0x58] sm:$0xff] %vm1678_vm7, %v1802_v36 }
 0x398   : > { %1683 = vst.msk [vmem:[#allocation3 + $0x20] sm:$0xff] %vm1678_vm7, %v1666_v37 }
 0x39a   : > { %v1649_v38 = vpop.xlane.xlu2 %1648 }
 0x39b   : > { %v1673_v41 = vadd.f32 %v1649_v38, %v1609_v24 }
 0x39c   : > { %v1652_v42 = vpop.xlane.xlu0 %1651  ;;  %v1781_v43 = vpop.xlane.xlu1 %1780 }
 0x39d   : > { %1690 = vst.msk [vmem:[#allocation3 + $0x58] sm:$0xff] %vm1678_vm7, %v1673_v41  ;;  %v1674_v44 = vadd.f32 %v1652_v42, %v1610_v39  ;;  %v1803_v45 = vadd.f32 %v1781_v43, %v1707_v40 }
 0x39f   : > { %1691 = vst.msk [vmem:[#allocation3 + $0x60] sm:$0xff] %vm1678_vm7, %v1674_v44 }
 0x3a0   : > { %1819 = vst.msk [vmem:[#allocation4 + $0x60] sm:$0xff] %vm1678_vm7, %v1803_v45 }
 0x3a2   : > { %v1757_v47 = vpop.xlane.xlu2 %1756 }
 0x3a3   : > { %v1795_v50 = vadd.f32 %v1757_v47, %v1699_v46 }
 0x3a4   : > { %v1655_v51 = vpop.xlane.xlu1 %1654  ;;  %v1760_v55 = vpop.xlane.xlu0 %1759 }
 0x3a5   : > { %1811 = vst.msk [vmem:[#allocation4 + $0x20] sm:$0xff] %vm1678_vm7, %v1795_v50  ;;  %v1675_v56 = vadd.f32 %v1655_v51, %v1611_v48  ;;  %v1796_v57 = vadd.f32 %v1760_v55, %v1700_v49 }
 0x3a7   : > { %1692 = vst.msk [vmem:[#allocation3 + $0x68] sm:$0xff] %vm1678_vm7, %v1675_v56 }
 0x3a8   : > { %1812 = vst.msk [vmem:[#allocation4 + $0x28] sm:$0xff] %vm1678_vm7, %v1796_v57 }
 0x3aa   : > { %v1631_v60 = vpop.xlane.xlu2 %1630 }
 0x3ab   : > { %v1667_v63 = vadd.f32 %v1631_v60, %v1603_v59 }
 0x3ac   : > { %v1763_v1 = vpop.xlane.xlu1 %1762  ;;  %v1634_v3 = vpop.xlane.xlu0 %1633 }
 0x3ad   : > { %1684 = vst.msk [vmem:[#allocation3 + $0x28] sm:$0xff] %vm1678_vm7, %v1667_v63  ;;  %v1797_v52 = vadd.f32 %v1763_v1, %v1701_v61  ;;  %v1668_v4 = vadd.f32 %v1634_v3, %v1604_v62 }
 0x3af   : > { %1813 = vst.msk [vmem:[#allocation4 + $0x30] sm:$0xff] %vm1678_vm7, %v1797_v52 }
 0x3b0   : > { %1685 = vst.msk [vmem:[#allocation3 + $0x30] sm:$0xff] %vm1678_vm7, %v1668_v4 }
 0x3b2   : > { %v1658_v5 = vpop.xlane.xlu2 %1657 }
 0x3b3   : > { %v1676_v8 = vadd.f32 %v1658_v5, %v1612_v0 }
 0x3b4   : > { %v1661_v9 = vpop.xlane.xlu0 %1660  ;;  %v1637_v10 = vpop.xlane.xlu1 %1636 }
 0x3b5   : > { %1693 = vst.msk [vmem:[#allocation3 + $0x70] sm:$0xff] %vm1678_vm7, %v1676_v8  ;;  %v1677_v11 = vadd.f32 %v1661_v9, %v1613_v6  ;;  %v1669_v58 = vadd.f32 %v1637_v10, %v1605_v7 }
 0x3b7   : > { %1694 = vst.msk [vmem:[#allocation3 + $0x78] sm:$0xff] %vm1678_vm7, %v1677_v11 }
 0x3b8   : > { %1686 = vst.msk [vmem:[#allocation3 + $0x38] sm:$0xff] %vm1678_vm7, %v1669_v58 }
 0x3ba   : > { %v1766_v54 = vpop.xlane.xlu2 %1765 }
 0x3bb   : > { %v1798_v13 = vadd.f32 %v1766_v54, %v1702_v53 }
 0x3bc   : > { %v1787_v14 = vpop.xlane.xlu0 %1786  ;;  %v1790_v15 = vpop.xlane.xlu1 %1789 }
 0x3bd   : > { %1814 = vst.msk [vmem:[#allocation4 + $0x38] sm:$0xff] %vm1678_vm7, %v1798_v13  ;;  %v1805_v16 = vadd.f32 %v1787_v14, %v1709_v12  ;;  %v1806_v18 = vadd.f32 %v1790_v15, %v1710_v2 }
 0x3bf   : > { %1821 = vst.msk [vmem:[#allocation4 + $0x70] sm:$0xff] %vm1678_vm7, %v1805_v16 }
 0x3c0   : > { %1822 = vst.msk [vmem:[#allocation4 + $0x78] sm:$0xff] %vm1678_vm7, %v1806_v18 }
 0x3c2   : > { %v1784_v20 = vpop.xlane.xlu2 %1783 }
 0x3c3   : > { %v1804_v21 = vadd.f32 %v1784_v20, %v1708_v19 }
 0x3c5   : > { %1820 = vst.msk [vmem:[#allocation4 + $0x68] sm:$0xff] %vm1678_vm7, %v1804_v21 }
 0x3c6 PF: > { %p3234_p12 = scmp.ne.s32.totalorder %s3947_s29, 1 }
 0x3c7   : > { %s3274_s25 = sshll.u32 (!%p3234_p12), %s3943_s28, 8 }
 0x3c8   : > { %1826 = sbr.rel (%p3234_p12) target bundleno = 1216 (0x4c0), region = 126  ;;  %s6001_s10 = scalar_lea.vmem (!%p3234_p12), [#allocation5], %s3274_s25 }
 0x3cd   : > { %v1831_v22 = vld [vmem:[#allocation3 + $0x20] sm:$0xff]  ;;  %v4093_v26 = vmov 0   ;;  %v1829_v28 = vld [vmem:[#allocation3 + $0x10] sm:$0xff]  ;;  %v1832_v35 = vld [vmem:[#allocation3 + $0x28] sm:$0xff] }
 0x3ce   : > { %v1863_v25 = vld [vmem:[#allocation4 + $0x20] sm:$0xff]  ;;  %3728 = vset.pattern.permute.xlu2 %v4093_v26  ;;  %3727 = vset.pattern.permute.xlu1 %v4093_v26  ;;  %v5478_v17 = vmul.f32 0.0012755102, %v1831_v22  ;;  %v1861_v29 = vld [vmem:[#allocation4 + $0x10] sm:$0xff]  ;;  %v5480_v31 = vmul.f32 0.0012755102, %v1829_v28 }
 0x3cf   : > { %v1879_v27 = vmul.f32 0.0012755102, %v1863_v25  ;;  %3726 = vset.pattern.permute.xlu0 %v4093_v26  ;;  %v1877_v23 = vmul.f32 0.0012755102, %v1861_v29  ;;  %v1827_v30 = vld [vmem:[#allocation3] sm:$0xff]  ;;  %v1864_v38 = vld [vmem:[#allocation4 + $0x28] sm:$0xff] }
 0x3d0   : > { %v1895_v32 = vmul.f32 %v5478_v17, %v5478_v17  ;;  %v5484_v33 = vmul.f32 0.0012755102, %v1827_v30  ;;  %v1859_v34 = vld [vmem:[#allocation4] sm:$0xff]  ;;  %v1893_v36 = vmul.f32 %v5480_v31, %v5480_v31  ;;  %v5488_v24 = vmul.f32 0.0012755102, %v1832_v35  ;;  %v1830_v42 = vld [vmem:[#allocation3 + $0x18] sm:$0xff] }
 0x3d1   : > { %v1875_v37 = vmul.f32 0.0012755102, %v1859_v34  ;;  %v1880_v41 = vmul.f32 0.0012755102, %v1864_v38  ;;  %v1862_v43 = vld [vmem:[#allocation4 + $0x18] sm:$0xff]  ;;  %v1828_v44 = vld [vmem:[#allocation3 + $0x8] sm:$0xff] }
 0x3d2   : > { %v1911_v39 = vsub.f32 %v1879_v27, %v1895_v32  ;;  %v1891_v40 = vmul.f32 %v5484_v33, %v5484_v33  ;;  %v1909_v45 = vsub.f32 %v1877_v23, %v1893_v36  ;;  %v1896_v46 = vmul.f32 %v5488_v24, %v5488_v24  ;;  %v1860_v49 = vld [vmem:[#allocation4 + $0x8] sm:$0xff]  ;;  %v1835_v61 = vld [vmem:[#allocation3 + $0x40] sm:$0xff]  ;;  %v1834_v9 = vld [vmem:[#allocation3 + $0x38] sm:$0xff] }
 0x3d3   : > { %v5494_v47 = vmul.f32 0.0012755102, %v1830_v42  ;;  %v1878_v48 = vmul.f32 0.0012755102, %v1862_v43  ;;  %v5496_v55 = vmul.f32 0.0012755102, %v1828_v44 }
 0x3d4   : > { %v1927_v50 = vmax.f32 %v1911_v39, 0.0  ;;  %v1907_v51 = vsub.f32 %v1875_v37, %v1891_v40  ;;  %v1876_v56 = vmul.f32 0.0012755102, %v1860_v49  ;;  %v1925_v57 = vmax.f32 %v1909_v45, 0.0  ;;  %v1867_v62 = vld [vmem:[#allocation4 + $0x40] sm:$0xff]  ;;  %v1866_v58 = vld [vmem:[#allocation4 + $0x38] sm:$0xff] }
 0x3d5   : > { %v1912_v59 = vsub.f32 %v1880_v41, %v1896_v46  ;;  %v1894_v60 = vmul.f32 %v5494_v47, %v5494_v47  ;;  %v1892_v3 = vmul.f32 %v5496_v55, %v5496_v55  ;;  %v5504_v52 = vmul.f32 0.0012755102, %v1835_v61  ;;  %v1833_v53 = vld [vmem:[#allocation3 + $0x30] sm:$0xff] }
 0x3d6   : > { %v5500_v63 = vadd.f32 1e-05, %v1927_v50  ;;  %v1923_v1 = vmax.f32 %v1907_v51, 0.0  ;;  %v5506_v4 = vadd.f32 1e-05, %v1925_v57  ;;  %v1865_v14 = vld [vmem:[#allocation4 + $0x30] sm:$0xff] }
 0x3d7   : > { %v1928_v0 = vmax.f32 %v1912_v59, 0.0  ;;  %v1910_v5 = vsub.f32 %v1878_v48, %v1894_v60  ;;  %v1908_v7 = vsub.f32 %v1876_v56, %v1892_v3  ;;  %v1883_v8 = vmul.f32 0.0012755102, %v1867_v62  ;;  %v1943_v62 = vld [vmem:[%s6678_s5 + $0x20] sm:$0xff]  ;;  %v1836_v57 = vld [vmem:[#allocation3 + $0x48] sm:$0xff] }
 0x3d8   : > { %3729 = vrsqrt.f32 %v5500_v63  ;;  %v5509_v6 = vadd.f32 1e-05, %v1923_v1  ;;  %v1899_v12 = vmul.f32 %v5504_v52, %v5504_v52  ;;  %v5520_v13 = vmul.f32 0.0012755102, %v1834_v9 }
 0x3d9   : > { %3731 = vrsqrt.f32 %v5506_v4  ;;  %v5512_v10 = vadd.f32 1e-05, %v1928_v0  ;;  %v1926_v11 = vmax.f32 %v1910_v5, 0.0  ;;  %v1924_v54 = vmax.f32 %v1908_v7, 0.0  ;;  %v1941_v7 = vld [vmem:[%s6678_s5 + $0x10] sm:$0xff] }
 0x3da   : > { %3733 = vrsqrt.f32 %v5509_v6  ;;  %v1915_v16 = vsub.f32 %v1883_v8, %v1899_v12  ;;  %v1882_v18 = vmul.f32 0.0012755102, %v1866_v58  ;;  %v5524_v19 = vmul.f32 0.0012755102, %v1833_v53  ;;  %v1939_v53 = vld [vmem:[%s6678_s5] sm:$0xff] }
 0x3db   : > { %3735 = vrsqrt.f32 %v5512_v10  ;;  %v5518_v2 = vadd.f32 1e-05, %v1926_v11  ;;  %v5522_v15 = vadd.f32 1e-05, %v1924_v54  ;;  %vm2017_vm8 = vweird.f32 %v5500_v63 }
 0x3dc   : > { %v1898_v20 = vmul.f32 %v5520_v13, %v5520_v13  ;;  %vm1997_vm9 = vweird.f32 %v5506_v4  ;;  %vm1977_vm10 = vweird.f32 %v5509_v6  ;;  %v1931_v22 = vmax.f32 %v1915_v16, 0.0 }
 0x3dd   : > { %3737 = vrsqrt.f32 %v5518_v2  ;;  %v5539_v28 = vmul.f32 0.0012755102, %v1865_v14  ;;  %v5543_v29 = vmul.f32 %v5524_v19, %v5524_v19  ;;  %vm2027_vm11 = vweird.f32 %v5512_v10 }
 0x3de   : > { %v5530_v21 = vpop.eup %3729  ;;  %3739 = vrsqrt.f32 %v5522_v15  ;;  %v1914_v27 = vsub.f32 %v1882_v18, %v1898_v20  ;;  %vm2007_vm12 = vweird.f32 %v5518_v2  ;;  %v5551_v32 = vadd.f32 1e-05, %v1931_v22  ;;  %v1838_v22 = vld [vmem:[#allocation3 + $0x58] sm:$0xff] }
 0x3df   : > { %v5535_v25 = vpop.eup %3731  ;;  %v2012_v26 = vmul.f32 %v5530_v21, %v5500_v63  ;;  %vm2018_vm13 = vweird.f32 %v5530_v21  ;;  %vm1987_vm14 = vweird.f32 %v5522_v15  ;;  %v1913_v44 = vsub.f32 %v5539_v28, %v5543_v29 }
 0x3e0   : > { %v5545_v23 = vpop.eup %3733  ;;  %v1992_v30 = vmul.f32 %v5535_v25, %v5506_v4  ;;  %v1930_v37 = vmax.f32 %v1914_v27, 0.0  ;;  %vm1998_vm15 = vweird.f32 %v5535_v25  ;;  %3741 = vrsqrt.f32 %v5551_v32  ;;  %vm5585_vm3 = vmor %vm2017_vm8, %vm2018_vm13 }
 0x3e1   : > { %v5553_v34 = vpop.eup %3735  ;;  %v2013_v35 = vmul.f32 %v5530_v21, %v2012_v26  ;;  %v1972_v36 = vmul.f32 %v5545_v23, %v5509_v6  ;;  %vm1978_vm1 = vweird.f32 %v5545_v23  ;;  %vm5599_vm4 = vmor %vm1997_vm9, %vm1998_vm15  ;;  %v1872_v6 = vld [vmem:[#allocation4 + $0x68] sm:$0xff] }
 0x3e2   : > { %v1993_v38 = vmul.f32 %v5535_v25, %v1992_v30  ;;  %v2022_v39 = vmul.f32 %v5553_v34, %v5512_v10  ;;  %v5568_v43 = vadd.f32 1e-05, %v1930_v37  ;;  %vm2028_vm2 = vweird.f32 %v5553_v34  ;;  %vm5615_vm0 = vmor %vm1977_vm10, %vm1978_vm1  ;;  %v1871_v37 = vld [vmem:[#allocation4 + $0x60] sm:$0xff] }
 0x3e3   : > { %v5565_v40 = vpop.eup %3737  ;;  %v2014_v41 = vmul.f32 0.5, %v2013_v35  ;;  %v1973_v42 = vmul.f32 %v5545_v23, %v1972_v36  ;;  %vm5631_vm7 = vmor %vm2027_vm11, %vm2028_vm2  ;;  %v1942_v35 = vld [vmem:[%s6678_s5 + $0x18] sm:$0xff]  ;;  %vm2057_vm10 = vweird.f32 %v5551_v32 }
 0x3e4   : > { %v5572_v45 = vpop.eup %3739  ;;  %v1994_v46 = vmul.f32 0.5, %v1993_v38  ;;  %v2023_v48 = vmul.f32 %v5553_v34, %v2022_v39  ;;  %v2002_v49 = vmul.f32 %v5565_v40, %v5518_v2  ;;  %3743 = vrsqrt.f32 %v5568_v43 }
 0x3e5   : > { %v2015_v50 = vsub.f32 1.5, %v2014_v41  ;;  %v1974_v51 = vmul.f32 0.5, %v1973_v42  ;;  %v1982_v56 = vmul.f32 %v5572_v45, %v5522_v15  ;;  %vm2008_vm5 = vweird.f32 %v5565_v40  ;;  %v1870_v42 = vld [vmem:[#allocation4 + $0x58] sm:$0xff] }
 0x3e6   : > { %v1995_v59 = vsub.f32 1.5, %v1994_v46  ;;  %v2024_v60 = vmul.f32 0.5, %v2023_v48  ;;  %v2003_v61 = vmul.f32 %v5565_v40, %v2002_v49  ;;  %v5605_v5 = vpop.eup %3741  ;;  %vm1988_vm6 = vweird.f32 %v5572_v45  ;;  %vm5652_vm8 = vmor %vm2007_vm12, %vm2008_vm5  ;;  %v1837_v46 = vld [vmem:[#allocation3 + $0x50] sm:$0xff] }
 0x3e7   : > { %v2016_v1 = vmul.f32 %v5530_v21, %v2015_v50  ;;  %v1975_v3 = vsub.f32 1.5, %v1974_v51  ;;  %v1983_v0 = vmul.f32 %v5572_v45, %v1982_v56  ;;  %v2052_v14 = vmul.f32 %v5605_v5, %v5551_v32  ;;  %vm5676_vm9 = vmor %vm1987_vm14, %vm1988_vm6  ;;  %v1869_v48 = vld [vmem:[#allocation4 + $0x50] sm:$0xff]  ;;  %v1940_v51 = vld [vmem:[%s6678_s5 + $0x8] sm:$0xff] }
 0x3e8   : > { %v1996_v8 = vmul.f32 %v5535_v25, %v1995_v59  ;;  %v2025_v9 = vsub.f32 1.5, %v2024_v60  ;;  %v2004_v11 = vmul.f32 0.5, %v2003_v61  ;;  %v1929_v38 = vmax.f32 %v1913_v44, 0.0  ;;  %v1840_v32 = vld [vmem:[#allocation3 + $0x68] sm:$0xff] }
 0x3e9   : > { %v2020_v58 = vsel %vm5585_vm3, %v5530_v21, %v2016_v1  ;;  %v1976_v54 = vmul.f32 %v5545_v23, %v1975_v3  ;;  %v1984_v12 = vmul.f32 0.5, %v1983_v0  ;;  %v5683_v41 = vmul.f32 0.0012755102, %v1838_v22  ;;  %v1947_v22 = vld [vmem:[%s6678_s5 + $0x40] sm:$0xff] }
 0x3ea   : > { %v5637_v16 = vmul.f32 %v2020_v58, %v1943_v62  ;;  %v2000_v18 = vsel %vm5599_vm4, %v5535_v25, %v1996_v8  ;;  %v2026_v20 = vmul.f32 %v5553_v34, %v2025_v9  ;;  %v2005_v21 = vsub.f32 1.5, %v2004_v11  ;;  %v5657_v29 = vpop.eup %3743  ;;  %v1868_v62 = vld [vmem:[#allocation4 + $0x48] sm:$0xff]  ;;  %v1873_v11 = vld [vmem:[#allocation4 + $0x70] sm:$0xff] }
 0x3eb   : > { %v5643_v26 = vmul.f32 %v2000_v18, %v1941_v7  ;;  %v1980_v10 = vsel %vm5615_vm0, %v5545_v23, %v1976_v54  ;;  %v1985_v28 = vsub.f32 1.5, %v1984_v12  ;;  %v2053_v25 = vmul.f32 %v5605_v5, %v2052_v14  ;;  %v1944_v23 = vld [vmem:[%s6678_s5 + $0x28] sm:$0xff]  ;;  %v1841_v7 = vld [vmem:[#allocation3 + $0x70] sm:$0xff] }
 0x3ec   : > { %2252 = vperm.xlu2 %3728, %v5637_v16   ;;  %v5660_v30 = vmul.f32 %v1980_v10, %v1939_v53  ;;  %v2030_v2 = vsel %vm5631_vm7, %v5553_v34, %v2026_v20  ;;  %v2006_v36 = vmul.f32 %v5565_v40, %v2005_v21  ;;  %vm2058_vm11 = vweird.f32 %v5605_v5  ;;  %v1839_v21 = vld [vmem:[#allocation3 + $0x60] sm:$0xff]  ;;  %v1945_v10 = vld [vmem:[%s6678_s5 + $0x30] sm:$0xff] }
 0x3ed   : > { %2242 = vperm.xlu1 %3727, %v5643_v26   ;;  %v1986_v39 = vmul.f32 %v5572_v45, %v1985_v28  ;;  %v2054_v34 = vmul.f32 0.5, %v2053_v25  ;;  %v2042_v44 = vmul.f32 %v5657_v29, %v5568_v43  ;;  %vm2047_vm12 = vweird.f32 %v5568_v43  ;;  %vm5712_vm14 = vmor %vm2057_vm10, %vm2058_vm11 }
 0x3ee   : > { %2232 = vperm.xlu0 %3726, %v5660_v30   ;;  %v2010_v15 = vsel %vm5652_vm8, %v5565_v40, %v2006_v36  ;;  %v5693_v49 = vmul.f32 %v2030_v2, %v1944_v23  ;;  %vm2048_vm13 = vweird.f32 %v5657_v29  ;;  %v5705_v60 = vadd.f32 1e-05, %v1929_v38  ;;  %v1946_v23 = vld [vmem:[%s6678_s5 + $0x38] sm:$0xff] }
 0x3ef   : > { %v5695_v50 = vmul.f32 %v2010_v15, %v1942_v35  ;;  %v1990_v40 = vsel %vm5676_vm9, %v5572_v45, %v1986_v39  ;;  %v2055_v56 = vsub.f32 1.5, %v2054_v34  ;;  %v2043_v59 = vmul.f32 %v5657_v29, %v2042_v44  ;;  %vm5743_vm15 = vmor %vm2047_vm12, %vm2048_vm13 }
 0x3f0   : > { %v1886_v61 = vmul.f32 0.0012755102, %v1870_v42  ;;  %v1902_v45 = vmul.f32 %v5683_v41, %v5683_v41  ;;  %v5718_v3 = vmul.f32 0.0012755102, %v1837_v46  ;;  %v1885_v0 = vmul.f32 0.0012755102, %v1869_v48 }
 0x3f1   : > { %v2056_v1 = vmul.f32 %v5605_v5, %v2055_v56  ;;  %v5720_v8 = vmul.f32 %v1990_v40, %v1940_v51  ;;  %v2044_v4 = vmul.f32 0.5, %v2043_v59  ;;  %3745 = vrsqrt.f32 %v5705_v60 }
 0x3f2   : > { %v5723_v9 = vmul.f32 0.0012755102, %v1836_v57  ;;  %v1918_v58 = vsub.f32 %v1886_v61, %v1902_v45  ;;  %v1901_v53 = vmul.f32 %v5718_v3, %v5718_v3  ;;  %v1884_v54 = vmul.f32 0.0012755102, %v1868_v62 }
 0x3f3   : > { %v2060_v12 = vsel %vm5712_vm14, %v5605_v5, %v2056_v1  ;;  %v2045_v14 = vsub.f32 1.5, %v2044_v4  ;;  %v5733_v20 = vmul.f32 0.0012755102, %v1841_v7  ;;  %v1889_v28 = vmul.f32 0.0012755102, %v1873_v11  ;;  %v1874_v7 = vld [vmem:[#allocation4 + $0x78] sm:$0xff] }
 0x3f4   : > { %2257 = vperm.xlu2 %3728, %v5693_v49   ;;  %v1900_v18 = vmul.f32 %v5723_v9, %v5723_v9  ;;  %v1934_v5 = vmax.f32 %v1918_v58, 0.0  ;;  %v1917_v27 = vsub.f32 %v1885_v0, %v1901_v53  ;;  %v5747_v25 = vmul.f32 0.0012755102, %v1840_v32 }
 0x3f5   : > { %2247 = vperm.xlu1 %3727, %v5695_v50   ;;  %v2046_v2 = vmul.f32 %v5657_v29, %v2045_v14  ;;  %v1905_v43 = vmul.f32 %v5733_v20, %v5733_v20  ;;  %v1888_v36 = vmul.f32 0.0012755102, %v1872_v6  ;;  %v5760_v42 = vmul.f32 0.0012755102, %v1839_v21 }
 0x3f6   : > { %2237 = vperm.xlu0 %3726, %v5720_v8   ;;  %v1916_v35 = vsub.f32 %v1884_v54, %v1900_v18  ;;  %v5756_v38 = vadd.f32 1e-05, %v1934_v5  ;;  %v1933_v39 = vmax.f32 %v1917_v27, 0.0  ;;  %v1904_v34 = vmul.f32 %v5747_v25, %v5747_v25 }
 0x3f7   : > { %v3746_v15 = vpop.eup %3745  ;;  %v5762_v44 = vmul.f32 %v2060_v12, %v1947_v22  ;;  %v2050_v46 = vsel %vm5743_vm15, %v5657_v29, %v2046_v2  ;;  %v1921_v51 = vsub.f32 %v1889_v28, %v1905_v43  ;;  %v1887_v57 = vmul.f32 0.0012755102, %v1871_v37  ;;  %v1842_v29 = vld [vmem:[#allocation3 + $0x78] sm:$0xff] }
 0x3f8   : > { %v1932_v48 = vmax.f32 %v1916_v35, 0.0  ;;  %v5767_v40 = vmul.f32 %v2050_v46, %v1946_v23  ;;  %v2032_v56 = vmul.f32 %v3746_v15, %v5705_v60  ;;  %3747 = vrsqrt.f32 %v5756_v38 }
 0x3f9   : > { %v5771_v59 = vadd.f32 1e-05, %v1933_v39  ;;  %v1937_v62 = vmax.f32 %v1921_v51, 0.0  ;;  %v1920_v63 = vsub.f32 %v1888_v36, %v1904_v34  ;;  %v1903_v45 = vmul.f32 %v5760_v42, %v5760_v42 }
 0x3fa   : > { %v5773_v61 = vadd.f32 1e-05, %v1932_v48  ;;  %v2033_v1 = vmul.f32 %v3746_v15, %v2032_v56  ;;  %vm2037_vm1 = vweird.f32 %v5705_v60  ;;  %vm2038_vm2 = vweird.f32 %v3746_v15 }
 0x3fb   : > { %3749 = vrsqrt.f32 %v5771_v59  ;;  %v5780_v0 = vadd.f32 1e-05, %v1937_v62  ;;  %v1936_v11 = vmax.f32 %v1920_v63, 0.0  ;;  %v1919_v32 = vsub.f32 %v1887_v57, %v1903_v45  ;;  %vm5792_vm3 = vmor %vm2037_vm1, %vm2038_vm2  ;;  %v1950_v45 = vld [vmem:[%s6678_s5 + $0x58] sm:$0xff] }
 0x3fc   : > { %2272 = vperm.xlu2 %3728, %v5762_v44   ;;  %v2034_v4 = vmul.f32 0.5, %v2033_v1  ;;  %3751 = vrsqrt.f32 %v5773_v61  ;;  %v5785_v58 = vmul.f32 0.0012755102, %v1842_v29  ;;  %v1890_v14 = vmul.f32 0.0012755102, %v1874_v7 }
 0x3fd   : > { %2267 = vperm.xlu1 %3727, %v5767_v40   ;;  %3753 = vrsqrt.f32 %v5780_v0  ;;  %v5787_v6 = vadd.f32 1e-05, %v1936_v11  ;;  %v1935_v12 = vmax.f32 %v1919_v32, 0.0  ;;  %vm2087_vm4 = vweird.f32 %v5756_v38 }
 0x3fe   : > { %v3748_v53 = vpop.eup %3747  ;;  %v2035_v54 = vsub.f32 1.5, %v2034_v4  ;;  %v1906_v22 = vmul.f32 %v5785_v58, %v5785_v58  ;;  %vm2077_vm0 = vweird.f32 %v5771_v59  ;;  %vm2067_vm6 = vweird.f32 %v5773_v61 }
 0x3ff   : > { %v2082_v21 = vmul.f32 %v3748_v53, %v5756_v38  ;;  %3755 = vrsqrt.f32 %v5787_v6  ;;  %v5803_v27 = vadd.f32 1e-05, %v1935_v12  ;;  %vm2088_vm5 = vweird.f32 %v3748_v53 }
 0x400   : > { %v2036_v5 = vmul.f32 %v3746_v15, %v2035_v54  ;;  %v1922_v23 = vsub.f32 %v1890_v14, %v1906_v22  ;;  %vm2117_vm7 = vweird.f32 %v5780_v0  ;;  %vm5827_vm8 = vmor %vm2087_vm4, %vm2088_vm5  ;;  %vm2107_vm10 = vweird.f32 %v5787_v6 }
 0x401   : > { %v3750_v28 = vpop.eup %3749  ;;  %v2083_v60 = vmul.f32 %v3748_v53, %v2082_v21  ;;  %3757 = vrsqrt.f32 %v5803_v27  ;;  %vm2097_vm2 = vweird.f32 %v5803_v27  ;;  %v2164_v14 = vmul.f32 %v5720_v8, %v5496_v55  ;;  %v1954_v55 = vld [vmem:[%s6678_s5 + $0x78] sm:$0xff] }
 0x402   : > { %v5805_v2 = vpop.eup %3751  ;;  %v2040_v35 = vsel %vm5792_vm3, %v3746_v15, %v2036_v5  ;;  %v2072_v43 = vmul.f32 %v3750_v28, %v5771_v59  ;;  %v1938_v56 = vmax.f32 %v1922_v23, 0.0  ;;  %vm2078_vm9 = vweird.f32 %v3750_v28  ;;  %v1949_v5 = vld [vmem:[%s6678_s5 + $0x50] sm:$0xff]  ;;  %v1948_v23 = vld [vmem:[%s6678_s5 + $0x48] sm:$0xff]  ;;  %v2151_v59 = vld [vmem:[%s6679_s6 + $0x20] sm:$0xff] }
 0x403   : > { %v5812_v36 = vpop.eup %3753  ;;  %v5814_v37 = vmul.f32 %v2040_v35, %v1945_v10  ;;  %v2084_v39 = vmul.f32 0.5, %v2083_v60  ;;  %v2062_v34 = vmul.f32 %v5805_v2, %v5773_v61  ;;  %vm2068_vm11 = vweird.f32 %v5805_v2  ;;  %vm5843_vm13 = vmor %vm2077_vm0, %vm2078_vm9 }
 0x404   : > { %v2073_v46 = vmul.f32 %v3750_v28, %v2072_v43  ;;  %v2112_v15 = vmul.f32 %v5812_v36, %v5780_v0  ;;  %vm2118_vm12 = vweird.f32 %v5812_v36  ;;  %v1970_v54 = vadd.f32 1e-05, %v1938_v56  ;;  %vm5857_vm14 = vmor %vm2067_vm6, %vm2068_vm11 }
 0x405   : > { %2262 = vperm.xlu0 %3726, %v5814_v37   ;;  %v2085_v48 = vsub.f32 1.5, %v2084_v39  ;;  %v2063_v51 = vmul.f32 %v5805_v2, %v2062_v34  ;;  %v3756_v57 = vpop.eup %3755  ;;  %vm5869_vm1 = vmor %vm2117_vm7, %vm2118_vm12 }
 0x406   : > { %v2074_v1 = vmul.f32 0.5, %v2073_v46  ;;  %v2113_v63 = vmul.f32 %v5812_v36, %v2112_v15  ;;  %v2102_v38 = vmul.f32 %v3756_v57, %v5787_v6  ;;  %vm2108_vm15 = vweird.f32 %v3756_v57  ;;  %v1951_v6 = vld [vmem:[%s6678_s5 + $0x60] sm:$0xff] }
 0x407   : > { %v2086_v29 = vmul.f32 %v3748_v53, %v2085_v48  ;;  %v2064_v7 = vmul.f32 0.5, %v2063_v51  ;;  %v3758_v4 = vpop.eup %3757  ;;  %3759 = vrsqrt.f32 %v1970_v54  ;;  %v1953_v48 = vld [vmem:[%s6678_s5 + $0x70] sm:$0xff]  ;;  %vm2109_vm4 = vmor %vm2107_vm10, %vm2108_vm15  ;;  %vm2127_vm0 = vweird.f32 %v1970_v54 }
 0x408   : > { %v2075_v11 = vsub.f32 1.5, %v2074_v1  ;;  %v2114_v32 = vmul.f32 0.5, %v2113_v63  ;;  %v2103_v21 = vmul.f32 %v3756_v57, %v2102_v38  ;;  %v2092_v22 = vmul.f32 %v3758_v4, %v5803_v27  ;;  %v2148_v27 = vld [vmem:[%s6679_s6 + $0x8] sm:$0xff] }
 0x409   : > { %v2090_v12 = vsel %vm5827_vm8, %v3748_v53, %v2086_v29  ;;  %v2065_v18 = vsub.f32 1.5, %v2064_v7  ;;  %vm2098_vm3 = vweird.f32 %v3758_v4 }
 0x40a   : > { %v5848_v10 = vmul.f32 %v2090_v12, %v1950_v45  ;;  %v2076_v60 = vmul.f32 %v3750_v28, %v2075_v11  ;;  %v2115_v53 = vsub.f32 1.5, %v2114_v32  ;;  %v2104_v61 = vmul.f32 0.5, %v2103_v21  ;;  %v1952_v45 = vld [vmem:[%s6678_s5 + $0x68] sm:$0xff]  ;;  %vm2099_vm5 = vmor %vm2097_vm2, %vm2098_vm3 }
 0x40b   : > { %v2066_v35 = vmul.f32 %v5805_v2, %v2065_v18  ;;  %v2093_v39 = vmul.f32 %v3758_v4, %v2092_v22  ;;  %v2163_v21 = vmul.f32 %v5660_v30, %v5484_v33 }
 0x40c   : > { %2287 = vperm.xlu2 %3728, %v5848_v10   ;;  %v2080_v34 = vsel %vm5843_vm13, %v3750_v28, %v2076_v60  ;;  %v2116_v46 = vmul.f32 %v5812_v36, %v2115_v53  ;;  %v2105_v51 = vsub.f32 1.5, %v2104_v61  ;;  %v2166_v53 = vmul.f32 %v5695_v50, %v5494_v47 }
 0x40d   : > { %v5878_v15 = vmul.f32 %v2080_v34, %v1949_v5  ;;  %v2070_v0 = vsel %vm5857_vm14, %v5805_v2, %v2066_v35  ;;  %v2094_v56 = vmul.f32 0.5, %v2093_v39  ;;  %v2147_v5 = vld [vmem:[%s6679_s6] sm:$0xff]  ;;  %v2170_v39 = vmul.f32 %v5767_v40, %v5520_v13  ;;  %v2153_v34 = vld [vmem:[%s6679_s6 + $0x30] sm:$0xff]  ;;  %v2152_v13 = vld [vmem:[%s6679_s6 + $0x28] sm:$0xff] }
 0x40e   : > { %v5886_v62 = vmul.f32 %v2070_v0, %v1948_v23  ;;  %v2120_v28 = vsel %vm5869_vm1, %v5812_v36, %v2116_v46  ;;  %v2106_v1 = vmul.f32 %v3756_v57, %v2105_v51  ;;  %v3760_v36 = vpop.eup %3759  ;;  %v2179_v60 = vsub.f32 %v2147_v5, %v2163_v21 }
 0x40f   : > { %2282 = vperm.xlu1 %3727, %v5878_v15   ;;  %v2095_v2 = vsub.f32 1.5, %v2094_v56  ;;  %v5896_v63 = vmul.f32 %v2120_v28, %v1953_v48  ;;  %v2122_v38 = vmul.f32 %v3760_v36, %v1970_v54  ;;  %vm2128_vm6 = vweird.f32 %v3760_v36  ;;  %v2156_v48 = vld [vmem:[%s6679_s6 + $0x48] sm:$0xff]  ;;  %v2159_v28 = vld [vmem:[%s6679_s6 + $0x60] sm:$0xff] }
 0x410   : > { %2277 = vperm.xlu0 %3726, %v5886_v62   ;;  %v2110_v29 = vsel %vm2109_vm4, %v3756_v57, %v2106_v1  ;;  %vm2129_vm7 = vmor %vm2127_vm0, %vm2128_vm6  ;;  %v2167_v54 = vmul.f32 %v5637_v16, %v5478_v17  ;;  %v2165_v23 = vmul.f32 %v5643_v26, %v5480_v31  ;;  %v2150_v17 = vld [vmem:[%s6679_s6 + $0x18] sm:$0xff]  ;;  %v2149_v16 = vld [vmem:[%s6679_s6 + $0x10] sm:$0xff]  ;;  %v2169_v47 = vmul.f32 %v5814_v37, %v5524_v19 }
 0x411   : > { %v2096_v7 = vmul.f32 %v3758_v4, %v2095_v2  ;;  %v2144_v11 = vmul.f32 %v2110_v29, %v1952_v45  ;;  %v2123_v18 = vmul.f32 %v3760_v36, %v2122_v38  ;;  %v2182_v43 = vsub.f32 %v2150_v17, %v2166_v53  ;;  %v2154_v31 = vld [vmem:[%s6679_s6 + $0x38] sm:$0xff]  ;;  %v2157_v19 = vld [vmem:[%s6679_s6 + $0x50] sm:$0xff] }
 0x412   : > { %v2183_v35 = vsub.f32 %v2151_v59, %v2167_v54  ;;  %v2181_v61 = vsub.f32 %v2149_v16, %v2165_v23  ;;  %v2186_v26 = vsub.f32 %v2154_v31, %v2170_v39  ;;  %v2168_v50 = vmul.f32 %v5693_v49, %v5488_v24  ;;  %v2213_v17 = vld [vmem:[%s6001_s10 + $0x78] sm:$0xff] }
 0x413   : > { %v2100_v32 = vsel %vm2099_vm5, %v3758_v4, %v2096_v7  ;;  %v2124_v57 = vmul.f32 0.5, %v2123_v18  ;;  %v2180_v4 = vsub.f32 %v2148_v27, %v2164_v14  ;;  %v2185_v40 = vsub.f32 %v2153_v34, %v2169_v47  ;;  %v2200_v14 = vld [vmem:[%s6001_s10 + $0x10] sm:$0xff]  ;;  %v2201_v18 = vld [vmem:[%s6001_s10 + $0x18] sm:$0xff]  ;;  %v2219_v34 = vld [vmem:[%s6001_s10 + $0xa8] sm:$0xff] }
 0x414   : > { %2302 = vperm.xlu2 %3728, %v5896_v63   ;;  %v2143_v12 = vmul.f32 %v2100_v32, %v1951_v6  ;;  %v2184_v46 = vsub.f32 %v2152_v13, %v2168_v50  ;;  %v2173_v0 = vmul.f32 %v5878_v15, %v5718_v3  ;;  %v2172_v24 = vmul.f32 %v5886_v62, %v5723_v9  ;;  %v2155_v3 = vld [vmem:[%s6679_s6 + $0x40] sm:$0xff]  ;;  %v2160_v9 = vld [vmem:[%s6679_s6 + $0x68] sm:$0xff] }
 0x415   : > { %v2125_v22 = vsub.f32 1.5, %v2124_v57  ;;  %v2171_v37 = vmul.f32 %v5762_v44, %v5504_v52  ;;  %v2176_v56 = vmul.f32 %v2144_v11, %v5747_v25  ;;  %v2174_v62 = vmul.f32 %v5848_v10, %v5683_v41  ;;  %v2158_v25 = vld [vmem:[%s6679_s6 + $0x58] sm:$0xff]  ;;  %v2161_v10 = vld [vmem:[%s6679_s6 + $0x70] sm:$0xff]  ;;  %v2218_v50 = vld [vmem:[%s6001_s10 + $0xa0] sm:$0xff] }
 0x416   : > { %v2189_v49 = vsub.f32 %v2157_v19, %v2173_v0  ;;  %v2188_v15 = vsub.f32 %v2156_v48, %v2172_v24  ;;  %v2175_v52 = vmul.f32 %v2143_v12, %v5760_v42  ;;  %v2177_v42 = vmul.f32 %v5896_v63, %v5733_v20  ;;  %v2162_v41 = vld [vmem:[%s6679_s6 + $0x78] sm:$0xff] }
 0x417   : > { %2297 = vperm.xlu1 %3727, %v2144_v11   ;;  %v2126_v8 = vmul.f32 %v3760_v36, %v2125_v22  ;;  %v2187_v51 = vsub.f32 %v2155_v3, %v2171_v37  ;;  %v2192_v44 = vsub.f32 %v2160_v9, %v2176_v56  ;;  %v2190_v2 = vsub.f32 %v2158_v25, %v2174_v62  ;;  %v2225_v56 = vld [vmem:[%s6001_s10 + $0xd8] sm:$0xff]  ;;  %v2204_v62 = vld [vmem:[%s6001_s10 + $0x30] sm:$0xff] }
 0x418   : > { %2292 = vperm.xlu0 %3726, %v2143_v12   ;;  %v2191_v1 = vsub.f32 %v2159_v28, %v2175_v52  ;;  %v2193_v29 = vsub.f32 %v2161_v10, %v2177_v42 }
 0x419   : > { %v2130_v33 = vsel %vm2129_vm7, %v3760_v36, %v2126_v8  ;;  %v2206_v8 = vld [vmem:[%s6001_s10 + $0x40] sm:$0xff] }
 0x41a   : > { %v2146_v30 = vmul.f32 %v2130_v33, %v1954_v55 }
 0x41c   : > { %2349 = vperm.xlu2 %3728, %v2180_v4   ;;  %v2178_v45 = vmul.f32 %v2146_v30, %v5785_v58 }
 0x41e   : > { %v2194_v36 = vsub.f32 %v2162_v41, %v2178_v45  ;;  %v2205_v45 = vld [vmem:[%s6001_s10 + $0x38] sm:$0xff] }
 0x41f   : > { %2344 = vperm.xlu1 %3727, %v2179_v60   ;;  %v2207_v60 = vld [vmem:[%s6001_s10 + $0x48] sm:$0xff] }
 0x420   : > { %2307 = vperm.xlu0 %3726, %v2146_v30  }
 0x424   : > { %2364 = vperm.xlu2 %3728, %v2183_v35   ;;  %v2212_v35 = vld [vmem:[%s6001_s10 + $0x70] sm:$0xff] }
 0x427   : > { %2359 = vperm.xlu1 %3727, %v2182_v43  }
 0x428   : > { %2354 = vperm.xlu0 %3726, %v2181_v61  }
 0x42c   : > { %2379 = vperm.xlu2 %3728, %v2186_v26  }
 0x42f   : > { %2374 = vperm.xlu1 %3727, %v2185_v40   ;;  %v2198_v40 = vld [vmem:[%s6001_s10] sm:$0xff] }
 0x430   : > { %2369 = vperm.xlu0 %3726, %v2184_v46   ;;  %v2199_v46 = vld [vmem:[%s6001_s10 + $0x8] sm:$0xff] }
 0x434   : > { %2394 = vperm.xlu2 %3728, %v2189_v49  }
 0x437   : > { %2389 = vperm.xlu1 %3727, %v2188_v15  }
 0x438   : > { %2384 = vperm.xlu0 %3726, %v2187_v51   ;;  %v2224_v51 = vld [vmem:[%s6001_s10 + $0xd0] sm:$0xff] }
 0x43c   : > { %2409 = vperm.xlu2 %3728, %v2192_v44  }
 0x43f   : > { %2404 = vperm.xlu1 %3727, %v2191_v1   ;;  %v2202_v1 = vld [vmem:[%s6001_s10 + $0x20] sm:$0xff] }
 0x440   : > { %2399 = vperm.xlu0 %3726, %v2190_v2   ;;  %v2203_v2 = vld [vmem:[%s6001_s10 + $0x28] sm:$0xff] }
 0x446   : > { %v2253_v6 = vpop.permute.xlu2 %2252 }
 0x447   : > { %2419 = vperm.xlu1 %3727, %v2194_v36   ;;  %v2318_v54 = vmul.f32 %v2253_v6, %v2206_v8  ;;  %v2319_v33 = vmul.f32 %v2253_v6, %v2207_v60 }
 0x448   : > { %2414 = vperm.xlu0 %3726, %v2193_v29  }
 0x44e   : > { %v5988_v7 = vpop.permute.xlu2 %2257 }
 0x456   : > { %v5990_v58 = vpop.permute.xlu2 %2272 }
 0x45f   : > { %v5992_v38 = vpop.permute.xlu1 %2242 }
 0x460   : > { %v2233_v20 = vpop.permute.xlu0 %2232  ;;  %v2314_v29 = vmul.f32 %v5992_v38, %v2202_v1  ;;  %v2315_v6 = vmul.f32 %v5992_v38, %v2203_v2  ;;  %v2211_v38 = vld [vmem:[%s6001_s10 + $0x68] sm:$0xff]  ;;  %v2229_v2 = vld [vmem:[%s6001_s10 + $0xf8] sm:$0xff] }
 0x461   : > { %v2310_v48 = vmul.f32 %v2233_v20, %v2198_v40  ;;  %v2311_v3 = vmul.f32 %v2233_v20, %v2199_v46  ;;  %v2227_v1 = vld [vmem:[%s6001_s10 + $0xe8] sm:$0xff] }
 0x466   : > { %v5994_v63 = vpop.permute.xlu2 %2287 }
 0x467   : > { %v5996_v11 = vpop.permute.xlu1 %2247 }
 0x468   : > { %v2238_v12 = vpop.permute.xlu0 %2237  ;;  %v2316_v36 = vmul.f32 %v5996_v11, %v2204_v62  ;;  %v2317_v20 = vmul.f32 %v5996_v11, %v2205_v45 }
 0x469   : > { %v2312_v27 = vmul.f32 %v2238_v12, %v2200_v14  ;;  %v2313_v57 = vmul.f32 %v2238_v12, %v2201_v18 }
 0x46e   : > { %v5999_v32 = vpop.permute.xlu2 %2302 }
 0x46f   : > { %v2268_v4 = vpop.permute.xlu1 %2267  ;;  %v2339_v45 = vmul.f32 %v5999_v32, %v2227_v1 }
 0x470   : > { %v2324_v43 = vmul.f32 %v2268_v4, %v2212_v35  ;;  %v2325_v61 = vmul.f32 %v2268_v4, %v2213_v17  ;;  %v2210_v4 = vld [vmem:[%s6001_s10 + $0x60] sm:$0xff]  ;;  %v2216_v17 = vld [vmem:[%s6001_s10 + $0x90] sm:$0xff] }
 0x476   : > { %v2350_v21 = vpop.permute.xlu2 %2349 }
 0x477   : > { %v2424_v22 = vadd.f32 %v2350_v21, %v2312_v27  ;;  %v2425_v5 = vadd.f32 %v2350_v21, %v2313_v57  ;;  %v6005_v55 = vpop.permute.xlu0 %2262 }
 0x478   : > { %v2322_v11 = vmul.f32 %v6005_v55, %v2210_v4 }
 0x479   : > { %2456 = vst [vmem:[%s4787_s18 + $0x10] sm:$0xff] %v2424_v22  ;;  %v2208_v22 = vld [vmem:[%s6001_s10 + $0x50] sm:$0xff] }
 0x47a   : > { %2457 = vst [vmem:[%s4787_s18 + $0x18] sm:$0xff] %v2425_v5  ;;  %v2209_v5 = vld [vmem:[%s6001_s10 + $0x58] sm:$0xff]  ;;  %v2320_v8 = vmul.f32 %v5988_v7, %v2208_v22 }
 0x47b   : > { %v2321_v60 = vmul.f32 %v5988_v7, %v2209_v5 }
 0x47e   : > { %v2365_v30 = vpop.permute.xlu2 %2364 }
 0x47f   : > { %v2430_v59 = vadd.f32 %v2365_v30, %v2318_v54  ;;  %v2431_v53 = vadd.f32 %v2365_v30, %v2319_v33  ;;  %v2323_v54 = vmul.f32 %v6005_v55, %v2211_v38 }
 0x481   : > { %v2283_v23 = vpop.permute.xlu1 %2282  ;;  %2462 = vst [vmem:[%s4787_s18 + $0x40] sm:$0xff] %v2430_v59 }
 0x482   : > { %2463 = vst [vmem:[%s4787_s18 + $0x48] sm:$0xff] %v2431_v53  ;;  %v6015_v16 = vpop.permute.xlu0 %2277  ;;  %v2330_v0 = vmul.f32 %v2283_v23, %v2218_v50  ;;  %v2331_v19 = vmul.f32 %v2283_v23, %v2219_v34 }
 0x483   : > { %v2328_v7 = vmul.f32 %v6015_v16, %v2216_v17 }
 0x486   : > { %v2380_v39 = vpop.permute.xlu2 %2379 }
 0x487   : > { %v2436_v31 = vadd.f32 %v2380_v39, %v2324_v43  ;;  %v2437_v47 = vadd.f32 %v2380_v39, %v2325_v61  ;;  %v2214_v43 = vld [vmem:[%s6001_s10 + $0x80] sm:$0xff]  ;;  %v2215_v61 = vld [vmem:[%s6001_s10 + $0x88] sm:$0xff]  ;;  %v2217_v39 = vld [vmem:[%s6001_s10 + $0x98] sm:$0xff] }
 0x488   : > { %v2326_v55 = vmul.f32 %v5990_v58, %v2214_v43 }
 0x489   : > { %v2298_v26 = vpop.permute.xlu1 %2297  ;;  %2468 = vst [vmem:[%s4787_s18 + $0x70] sm:$0xff] %v2436_v31  ;;  %v2327_v31 = vmul.f32 %v5990_v58, %v2215_v61 }
 0x48a   : > { %2469 = vst [vmem:[%s4787_s18 + $0x78] sm:$0xff] %v2437_v47  ;;  %v6021_v13 = vpop.permute.xlu0 %2292  ;;  %v2336_v28 = vmul.f32 %v2298_v26, %v2224_v51  ;;  %v2337_v25 = vmul.f32 %v2298_v26, %v2225_v56  ;;  %v2329_v47 = vmul.f32 %v6015_v16, %v2217_v39 }
 0x48e   : > { %v2395_v24 = vpop.permute.xlu2 %2394 }
 0x48f   : > { %v2442_v49 = vadd.f32 %v2395_v24, %v2330_v0  ;;  %v2443_v37 = vadd.f32 %v2395_v24, %v2331_v19  ;;  %v2222_v19 = vld [vmem:[%s6001_s10 + $0xc0] sm:$0xff]  ;;  %v2220_v24 = vld [vmem:[%s6001_s10 + $0xb0] sm:$0xff] }
 0x490   : > { %v2334_v58 = vmul.f32 %v6021_v13, %v2222_v19  ;;  %v2332_v16 = vmul.f32 %v5994_v63, %v2220_v24 }
 0x491   : > { %2474 = vst [vmem:[%s4787_s18 + $0xa0] sm:$0xff] %v2442_v49  ;;  %v2345_v15 = vpop.permute.xlu1 %2344  ;;  %v2221_v49 = vld [vmem:[%s6001_s10 + $0xb8] sm:$0xff] }
 0x492   : > { %2475 = vst [vmem:[%s4787_s18 + $0xa8] sm:$0xff] %v2443_v37  ;;  %v6029_v9 = vpop.permute.xlu0 %2307  ;;  %v2422_v52 = vadd.f32 %v2345_v15, %v2310_v48  ;;  %v2423_v44 = vadd.f32 %v2345_v15, %v2311_v3  ;;  %v2223_v37 = vld [vmem:[%s6001_s10 + $0xc8] sm:$0xff]  ;;  %v2333_v48 = vmul.f32 %v5994_v63, %v2221_v49 }
 0x493   : > { %v2335_v3 = vmul.f32 %v6021_v13, %v2223_v37 }
 0x494   : > { %2454 = vst [vmem:[%s4787_s18] sm:$0xff] %v2422_v52 }
 0x495   : > { %2455 = vst [vmem:[%s4787_s18 + $0x8] sm:$0xff] %v2423_v44 }
 0x496   : > { %v2410_v42 = vpop.permute.xlu2 %2409 }
 0x497   : > { %v2448_v41 = vadd.f32 %v2410_v42, %v2336_v28  ;;  %v2449_v10 = vadd.f32 %v2410_v42, %v2337_v25  ;;  %v2228_v28 = vld [vmem:[%s6001_s10 + $0xf0] sm:$0xff]  ;;  %v2226_v25 = vld [vmem:[%s6001_s10 + $0xe0] sm:$0xff]  ;;  %v2341_v42 = vmul.f32 %v6029_v9, %v2229_v2 }
 0x498   : > { %v2340_v63 = vmul.f32 %v6029_v9, %v2228_v28  ;;  %v2338_v13 = vmul.f32 %v5999_v32, %v2226_v25 }
 0x499   : > { %2480 = vst [vmem:[%s4787_s18 + $0xd0] sm:$0xff] %v2448_v41  ;;  %v2360_v12 = vpop.permute.xlu1 %2359 }
 0x49a   : > { %2481 = vst [vmem:[%s4787_s18 + $0xd8] sm:$0xff] %v2449_v10  ;;  %v2355_v14 = vpop.permute.xlu0 %2354  ;;  %v2428_v18 = vadd.f32 %v2360_v12, %v2316_v36  ;;  %v2429_v21 = vadd.f32 %v2360_v12, %v2317_v20 }
 0x49b   : > { %v2426_v27 = vadd.f32 %v2355_v14, %v2314_v29  ;;  %v2427_v57 = vadd.f32 %v2355_v14, %v2315_v6 }
 0x49c   : > { %2460 = vst [vmem:[%s4787_s18 + $0x30] sm:$0xff] %v2428_v18 }
 0x49d   : > { %2458 = vst [vmem:[%s4787_s18 + $0x20] sm:$0xff] %v2426_v27 }
 0x49e   : > { %2459 = vst [vmem:[%s4787_s18 + $0x28] sm:$0xff] %v2427_v57 }
 0x49f   : > { %2461 = vst [vmem:[%s4787_s18 + $0x38] sm:$0xff] %v2429_v21 }
 0x4a1   : > { %v2375_v33 = vpop.permute.xlu1 %2374 }
 0x4a2   : > { %v2370_v30 = vpop.permute.xlu0 %2369  ;;  %v2434_v59 = vadd.f32 %v2375_v33, %v2322_v11  ;;  %v2435_v35 = vadd.f32 %v2375_v33, %v2323_v54 }
 0x4a3   : > { %v2432_v53 = vadd.f32 %v2370_v30, %v2320_v8  ;;  %v2433_v23 = vadd.f32 %v2370_v30, %v2321_v60 }
 0x4a4   : > { %2466 = vst [vmem:[%s4787_s18 + $0x60] sm:$0xff] %v2434_v59 }
 0x4a5   : > { %2464 = vst [vmem:[%s4787_s18 + $0x50] sm:$0xff] %v2432_v53 }
 0x4a6   : > { %2465 = vst [vmem:[%s4787_s18 + $0x58] sm:$0xff] %v2433_v23 }
 0x4a7   : > { %2467 = vst [vmem:[%s4787_s18 + $0x68] sm:$0xff] %v2435_v35 }
 0x4a9   : > { %v2390_v26 = vpop.permute.xlu1 %2389 }
 0x4aa   : > { %v2385_v50 = vpop.permute.xlu0 %2384  ;;  %v2440_v34 = vadd.f32 %v2390_v26, %v2328_v7  ;;  %v2441_v0 = vadd.f32 %v2390_v26, %v2329_v47 }
 0x4ab   : > { %v2438_v40 = vadd.f32 %v2385_v50, %v2326_v55  ;;  %v2439_v46 = vadd.f32 %v2385_v50, %v2327_v31 }
 0x4ac   : > { %2472 = vst [vmem:[%s4787_s18 + $0x90] sm:$0xff] %v2440_v34 }
 0x4ad   : > { %2470 = vst [vmem:[%s4787_s18 + $0x80] sm:$0xff] %v2438_v40 }
 0x4ae   : > { %2471 = vst [vmem:[%s4787_s18 + $0x88] sm:$0xff] %v2439_v46 }
 0x4af   : > { %2473 = vst [vmem:[%s4787_s18 + $0x98] sm:$0xff] %v2441_v0 }
 0x4b1   : > { %v2405_v15 = vpop.permute.xlu1 %2404 }
 0x4b2   : > { %v2400_v51 = vpop.permute.xlu0 %2399  ;;  %v2446_v56 = vadd.f32 %v2405_v15, %v2334_v58  ;;  %v2447_v62 = vadd.f32 %v2405_v15, %v2335_v3 }
 0x4b3   : > { %v2444_v52 = vadd.f32 %v2400_v51, %v2332_v16  ;;  %v2445_v44 = vadd.f32 %v2400_v51, %v2333_v48 }
 0x4b4   : > { %2478 = vst [vmem:[%s4787_s18 + $0xc0] sm:$0xff] %v2446_v56 }
 0x4b5   : > { %2476 = vst [vmem:[%s4787_s18 + $0xb0] sm:$0xff] %v2444_v52 }
 0x4b6   : > { %2477 = vst [vmem:[%s4787_s18 + $0xb8] sm:$0xff] %v2445_v44 }
 0x4b7   : > { %2479 = vst [vmem:[%s4787_s18 + $0xc8] sm:$0xff] %v2447_v62 }
 0x4b9   : > { %v2420_v41 = vpop.permute.xlu1 %2419 }
 0x4ba   : > { %v2415_v10 = vpop.permute.xlu0 %2414  ;;  %v2452_v36 = vadd.f32 %v2420_v41, %v2340_v63  ;;  %v2453_v20 = vadd.f32 %v2420_v41, %v2341_v42 }
 0x4bb   : > { %v2450_v29 = vadd.f32 %v2415_v10, %v2338_v13  ;;  %v2451_v6 = vadd.f32 %v2415_v10, %v2339_v45 }
 0x4bc   : > { %2484 = vst [vmem:[%s4787_s18 + $0xf0] sm:$0xff] %v2452_v36 }
 0x4bd   : > { %2482 = vst [vmem:[%s4787_s18 + $0xe0] sm:$0xff] %v2450_v29 }
 0x4be   : > { %2483 = vst [vmem:[%s4787_s18 + $0xe8] sm:$0xff] %v2451_v6 }
 0x4bf   : > { %2485 = vst [vmem:[%s4787_s18 + $0xf8] sm:$0xff] %v2453_v20 }
 0x4c0 PF: > { %2492 = sbr.rel (!%p4213_p9) target bundleno = 1422 (0x58e), region = 130  ;;  %s6766_s3 = sld [smem:[#allocation17_spill]] (%p4213_p9) }
 0x4c5   : > { %s6812_s28 = smov (%p700_p7, %s3943_s28), 0 }
 0x4c6   : > { %s3238_s17 = sshll.u32 %s6812_s28, 1  ;;  %s3275_s15 = sshll.u32 %s6812_s28, 4 }
 0x4c7   : > { %s2496_s16 = ssub.s32 7, %s3238_s17  ;;  %s6103_s30 = scalar_lea.vmem %s6766_s3, %s3275_s15  }
 0x4c8   : > { %p2497_p13 = scmp.lt.s32.totalorder %s2496_s16, 2 }
 0x4ca   : > { %s6814_s16 = smov (!%p2497_p13, %s2496_s16), 2 }
 0x4cb   : > { %s3239_s27 = sshll.u32 %s6814_s16, 7  ;;  %s6105_s24 = sshll.u32 %s6814_s16, 3 }
 0x4cc   : > { %p3243_p0 = scmp.eq.s32.totalorder %s3239_s27, 0 }
 0x4cd   : > { %p2507_p9 = scmp.lt.u32.totalorder (!%p3243_p0), %s6105_s24, 8 }
 0x4ce   : > { %2506 = sbr.rel (%p3243_p0) target bundleno = 1422 (0x58e), region = 134 }
 0x4d3   : > { %2510 = sbr.rel (%p2507_p9) target bundleno = 1398 (0x576), region = 138  ;;  %s6109_s29 = sand.u32 (!%p2507_p9), 7, %s6105_s24  }
 0x4d4   : > { %p2557_p1 = scmp.eq.s32.totalorder (!%p2507_p9), %s6109_s29, 0  ;;  %p3244_p2 = scmp.ne.s32.totalorder (!%p2507_p9), %s6109_s29, 0 }
 0x4d8   : > { %2560 = sbr.rel (%p3244_p2) target bundleno = 1309 (0x51d), region = 153  ;;  %s2561_s28 = sshrl.u32 (!%p3244_p2), %s6105_s24, 3 }
 0x4d9   : > { %s6116_s21 = sshrl.u32 (!%p3244_p2), %s2561_s28, 1 }
 0x4da   : > { %p3245_p3 = scmp.le.s32.totalorder (!%p3244_p2), %s6116_s21, 0 }
 0x4dd   : > { %3047 = sbr.rel (%p3245_p3) target bundleno = 1283 (0x503), region = 303  ;;  %s6767_s26 = smov (!%p3245_p3), %s6103_s30 }
 0x4de   : > { %s6768_s11 = smov (!%p3245_p3), %s4787_s18  ;;  %s6125_s13 = smov (!%p3245_p3), 0  }
 0x4df   : > { %s6127_s12 = smov (!%p3245_p3), 0  }
 0x4e2 LB: >> { %v2572_v32 = vld [vmem:[%s4031_s11] sm:$0xff]  ;;  %v2574_v9 = vld [vmem:[%s4031_s11 + $0x8] sm:$0xff]  ;;  %v2576_v12 = vld [vmem:[%s4031_s11 + $0x10] sm:$0xff]  ;;  %s2636_s8 = sadd.s32 1, %s4035_s13  ;;  %s2566_s12 = sadd.s32 1, %s4039_s12   ;;  %s4039_s12 = sphi %s6127_s12, %s2566_s12   ;;  %s4035_s13 = sphi %s6125_s13, %s6771_s13   ;;  %s4031_s11 = sphi %s6768_s11, %s6770_s11   ;;  %s4027_s26 = sphi %s6767_s26, %s6769_s26  }
 0x4e3   : >> { %2573 = vst [vmem:[%s4027_s26] sm:$0xff] %v2572_v32  ;;  %v2578_v14 = vld [vmem:[%s4031_s11 + $0x18] sm:$0xff]  ;;  %p2637_p4 = scmp.ge.s32.totalorder %s2636_s8, %s6116_s21  ;;  %v2580_v18 = vld [vmem:[%s4031_s11 + $0x20] sm:$0xff]  ;;  %v2582_v27 = vld [vmem:[%s4031_s11 + $0x28] sm:$0xff]  ;;  %p2565_p5 = scmp.ge.s32.totalorder %s2566_s12, %s6116_s21 }
 0x4e4   : >> { %2575 = vst [vmem:[%s4027_s26 + $0x8] sm:$0xff] %v2574_v9  ;;  %v2584_v57 = vld [vmem:[%s4031_s11 + $0x30] sm:$0xff]  ;;  %v2586_v21 = vld [vmem:[%s4031_s11 + $0x38] sm:$0xff]  ;;  %v2588_v4 = vld [vmem:[%s4031_s11 + $0x40] sm:$0xff] }
 0x4e5   : >> { %2577 = vst [vmem:[%s4027_s26 + $0x38] sm:$0xff] %v2576_v12  ;;  %s6816_s8 = smov (%p2637_p4, %s2636_s8), 0  ;;  %v2590_v22 = vld [vmem:[%s4031_s11 + $0x48] sm:$0xff]  ;;  %v2592_v5 = vld [vmem:[%s4031_s11 + $0x50] sm:$0xff]  ;;  %v2594_v38 = vld [vmem:[%s4031_s11 + $0x58] sm:$0xff] }
 0x4e6   : >> { %2579 = vst [vmem:[%s4027_s26 + $0x40] sm:$0xff] %v2578_v14  ;;  %s3246_s22 = sshll.u32 %s6816_s8, 4  ;;  %v2596_v11 = vld [vmem:[%s4031_s11 + $0x60] sm:$0xff]  ;;  %v2598_v8 = vld [vmem:[%s4031_s11 + $0x68] sm:$0xff]  ;;  %v2600_v60 = vld [vmem:[%s4031_s11 + $0x70] sm:$0xff]  ;;  %s6771_s13 = smov %s6816_s8 }
 0x4e7   : >> { %2581 = vst [vmem:[%s4027_s26 + $0x70] sm:$0xff] %v2580_v18  ;;  %s6159_s20 = scalar_lea.vmem %s4787_s18, %s3246_s22 [#allocation7]   ;;  %s6162_s23 = scalar_lea.vmem %s6103_s30, %s3246_s22   ;;  %v2602_v54 = vld [vmem:[%s4031_s11 + $0x78] sm:$0xff]  ;;  %v2604_v33 = vld [vmem:[%s4031_s11 + $0x80] sm:$0xff]  ;;  %v2606_v30 = vld [vmem:[%s4031_s11 + $0x88] sm:$0xff] }
 0x4e8   : >> { %2583 = vst [vmem:[%s4027_s26 + $0x78] sm:$0xff] %v2582_v27  ;;  %v2608_v59 = vld [vmem:[%s4031_s11 + $0x90] sm:$0xff]  ;;  %v2610_v53 = vld [vmem:[%s4031_s11 + $0x98] sm:$0xff]  ;;  %v2612_v23 = vld [vmem:[%s4031_s11 + $0xa0] sm:$0xff] }
 0x4e9   : >> { %2585 = vst [vmem:[%s4027_s26 + $0xa8] sm:$0xff] %v2584_v57  ;;  %v2614_v35 = vld [vmem:[%s4031_s11 + $0xa8] sm:$0xff]  ;;  %v2616_v17 = vld [vmem:[%s4031_s11 + $0xb0] sm:$0xff]  ;;  %v2618_v43 = vld [vmem:[%s4031_s11 + $0xb8] sm:$0xff] }
 0x4ea   : >> { %2587 = vst [vmem:[%s4027_s26 + $0xb0] sm:$0xff] %v2586_v21  ;;  %v2620_v61 = vld [vmem:[%s4031_s11 + $0xc0] sm:$0xff]  ;;  %v2622_v39 = vld [vmem:[%s4031_s11 + $0xc8] sm:$0xff]  ;;  %v2624_v7 = vld [vmem:[%s4031_s11 + $0xd0] sm:$0xff] }
 0x4eb   : >> { %2589 = vst [vmem:[%s4027_s26 + $0xe0] sm:$0xff] %v2588_v4  ;;  %v2626_v55 = vld [vmem:[%s4031_s11 + $0xd8] sm:$0xff]  ;;  %v2628_v31 = vld [vmem:[%s4031_s11 + $0xe0] sm:$0xff]  ;;  %v2630_v47 = vld [vmem:[%s4031_s11 + $0xe8] sm:$0xff] }
 0x4ec   : >> { %2591 = vst [vmem:[%s4027_s26 + $0xe8] sm:$0xff] %v2590_v22  ;;  %v2632_v26 = vld [vmem:[%s4031_s11 + $0xf0] sm:$0xff]  ;;  %v2634_v50 = vld [vmem:[%s4031_s11 + $0xf8] sm:$0xff]  ;;  %s6770_s11 = smov %s6159_s20 }
 0x4ed   : >> { %2593 = vst [vmem:[%s4027_s26 + $0x118] sm:$0xff] %v2592_v5 }
 0x4ee   : >> { %2595 = vst [vmem:[%s4027_s26 + $0x120] sm:$0xff] %v2594_v38 }
 0x4ef   : >> { %2597 = vst [vmem:[%s4027_s26 + $0x150] sm:$0xff] %v2596_v11 }
 0x4f0   : >> { %2599 = vst [vmem:[%s4027_s26 + $0x158] sm:$0xff] %v2598_v8 }
 0x4f1   : >> { %2601 = vst [vmem:[%s4027_s26 + $0x188] sm:$0xff] %v2600_v60 }
 0x4f2   : >> { %2603 = vst [vmem:[%s4027_s26 + $0x190] sm:$0xff] %v2602_v54 }
 0x4f3   : >> { %2605 = vst [vmem:[%s4027_s26 + $0x1c0] sm:$0xff] %v2604_v33 }
 0x4f4   : >> { %2607 = vst [vmem:[%s4027_s26 + $0x1c8] sm:$0xff] %v2606_v30 }
 0x4f5   : >> { %2609 = vst [vmem:[%s4027_s26 + $0x1f8] sm:$0xff] %v2608_v59 }
 0x4f6   : >> { %2611 = vst [vmem:[%s4027_s26 + $0x200] sm:$0xff] %v2610_v53 }
 0x4f7   : >> { %2613 = vst [vmem:[%s4027_s26 + $0x230] sm:$0xff] %v2612_v23 }
 0x4f8   : >> { %2615 = vst [vmem:[%s4027_s26 + $0x238] sm:$0xff] %v2614_v35 }
 0x4f9   : >> { %2617 = vst [vmem:[%s4027_s26 + $0x268] sm:$0xff] %v2616_v17 }
 0x4fa   : >> { %2619 = vst [vmem:[%s4027_s26 + $0x270] sm:$0xff] %v2618_v43 }
 0x4fb   : >> { %2621 = vst [vmem:[%s4027_s26 + $0x2a0] sm:$0xff] %v2620_v61 }
 0x4fc   : >> { %2623 = vst [vmem:[%s4027_s26 + $0x2a8] sm:$0xff] %v2622_v39 }
 0x4fd   : >> { %2625 = vst [vmem:[%s4027_s26 + $0x2d8] sm:$0xff] %v2624_v7 }
 0x4fe   : >> { %2627 = vst [vmem:[%s4027_s26 + $0x2e0] sm:$0xff] %v2626_v55  ;;  %2568 = sbr.rel (!%p2565_p5) target bundleno = 1250 (0x4e2), region = 309 }
 0x4ff   : >> { %2629 = vst [vmem:[%s4027_s26 + $0x310] sm:$0xff] %v2628_v31 }
 0x500   : >> { %2631 = vst [vmem:[%s4027_s26 + $0x318] sm:$0xff] %v2630_v47 }
 0x501   : >> { %2633 = vst [vmem:[%s4027_s26 + $0x348] sm:$0xff] %v2632_v26 }
 0x502   : >> { %2635 = vst [vmem:[%s4027_s26 + $0x350] sm:$0xff] %v2634_v50  ;;  %s6769_s26 = smov %s6162_s23 }
 0x503 PF: > { %s6228_s7 = sand.u32 1, %s2561_s28   ;;  %s3276_s25 = sshll.u32 %s6116_s21, 4 }
 0x504   : > { %s6232_s10 = scalar_lea.vmem %s4787_s18, %s3276_s25 [#allocation7]   ;;  %s6235_s17 = scalar_lea.vmem %s6103_s30, %s3276_s25  }
 0x505   : > { %p3251_p6 = scmp.le.s32.totalorder %s6228_s7, 0 }
 0x506   : > { %s6772_s15 = smov (!%p3251_p6), %s6235_s17  ;;  %s6773_s16 = smov (!%p3251_p6), %s6232_s10 }
 0x507   : > { %3061 = sbr.rel (%p3251_p6) target bundleno = 1309 (0x51d), region = 314  ;;  %s6244_s19 = smov (!%p3251_p6), 0  }
 0x508   : > { %s6246_s14 = smov (!%p3251_p6), 0  }
 0x50c LB: >> { %v2659_v34 = vld [vmem:[%s4047_s16] sm:$0xff]  ;;  %v2661_v40 = vld [vmem:[%s4047_s16 + $0x10] sm:$0xff]  ;;  %s2691_s3 = sadd.s32 1, %s4051_s19  ;;  %s2653_s14 = sadd.s32 1, %s4055_s14   ;;  %s4055_s14 = sphi %s6246_s14, %s2653_s14   ;;  %s4051_s19 = sphi %s6244_s19, %s6776_s19   ;;  %s4047_s16 = sphi %s6773_s16, %s6775_s16   ;;  %s4043_s15 = sphi %s6772_s15, %s6774_s15  }
 0x50d   : >> { %v2663_v46 = vld [vmem:[%s4047_s16 + $0x20] sm:$0xff]  ;;  %2660 = vst [vmem:[%s4043_s15] sm:$0xff] %v2659_v34  ;;  %v2665_v0 = vld [vmem:[%s4047_s16 + $0x30] sm:$0xff]  ;;  %p2692_p7 = scmp.ge.s32.totalorder %s2691_s3, %s6228_s7  ;;  %p2652_p8 = scmp.ge.s32.totalorder %s2653_s14, %s6228_s7 }
 0x50e   : >> { %2662 = vst [vmem:[%s4043_s15 + $0x38] sm:$0xff] %v2661_v40  ;;  %v2667_v19 = vld [vmem:[%s4047_s16 + $0x40] sm:$0xff]  ;;  %v2669_v24 = vld [vmem:[%s4047_s16 + $0x50] sm:$0xff] }
 0x50f   : >> { %2664 = vst [vmem:[%s4043_s15 + $0x70] sm:$0xff] %v2663_v46  ;;  %s6818_s3 = smov (%p2692_p7, %s2691_s3), 0  ;;  %v2671_v49 = vld [vmem:[%s4047_s16 + $0x60] sm:$0xff]  ;;  %v2673_v37 = vld [vmem:[%s4047_s16 + $0x70] sm:$0xff] }
 0x510   : >> { %2666 = vst [vmem:[%s4043_s15 + $0xa8] sm:$0xff] %v2665_v0  ;;  %s3252_s27 = sshll.u32 %s6818_s3, 3  ;;  %v2675_v58 = vld [vmem:[%s4047_s16 + $0x80] sm:$0xff]  ;;  %v2677_v16 = vld [vmem:[%s4047_s16 + $0x90] sm:$0xff]  ;;  %s6776_s19 = smov %s6818_s3 }
 0x511   : >> { %2668 = vst [vmem:[%s4043_s15 + $0xe0] sm:$0xff] %v2667_v19  ;;  %s2696_s28 = scalar_lea.vmem %s6232_s10, %s3252_s27 [#allocation7]   ;;  %s2697_s21 = scalar_lea.vmem %s6235_s17, %s3252_s27   ;;  %v2679_v48 = vld [vmem:[%s4047_s16 + $0xa0] sm:$0xff]  ;;  %v2681_v3 = vld [vmem:[%s4047_s16 + $0xb0] sm:$0xff] }
 0x512   : >> { %2670 = vst [vmem:[%s4043_s15 + $0x118] sm:$0xff] %v2669_v24  ;;  %v2683_v15 = vld [vmem:[%s4047_s16 + $0xc0] sm:$0xff]  ;;  %v2685_v51 = vld [vmem:[%s4047_s16 + $0xd0] sm:$0xff] }
 0x513   : >> { %2672 = vst [vmem:[%s4043_s15 + $0x150] sm:$0xff] %v2671_v49  ;;  %v2687_v56 = vld [vmem:[%s4047_s16 + $0xe0] sm:$0xff]  ;;  %v2689_v52 = vld [vmem:[%s4047_s16 + $0xf0] sm:$0xff]  ;;  %s6775_s16 = smov %s2696_s28 }
 0x514   : >> { %2674 = vst [vmem:[%s4043_s15 + $0x188] sm:$0xff] %v2673_v37 }
 0x515   : >> { %2676 = vst [vmem:[%s4043_s15 + $0x1c0] sm:$0xff] %v2675_v58 }
 0x516   : >> { %2678 = vst [vmem:[%s4043_s15 + $0x1f8] sm:$0xff] %v2677_v16 }
 0x517   : >> { %2680 = vst [vmem:[%s4043_s15 + $0x230] sm:$0xff] %v2679_v48 }
 0x518   : >> { %2682 = vst [vmem:[%s4043_s15 + $0x268] sm:$0xff] %v2681_v3  ;;  %2655 = sbr.rel (!%p2652_p8) target bundleno = 1292 (0x50c), region = 320 }
 0x519   : >> { %2684 = vst [vmem:[%s4043_s15 + $0x2a0] sm:$0xff] %v2683_v15 }
 0x51a   : >> { %2686 = vst [vmem:[%s4043_s15 + $0x2d8] sm:$0xff] %v2685_v51 }
 0x51b   : >> { %2688 = vst [vmem:[%s4043_s15 + $0x310] sm:$0xff] %v2687_v56 }
 0x51c   : >> { %2690 = vst [vmem:[%s4043_s15 + $0x348] sm:$0xff] %v2689_v52  ;;  %s6774_s15 = smov %s2697_s21 }
 0x51d PF: > { %2700 = sbr.rel (%p2557_p1) target bundleno = 1398 (0x576), region = 171  ;;  %s2702_s26 = ssub.s32 (!%p2557_p1), %s6105_s24, %s6109_s29 }
 0x51e   : > { %s2706_s11 = sshrl.u32 (!%p2557_p1), %s6105_s24, 3  ;;  %s6313_s13 = scalar_lea.vmem (!%p2557_p1), %s4787_s18, %s2702_s26 [#allocation7] }
 0x51f   : > { %s6316_s12 = scalar_lea.vmem (!%p2557_p1), %s6103_s30, %s2702_s26  ;;  %s6320_s8 = sshrl.u32 (!%p2557_p1), %s2706_s11, 1 }
 0x520   : > { %p3254_p10 = scmp.le.s32.totalorder (!%p2557_p1), %s6320_s8, 0 }
 0x522   : > { %3075 = sbr.rel (%p3254_p10) target bundleno = 1352 (0x548), region = 325  ;;  %s6777_s22 = smov (!%p3254_p10), %s6103_s30 }
 0x523   : > { %s6778_s20 = smov (!%p3254_p10), %s4787_s18  ;;  %s6329_s23 = smov (!%p3254_p10), 0  }
 0x524   : > { %s6331_s7 = smov (!%p3254_p10), 0  }
 0x527 LB: >> { %v2717_v44 = vld [vmem:[%s4063_s20] sm:$0xff]  ;;  %v2719_v62 = vld [vmem:[%s4063_s20 + $0x8] sm:$0xff]  ;;  %v2721_v28 = vld [vmem:[%s4063_s20 + $0x10] sm:$0xff]  ;;  %s2781_s25 = sadd.s32 1, %s4067_s23  ;;  %s2711_s7 = sadd.s32 1, %s4071_s7   ;;  %s4071_s7 = sphi %s6331_s7, %s2711_s7   ;;  %s4067_s23 = sphi %s6329_s23, %s6781_s23   ;;  %s4063_s20 = sphi %s6778_s20, %s6780_s20   ;;  %s4059_s22 = sphi %s6777_s22, %s6779_s22  }
 0x528   : >> { %2718 = vst [vmem:[%s4059_s22] sm:$0xff] %v2717_v44  ;;  %v2723_v25 = vld [vmem:[%s4063_s20 + $0x18] sm:$0xff]  ;;  %p2782_p11 = scmp.ge.s32.totalorder %s2781_s25, %s6320_s8  ;;  %v2725_v1 = vld [vmem:[%s4063_s20 + $0x20] sm:$0xff]  ;;  %v2727_v2 = vld [vmem:[%s4063_s20 + $0x28] sm:$0xff]  ;;  %p2710_p12 = scmp.ge.s32.totalorder %s2711_s7, %s6320_s8 }
 0x529   : >> { %2720 = vst [vmem:[%s4059_s22 + $0x8] sm:$0xff] %v2719_v62  ;;  %v2729_v63 = vld [vmem:[%s4063_s20 + $0x30] sm:$0xff]  ;;  %v2731_v13 = vld [vmem:[%s4063_s20 + $0x38] sm:$0xff]  ;;  %v2733_v45 = vld [vmem:[%s4063_s20 + $0x40] sm:$0xff] }
 0x52a   : >> { %2722 = vst [vmem:[%s4059_s22 + $0x38] sm:$0xff] %v2721_v28  ;;  %s6820_s25 = smov (%p2782_p11, %s2781_s25), 0  ;;  %v2735_v42 = vld [vmem:[%s4063_s20 + $0x48] sm:$0xff]  ;;  %v2737_v41 = vld [vmem:[%s4063_s20 + $0x50] sm:$0xff]  ;;  %v2739_v10 = vld [vmem:[%s4063_s20 + $0x58] sm:$0xff] }
 0x52b   : >> { %2724 = vst [vmem:[%s4059_s22 + $0x40] sm:$0xff] %v2723_v25  ;;  %s3255_s10 = sshll.u32 %s6820_s25, 4  ;;  %v2741_v36 = vld [vmem:[%s4063_s20 + $0x60] sm:$0xff]  ;;  %v2743_v29 = vld [vmem:[%s4063_s20 + $0x68] sm:$0xff]  ;;  %v2745_v6 = vld [vmem:[%s4063_s20 + $0x70] sm:$0xff]  ;;  %s6781_s23 = smov %s6820_s25 }
 0x52c   : >> { %2726 = vst [vmem:[%s4059_s22 + $0x70] sm:$0xff] %v2725_v1  ;;  %s6363_s17 = scalar_lea.vmem %s4787_s18, %s3255_s10 [#allocation7]   ;;  %s6366_s15 = scalar_lea.vmem %s6103_s30, %s3255_s10   ;;  %v2747_v20 = vld [vmem:[%s4063_s20 + $0x78] sm:$0xff]  ;;  %v2749_v32 = vld [vmem:[%s4063_s20 + $0x80] sm:$0xff]  ;;  %v2751_v9 = vld [vmem:[%s4063_s20 + $0x88] sm:$0xff] }
 0x52d   : >> { %2728 = vst [vmem:[%s4059_s22 + $0x78] sm:$0xff] %v2727_v2  ;;  %v2753_v12 = vld [vmem:[%s4063_s20 + $0x90] sm:$0xff]  ;;  %v2755_v14 = vld [vmem:[%s4063_s20 + $0x98] sm:$0xff]  ;;  %v2757_v18 = vld [vmem:[%s4063_s20 + $0xa0] sm:$0xff] }
 0x52e   : >> { %2730 = vst [vmem:[%s4059_s22 + $0xa8] sm:$0xff] %v2729_v63  ;;  %v2759_v27 = vld [vmem:[%s4063_s20 + $0xa8] sm:$0xff]  ;;  %v2761_v57 = vld [vmem:[%s4063_s20 + $0xb0] sm:$0xff]  ;;  %v2763_v21 = vld [vmem:[%s4063_s20 + $0xb8] sm:$0xff] }
 0x52f   : >> { %2732 = vst [vmem:[%s4059_s22 + $0xb0] sm:$0xff] %v2731_v13  ;;  %v2765_v4 = vld [vmem:[%s4063_s20 + $0xc0] sm:$0xff]  ;;  %v2767_v22 = vld [vmem:[%s4063_s20 + $0xc8] sm:$0xff]  ;;  %v2769_v5 = vld [vmem:[%s4063_s20 + $0xd0] sm:$0xff] }
 0x530   : >> { %2734 = vst [vmem:[%s4059_s22 + $0xe0] sm:$0xff] %v2733_v45  ;;  %v2771_v38 = vld [vmem:[%s4063_s20 + $0xd8] sm:$0xff]  ;;  %v2773_v11 = vld [vmem:[%s4063_s20 + $0xe0] sm:$0xff]  ;;  %v2775_v8 = vld [vmem:[%s4063_s20 + $0xe8] sm:$0xff] }
 0x531   : >> { %2736 = vst [vmem:[%s4059_s22 + $0xe8] sm:$0xff] %v2735_v42  ;;  %v2777_v60 = vld [vmem:[%s4063_s20 + $0xf0] sm:$0xff]  ;;  %v2779_v54 = vld [vmem:[%s4063_s20 + $0xf8] sm:$0xff]  ;;  %s6780_s20 = smov %s6363_s17 }
 0x532   : >> { %2738 = vst [vmem:[%s4059_s22 + $0x118] sm:$0xff] %v2737_v41 }
 0x533   : >> { %2740 = vst [vmem:[%s4059_s22 + $0x120] sm:$0xff] %v2739_v10 }
 0x534   : >> { %2742 = vst [vmem:[%s4059_s22 + $0x150] sm:$0xff] %v2741_v36 }
 0x535   : >> { %2744 = vst [vmem:[%s4059_s22 + $0x158] sm:$0xff] %v2743_v29 }
 0x536   : >> { %2746 = vst [vmem:[%s4059_s22 + $0x188] sm:$0xff] %v2745_v6 }
 0x537   : >> { %2748 = vst [vmem:[%s4059_s22 + $0x190] sm:$0xff] %v2747_v20 }
 0x538   : >> { %2750 = vst [vmem:[%s4059_s22 + $0x1c0] sm:$0xff] %v2749_v32 }
 0x539   : >> { %2752 = vst [vmem:[%s4059_s22 + $0x1c8] sm:$0xff] %v2751_v9 }
 0x53a   : >> { %2754 = vst [vmem:[%s4059_s22 + $0x1f8] sm:$0xff] %v2753_v12 }
 0x53b   : >> { %2756 = vst [vmem:[%s4059_s22 + $0x200] sm:$0xff] %v2755_v14 }
 0x53c   : >> { %2758 = vst [vmem:[%s4059_s22 + $0x230] sm:$0xff] %v2757_v18 }
 0x53d   : >> { %2760 = vst [vmem:[%s4059_s22 + $0x238] sm:$0xff] %v2759_v27 }
 0x53e   : >> { %2762 = vst [vmem:[%s4059_s22 + $0x268] sm:$0xff] %v2761_v57 }
 0x53f   : >> { %2764 = vst [vmem:[%s4059_s22 + $0x270] sm:$0xff] %v2763_v21 }
 0x540   : >> { %2766 = vst [vmem:[%s4059_s22 + $0x2a0] sm:$0xff] %v2765_v4 }
 0x541   : >> { %2768 = vst [vmem:[%s4059_s22 + $0x2a8] sm:$0xff] %v2767_v22 }
 0x542   : >> { %2770 = vst [vmem:[%s4059_s22 + $0x2d8] sm:$0xff] %v2769_v5 }
 0x543   : >> { %2772 = vst [vmem:[%s4059_s22 + $0x2e0] sm:$0xff] %v2771_v38  ;;  %2713 = sbr.rel (!%p2710_p12) target bundleno = 1319 (0x527), region = 331 }
 0x544   : >> { %2774 = vst [vmem:[%s4059_s22 + $0x310] sm:$0xff] %v2773_v11 }
 0x545   : >> { %2776 = vst [vmem:[%s4059_s22 + $0x318] sm:$0xff] %v2775_v8 }
 0x546   : >> { %2778 = vst [vmem:[%s4059_s22 + $0x348] sm:$0xff] %v2777_v60 }
 0x547   : >> { %2780 = vst [vmem:[%s4059_s22 + $0x350] sm:$0xff] %v2779_v54  ;;  %s6779_s22 = smov %s6366_s15 }
 0x548 PF: > { %s6432_s16 = sand.u32 1, %s2706_s11   ;;  %s3278_s19 = sshll.u32 %s6320_s8, 4 }
 0x549   : > { %s6436_s14 = scalar_lea.vmem %s4787_s18, %s3278_s19 [#allocation7]   ;;  %s6439_s3 = scalar_lea.vmem %s6103_s30, %s3278_s19  }
 0x54a   : > { %p3260_p13 = scmp.le.s32.totalorder %s6432_s16, 0 }
 0x54b   : > { %s6782_s27 = smov (!%p3260_p13), %s6439_s3  ;;  %s6783_s28 = smov (!%p3260_p13), %s6436_s14 }
 0x54c   : > { %3089 = sbr.rel (%p3260_p13) target bundleno = 1378 (0x562), region = 336  ;;  %s6448_s21 = smov (!%p3260_p13), 0  }
 0x54d   : > { %s6450_s26 = smov (!%p3260_p13), 0  }
 0x551 LB: >> { %v2804_v33 = vld [vmem:[%s4079_s28] sm:$0xff]  ;;  %v2806_v30 = vld [vmem:[%s4079_s28 + $0x10] sm:$0xff]  ;;  %s2836_s11 = sadd.s32 1, %s4083_s21  ;;  %s2798_s26 = sadd.s32 1, %s4087_s26   ;;  %s4087_s26 = sphi %s6450_s26, %s2798_s26   ;;  %s4083_s21 = sphi %s6448_s21, %s6786_s21   ;;  %s4079_s28 = sphi %s6783_s28, %s6785_s28   ;;  %s4075_s27 = sphi %s6782_s27, %s6784_s27  }
 0x552   : >> { %v2808_v59 = vld [vmem:[%s4079_s28 + $0x20] sm:$0xff]  ;;  %2805 = vst [vmem:[%s4075_s27] sm:$0xff] %v2804_v33  ;;  %v2810_v53 = vld [vmem:[%s4079_s28 + $0x30] sm:$0xff]  ;;  %p2837_p0 = scmp.ge.s32.totalorder %s2836_s11, %s6432_s16  ;;  %p2797_p9 = scmp.ge.s32.totalorder %s2798_s26, %s6432_s16 }
 0x553   : >> { %2807 = vst [vmem:[%s4075_s27 + $0x38] sm:$0xff] %v2806_v30  ;;  %v2812_v23 = vld [vmem:[%s4079_s28 + $0x40] sm:$0xff]  ;;  %v2814_v35 = vld [vmem:[%s4079_s28 + $0x50] sm:$0xff] }
 0x554   : >> { %2809 = vst [vmem:[%s4075_s27 + $0x70] sm:$0xff] %v2808_v59  ;;  %s6822_s11 = smov (%p2837_p0, %s2836_s11), 0  ;;  %v2816_v17 = vld [vmem:[%s4079_s28 + $0x60] sm:$0xff]  ;;  %v2818_v43 = vld [vmem:[%s4079_s28 + $0x70] sm:$0xff] }
 0x555   : >> { %2811 = vst [vmem:[%s4075_s27 + $0xa8] sm:$0xff] %v2810_v53  ;;  %s3261_s8 = sshll.u32 %s6822_s11, 3  ;;  %v2820_v61 = vld [vmem:[%s4079_s28 + $0x80] sm:$0xff]  ;;  %v2822_v39 = vld [vmem:[%s4079_s28 + $0x90] sm:$0xff]  ;;  %s6786_s21 = smov %s6822_s11 }
 0x556   : >> { %2813 = vst [vmem:[%s4075_s27 + $0xe0] sm:$0xff] %v2812_v23  ;;  %s2841_s22 = scalar_lea.vmem %s6436_s14, %s3261_s8 [#allocation7]   ;;  %s2842_s20 = scalar_lea.vmem %s6439_s3, %s3261_s8   ;;  %v2824_v7 = vld [vmem:[%s4079_s28 + $0xa0] sm:$0xff]  ;;  %v2826_v55 = vld [vmem:[%s4079_s28 + $0xb0] sm:$0xff] }
 0x557   : >> { %2815 = vst [vmem:[%s4075_s27 + $0x118] sm:$0xff] %v2814_v35  ;;  %v2828_v31 = vld [vmem:[%s4079_s28 + $0xc0] sm:$0xff]  ;;  %v2830_v47 = vld [vmem:[%s4079_s28 + $0xd0] sm:$0xff] }
 0x558   : >> { %2817 = vst [vmem:[%s4075_s27 + $0x150] sm:$0xff] %v2816_v17  ;;  %v2832_v26 = vld [vmem:[%s4079_s28 + $0xe0] sm:$0xff]  ;;  %v2834_v50 = vld [vmem:[%s4079_s28 + $0xf0] sm:$0xff]  ;;  %s6785_s28 = smov %s2841_s22 }
 0x559   : >> { %2819 = vst [vmem:[%s4075_s27 + $0x188] sm:$0xff] %v2818_v43 }
 0x55a   : >> { %2821 = vst [vmem:[%s4075_s27 + $0x1c0] sm:$0xff] %v2820_v61 }
 0x55b   : >> { %2823 = vst [vmem:[%s4075_s27 + $0x1f8] sm:$0xff] %v2822_v39 }
 0x55c   : >> { %2825 = vst [vmem:[%s4075_s27 + $0x230] sm:$0xff] %v2824_v7 }
 0x55d   : >> { %2827 = vst [vmem:[%s4075_s27 + $0x268] sm:$0xff] %v2826_v55  ;;  %2800 = sbr.rel (!%p2797_p9) target bundleno = 1361 (0x551), region = 342 }
 0x55e   : >> { %2829 = vst [vmem:[%s4075_s27 + $0x2a0] sm:$0xff] %v2828_v31 }
 0x55f   : >> { %2831 = vst [vmem:[%s4075_s27 + $0x2d8] sm:$0xff] %v2830_v47 }
 0x560   : >> { %2833 = vst [vmem:[%s4075_s27 + $0x310] sm:$0xff] %v2832_v26 }
 0x561   : >> { %2835 = vst [vmem:[%s4075_s27 + $0x348] sm:$0xff] %v2834_v50  ;;  %s6784_s27 = smov %s2842_s20 }
 0x562 PF: > { %s4094_s23 = smov 1  }
 0x563   : > { %s2843_s7 = sshll.u32 %s4094_s23, %s6109_s29 }
 0x564   : > { %s6512_s25 = sadd.s32 4294967295, %s2843_s7 }
 0x565   : > { %v2853_v34 = vld [vmem:[%s6313_s13] sm:%s6512_s25]  ;;  %v2855_v40 = vld [vmem:[%s6313_s13 + $0x10] sm:%s6512_s25] }
 0x566   : > { %2854 = vst [vmem:[%s6316_s12] sm:%s6512_s25] %v2853_v34  ;;  %v2857_v46 = vld [vmem:[%s6313_s13 + $0x20] sm:%s6512_s25] }
 0x567   : > { %2856 = vst [vmem:[%s6316_s12 + $0x38] sm:%s6512_s25] %v2855_v40  ;;  %v2859_v0 = vld [vmem:[%s6313_s13 + $0x30] sm:%s6512_s25] }
 0x568   : > { %2858 = vst [vmem:[%s6316_s12 + $0x70] sm:%s6512_s25] %v2857_v46  ;;  %v2861_v19 = vld [vmem:[%s6313_s13 + $0x40] sm:%s6512_s25] }
 0x569   : > { %2860 = vst [vmem:[%s6316_s12 + $0xa8] sm:%s6512_s25] %v2859_v0  ;;  %v2863_v24 = vld [vmem:[%s6313_s13 + $0x50] sm:%s6512_s25] }
 0x56a   : > { %2862 = vst [vmem:[%s6316_s12 + $0xe0] sm:%s6512_s25] %v2861_v19  ;;  %v2865_v49 = vld [vmem:[%s6313_s13 + $0x60] sm:%s6512_s25] }
 0x56b   : > { %2864 = vst [vmem:[%s6316_s12 + $0x118] sm:%s6512_s25] %v2863_v24  ;;  %v2867_v37 = vld [vmem:[%s6313_s13 + $0x70] sm:%s6512_s25] }
 0x56c   : > { %2866 = vst [vmem:[%s6316_s12 + $0x150] sm:%s6512_s25] %v2865_v49  ;;  %v2869_v58 = vld [vmem:[%s6313_s13 + $0x80] sm:%s6512_s25] }
 0x56d   : > { %2868 = vst [vmem:[%s6316_s12 + $0x188] sm:%s6512_s25] %v2867_v37  ;;  %v2871_v16 = vld [vmem:[%s6313_s13 + $0x90] sm:%s6512_s25] }
 0x56e   : > { %2870 = vst [vmem:[%s6316_s12 + $0x1c0] sm:%s6512_s25] %v2869_v58  ;;  %v2873_v48 = vld [vmem:[%s6313_s13 + $0xa0] sm:%s6512_s25] }
 0x56f   : > { %2872 = vst [vmem:[%s6316_s12 + $0x1f8] sm:%s6512_s25] %v2871_v16  ;;  %v2875_v3 = vld [vmem:[%s6313_s13 + $0xb0] sm:%s6512_s25] }
 0x570   : > { %2874 = vst [vmem:[%s6316_s12 + $0x230] sm:%s6512_s25] %v2873_v48  ;;  %v2877_v15 = vld [vmem:[%s6313_s13 + $0xc0] sm:%s6512_s25] }
 0x571   : > { %2876 = vst [vmem:[%s6316_s12 + $0x268] sm:%s6512_s25] %v2875_v3  ;;  %v2879_v51 = vld [vmem:[%s6313_s13 + $0xd0] sm:%s6512_s25] }
 0x572   : > { %2878 = vst [vmem:[%s6316_s12 + $0x2a0] sm:%s6512_s25] %v2877_v15  ;;  %v2881_v56 = vld [vmem:[%s6313_s13 + $0xe0] sm:%s6512_s25] }
 0x573   : > { %2880 = vst [vmem:[%s6316_s12 + $0x2d8] sm:%s6512_s25] %v2879_v51  ;;  %v2883_v52 = vld [vmem:[%s6313_s13 + $0xf0] sm:%s6512_s25] }
 0x574   : > { %2882 = vst [vmem:[%s6316_s12 + $0x310] sm:%s6512_s25] %v2881_v56 }
 0x575   : > { %2884 = vst [vmem:[%s6316_s12 + $0x348] sm:%s6512_s25] %v2883_v52 }
 0x576 PF: > { %p3264_p1 = scmp.ge.u32.totalorder %s6105_s24, 8 }
 0x577   : > { %s4095_s29 = smov (!%p3264_p1), 1  }
 0x578   : > { %2513 = sbr.rel (%p3264_p1) target bundleno = 1422 (0x58e), region = 142  ;;  %s2514_s13 = sshll.u32 (!%p3264_p1), %s4095_s29, %s6105_s24 }
 0x579   : > { %s6580_s12 = sadd.s32 (!%p3264_p1), 4294967295, %s2514_s13 }
 0x57d   : > { %v2524_v44 = vld [vmem:[%s4787_s18] sm:%s6580_s12]  ;;  %v2526_v62 = vld [vmem:[%s4787_s18 + $0x10] sm:%s6580_s12] }
 0x57e   : > { %2525 = vst [vmem:[%s6103_s30] sm:%s6580_s12] %v2524_v44  ;;  %v2528_v28 = vld [vmem:[%s4787_s18 + $0x20] sm:%s6580_s12] }
 0x57f   : > { %2527 = vst [vmem:[%s6103_s30 + $0x38] sm:%s6580_s12] %v2526_v62  ;;  %v2530_v25 = vld [vmem:[%s4787_s18 + $0x30] sm:%s6580_s12] }
 0x580   : > { %2529 = vst [vmem:[%s6103_s30 + $0x70] sm:%s6580_s12] %v2528_v28  ;;  %v2532_v1 = vld [vmem:[%s4787_s18 + $0x40] sm:%s6580_s12] }
 0x581   : > { %2531 = vst [vmem:[%s6103_s30 + $0xa8] sm:%s6580_s12] %v2530_v25  ;;  %v2534_v2 = vld [vmem:[%s4787_s18 + $0x50] sm:%s6580_s12] }
 0x582   : > { %2533 = vst [vmem:[%s6103_s30 + $0xe0] sm:%s6580_s12] %v2532_v1  ;;  %v2536_v63 = vld [vmem:[%s4787_s18 + $0x60] sm:%s6580_s12] }
 0x583   : > { %2535 = vst [vmem:[%s6103_s30 + $0x118] sm:%s6580_s12] %v2534_v2  ;;  %v2538_v13 = vld [vmem:[%s4787_s18 + $0x70] sm:%s6580_s12] }
 0x584   : > { %2537 = vst [vmem:[%s6103_s30 + $0x150] sm:%s6580_s12] %v2536_v63  ;;  %v2540_v45 = vld [vmem:[%s4787_s18 + $0x80] sm:%s6580_s12] }
 0x585   : > { %2539 = vst [vmem:[%s6103_s30 + $0x188] sm:%s6580_s12] %v2538_v13  ;;  %v2542_v42 = vld [vmem:[%s4787_s18 + $0x90] sm:%s6580_s12] }
 0x586   : > { %2541 = vst [vmem:[%s6103_s30 + $0x1c0] sm:%s6580_s12] %v2540_v45  ;;  %v2544_v41 = vld [vmem:[%s4787_s18 + $0xa0] sm:%s6580_s12] }
 0x587   : > { %2543 = vst [vmem:[%s6103_s30 + $0x1f8] sm:%s6580_s12] %v2542_v42  ;;  %v2546_v10 = vld [vmem:[%s4787_s18 + $0xb0] sm:%s6580_s12] }
 0x588   : > { %2545 = vst [vmem:[%s6103_s30 + $0x230] sm:%s6580_s12] %v2544_v41  ;;  %v2548_v36 = vld [vmem:[%s4787_s18 + $0xc0] sm:%s6580_s12] }
 0x589   : > { %2547 = vst [vmem:[%s6103_s30 + $0x268] sm:%s6580_s12] %v2546_v10  ;;  %v2550_v29 = vld [vmem:[%s4787_s18 + $0xd0] sm:%s6580_s12] }
 0x58a   : > { %2549 = vst [vmem:[%s6103_s30 + $0x2a0] sm:%s6580_s12] %v2548_v36  ;;  %v2552_v6 = vld [vmem:[%s4787_s18 + $0xe0] sm:%s6580_s12] }
 0x58b   : > { %2551 = vst [vmem:[%s6103_s30 + $0x2d8] sm:%s6580_s12] %v2550_v29  ;;  %v2554_v20 = vld [vmem:[%s4787_s18 + $0xf0] sm:%s6580_s12] }
 0x58c   : > { %2553 = vst [vmem:[%s6103_s30 + $0x310] sm:%s6580_s12] %v2552_v6 }
 0x58d   : > { %2555 = vst [vmem:[%s6103_s30 + $0x348] sm:%s6580_s12] %v2554_v20 }
 0x58e PF: > { %s17_s9 = sadd.s32 1, %s3959_s9   ;;  %s6787_s24 = sld [smem:[#allocation8_spill]] }
 0x58f   : > { %p14_p2 = scmp.ge.s32.totalorder %s17_s9, 10   ;;  %s6788_s25 = sld [smem:[#allocation15_spill]] }
 0x590   : > { %s6789_s26 = sld [smem:[#allocation9_spill]] }
 0x591   : > { %s6790_s27 = sld [smem:[#allocation14_spill]]  ;;  %16 = sbr.rel (!%p14_p2) target bundleno = 8 (0x8), region = 353 }
 0x592   : > { %s6791_s28 = sld [smem:[#allocation10_spill]] }
 0x593   : > { %s6792_s29 = sld [smem:[#allocation11_spill]] }
 0x594   : > { %s6793_s30 = sld [smem:[#allocation12_spill]] }
 0x595   : > { %s6794_s8 = sld [smem:[#allocation13_spill]] }

</bundles_post_ra>
